<compile_context>
chip_gen: v7x
topology: tpu7x:2x2x1
jax: 0.10.0
libtpu: 0.0.40
codegen_flags: <defaults>
</compile_context>

<pallas_src>
import functools
import random

import jax
import jax.numpy as jnp
from jax.experimental import pallas as pl
from jax.experimental.pallas import tpu as pltpu


# ----------------------------------------------------------------------------
# Pallas kernels
# ----------------------------------------------------------------------------
def _conv_mm_kernel(w_ref, p_ref, b_ref, o_ref):
    # (Cout, K) @ (K, Mb) -> lane-dense (Cout, Mb); bias + ReLU fused, f32 acc.
    acc = jnp.dot(w_ref[...], p_ref[...], preferred_element_type=jnp.float32)
    o_ref[...] = jnp.maximum(acc + b_ref[...], 0.0)


def conv_matmul(wmat, patT, b):
    """wmat: (Cout, K) bf16, patT: (K, M) bf16, b: (Cout,) f32 -> (Cout, M) f32."""
    Cout, K = wmat.shape
    _, M = patT.shape
    # Split the lane-dense M axis into 2 parallel blocks when divisible so the
    # second TensorCore on v7x gets work; no-op on v5e/v6e (single TC).
    g = 2 if (M % 256 == 0) else 1
    Mb = M // g
    return pl.pallas_call(
        _conv_mm_kernel,
        out_shape=jax.ShapeDtypeStruct((Cout, M), jnp.float32),
        grid=(g,),
        in_specs=[
            pl.BlockSpec((Cout, K), lambda i: (0, 0)),
            pl.BlockSpec((K, Mb), lambda i: (0, i)),
            pl.BlockSpec((Cout, 1), lambda i: (0, 0)),
        ],
        out_specs=pl.BlockSpec((Cout, Mb), lambda i: (0, i)),
        compiler_params=pltpu.CompilerParams(
            dimension_semantics=("parallel",)),
    )(wmat, patT, b.reshape(Cout, 1))


def _enc_mlp_kernel(h_ref, w1_ref, b1_ref, w2_ref, b2_ref, w3_ref, b3_ref,
                    o_ref):
    """Fused encoder head: (lin+relu) -> (lin+relu) -> lin, all in one VMEM pass."""
    h = h_ref[...].astype(jnp.bfloat16)
    a = jnp.dot(h, w1_ref[...], preferred_element_type=jnp.float32) + b1_ref[...]
    a = jnp.maximum(a, 0.0)
    a = jnp.dot(a.astype(jnp.bfloat16), w2_ref[...],
                preferred_element_type=jnp.float32) + b2_ref[...]
    a = jnp.maximum(a, 0.0)
    o_ref[...] = (jnp.dot(a.astype(jnp.bfloat16), w3_ref[...],
                          preferred_element_type=jnp.float32) + b3_ref[...])


def enc_mlp(h, w1, b1, w2, b2, w3, b3):
    M = h.shape[0]
    N = w3.shape[1]

    def fs(shape):
        return pl.BlockSpec(shape, lambda i: (0, 0))

    return pl.pallas_call(
        _enc_mlp_kernel,
        out_shape=jax.ShapeDtypeStruct((M, N), jnp.float32),
        grid=(1,),
        in_specs=[
            fs(h.shape),
            fs(w1.shape), fs((1, w1.shape[1])),
            fs(w2.shape), fs((1, w2.shape[1])),
            fs(w3.shape), fs((1, w3.shape[1])),
        ],
        out_specs=fs((M, N)),
    )(h, w1, b1.reshape(1, -1), w2, b2.reshape(1, -1), w3, b3.reshape(1, -1))


def _dec_kernel(mean_ref, logvar_ref, eps_ref, w1_ref, b1_ref, w2_ref, b2_ref,
                w3_ref, b3_ref, recon_ref, z_ref):
    """Reparameterization trick fused with the decoder MLP (+ sigmoid head)."""
    z = mean_ref[...] + jnp.exp(0.5 * logvar_ref[...]) * eps_ref[...]
    z_ref[...] = z
    h = jnp.dot(z.astype(jnp.bfloat16), w1_ref[...],
                preferred_element_type=jnp.float32) + b1_ref[...]
    h = jnp.maximum(h, 0.0)
    h = jnp.dot(h.astype(jnp.bfloat16), w2_ref[...],
                preferred_element_type=jnp.float32) + b2_ref[...]
    h = jnp.maximum(h, 0.0)
    out = jnp.dot(h.astype(jnp.bfloat16), w3_ref[...],
                  preferred_element_type=jnp.float32) + b3_ref[...]
    recon_ref[...] = jax.nn.sigmoid(out)


def decode_with_reparam(mean, logvar, eps, w1, b1, w2, b2, w3, b3):
    B, D = mean.shape
    P = w3.shape[1]

    def fs(shape):
        return pl.BlockSpec(shape, lambda i: (0, 0))

    return pl.pallas_call(
        _dec_kernel,
        out_shape=(jax.ShapeDtypeStruct((B, P), jnp.float32),
                   jax.ShapeDtypeStruct((B, D), jnp.float32)),
        grid=(1,),
        in_specs=[
            fs((B, D)), fs((B, D)), fs((B, D)),
            fs(w1.shape), fs((1, w1.shape[1])),
            fs(w2.shape), fs((1, w2.shape[1])),
            fs(w3.shape), fs((1, w3.shape[1])),
        ],
        out_specs=(fs((B, P)), fs((B, D))),
    )(mean, logvar, eps, w1, b1.reshape(1, -1), w2, b2.reshape(1, -1),
      w3, b3.reshape(1, -1))


# ----------------------------------------------------------------------------
# Conv via im2col + lane-dense Pallas matmul (glue fuses under jit)
# ----------------------------------------------------------------------------
def _im2col_T(x, k, stride, pad):
    """(B,C,H,W) -> patches^T of shape (C*k*k, B*Ho*Wo); K ordered (C, kh, kw)."""
    B, C, H, W = x.shape
    xp = jnp.pad(x, ((0, 0), (0, 0), (pad, pad), (pad, pad)))
    Ho = (H + 2 * pad - k) // stride + 1
    Wo = (W + 2 * pad - k) // stride + 1
    cols = []
    for i in range(k):
        for j in range(k):
            cols.append(xp[:, :, i:i + stride * Ho:stride, j:j + stride * Wo:stride])
    pat = jnp.stack(cols, axis=2)                 # (B, C, k*k, Ho, Wo)
    pat = pat.transpose(1, 2, 0, 3, 4)            # (C, k*k, B, Ho, Wo)
    return pat.reshape(C * k * k, B * Ho * Wo), Ho, Wo


def conv2d(x, w, b, stride, pad):
    """w: (Cout, Cin, kh, kw) bf16 (PyTorch layout); bias + ReLU fused in-kernel."""
    Cout, Cin, kh, kw = w.shape
    patT, Ho, Wo = _im2col_T(x, kh, stride, pad)
    out = conv_matmul(w.reshape(Cout, Cin * kh * kw),
                      patT.astype(jnp.bfloat16), b)          # (Cout, B*Ho*Wo)
    B = x.shape[0]
    return out.reshape(Cout, B, Ho, Wo).transpose(1, 0, 2, 3)  # back to NCHW


# ----------------------------------------------------------------------------
# Parameters
# ----------------------------------------------------------------------------
def init_params(key, img_size, latent_dim, latent_dim_unq):
    C, H, W = img_size
    hid_ch, hidden = 32, 256
    common = latent_dim - 2 * latent_dim_unq
    flat = hid_ch * (H // 8) * (W // 8)
    head = 2 * latent_dim_unq + 2 * common
    keys = jax.random.split(key, 9)

    def wn(k, shape, scale=0.05):
        # Matmul operands stored as bf16 (MXU-native on v6e/v7x, valid on v5e);
        # biases/activations/accumulation stay f32 (v5e VPU/EUP has no bf16).
        return (scale * jax.random.normal(k, shape, dtype=jnp.float32)
                ).astype(jnp.bfloat16)

    return {
        "conv1_w": wn(keys[0], (hid_ch, C, 4, 4)),
        "conv1_b": jnp.zeros((hid_ch,), jnp.float32),
        "conv2_w": wn(keys[1], (hid_ch, hid_ch, 4, 4)),
        "conv2_b": jnp.zeros((hid_ch,), jnp.float32),
        "conv3_w": wn(keys[2], (hid_ch, hid_ch, 4, 4)),
        "conv3_b": jnp.zeros((hid_ch,), jnp.float32),
        "enc_lin1_w": wn(keys[3], (flat, hidden)),
        "enc_lin1_b": jnp.zeros((hidden,), jnp.float32),
        "enc_lin2_w": wn(keys[4], (hidden, hidden)),
        "enc_lin2_b": jnp.zeros((hidden,), jnp.float32),
        "enc_head_w": wn(keys[5], (hidden, head)),
        "enc_head_b": jnp.zeros((head,), jnp.float32),
        "dec_lin1_w": wn(keys[6], (latent_dim, hidden)),
        "dec_lin1_b": jnp.zeros((hidden,), jnp.float32),
        "dec_lin2_w": wn(keys[7], (hidden, hidden)),
        "dec_lin2_b": jnp.zeros((hidden,), jnp.float32),
        "dec_lin3_w": wn(keys[8], (hidden, C * H * W)),
        "dec_lin3_b": jnp.zeros((C * H * W,), jnp.float32),
    }


# ----------------------------------------------------------------------------
# DoubleVAE forward (fully jitted)
# ----------------------------------------------------------------------------
@functools.partial(jax.jit,
                   static_argnames=("img_size", "latent_dim", "latent_dim_unq"))
def double_vae_forward(params, x_a, x_b, eps, coin, img_size, latent_dim,
                       latent_dim_unq):
    C, H, W = img_size
    B = x_a.shape[0]
    u = latent_dim_unq
    common = latent_dim - 2 * u

    # --- encoder: both images in ONE pass, stacked along batch (2B rows) ---
    x = jnp.concatenate([x_a, x_b], axis=0)                     # (2B, C, H, W)
    h = conv2d(x, params["conv1_w"], params["conv1_b"], 2, 1)
    h = conv2d(h, params["conv2_w"], params["conv2_b"], 2, 1)
    h = conv2d(h, params["conv3_w"], params["conv3_b"], 2, 1)
    h = h.reshape(2 * B, -1)                                    # == torch .view
    stats = enc_mlp(h,
                    params["enc_lin1_w"], params["enc_lin1_b"],
                    params["enc_lin2_w"], params["enc_lin2_b"],
                    params["enc_head_w"], params["enc_head_b"])

    sa, sb = stats[:B], stats[B:]
    mu_u1, lv_u1 = sa[:, :u], sa[:, u:2 * u]
    mu_c1, lv_c1 = sa[:, 2 * u:2 * u + common], sa[:, 2 * u + common:]
    mu_u2, lv_u2 = sb[:, :u], sb[:, u:2 * u]
    mu_c2, lv_c2 = sb[:, 2 * u:2 * u + common], sb[:, 2 * u + common:]
    latent_dists_double = (mu_u1, lv_u1, mu_c1, lv_c1,
                           mu_u2, lv_u2, mu_c2, lv_c2)

    # --- reparameterize_double ---
    # Reference returns sample1 (common stats from image a) or sample2 (from
    # image b) depending on a host random.random() coin; the extra averaged
    # `sample` it computes is dead code and dropped.  We select the a/b stats
    # by the coin up front and do a single fused reparam+decode (eps draws for
    # sample1/sample2 are iid, so this is distributionally identical).
    # TODO(synk): host-level random.random() branching stays on host (not
    # expressible as device control flow); the coin is passed in as a scalar
    # so the whole forward remains jittable.
    mean_a = jnp.concatenate((mu_u1, mu_c1, mu_u2), axis=-1)
    mean_b = jnp.concatenate((mu_u1, mu_c2, mu_u2), axis=-1)
    logvar_a = jnp.concatenate((lv_u1, lv_c1, lv_u2), axis=-1)
    logvar_b = jnp.concatenate((lv_u1, lv_c2, lv_u2), axis=-1)
    take_a = coin > 0.5
    mean = jnp.where(take_a, mean_a, mean_b)
    logvar = jnp.where(take_a, logvar_a, logvar_b)

    # --- fused reparameterization + decoder MLP + sigmoid head ---
    recon_flat, latent_sample = decode_with_reparam(
        mean, logvar, eps,
        params["dec_lin1_w"], params["dec_lin1_b"],
        params["dec_lin2_w"], params["dec_lin2_b"],
        params["dec_lin3_w"], params["dec_lin3_b"])
    reconstruct = recon_flat.reshape(B, C, H, W)
    return reconstruct, latent_dists_double, latent_sample


# ----------------------------------------------------------------------------
if __name__ == "__main__":
    random.seed(0)
    img_size = (1, 32, 32)      # (C, H, W); module supports 32x32 / 64x64 only
    latent_dim = 10
    latent_dim_unq = 3          # common dims = latent_dim - 2*latent_dim_unq = 4
    B = 2

    key = jax.random.PRNGKey(0)
    kx, kp, ke = jax.random.split(key, 3)
    kxa, kxb = jax.random.split(kx)
    x_a = jax.random.uniform(kxa, (B,) + img_size, dtype=jnp.float32)
    x_b = jax.random.uniform(kxb, (B,) + img_size, dtype=jnp.float32)

    params = init_params(kp, img_size, latent_dim, latent_dim_unq)

    eps = jax.random.normal(ke, (B, latent_dim), jnp.float32)
    coin = jnp.float32(random.random())          # host coin, passed as a scalar

    reconstruct, latent_dists, latent_sample = double_vae_forward(
        params, x_a, x_b, eps, coin,
        img_size=img_size, latent_dim=latent_dim, latent_dim_unq=latent_dim_unq)

    jax.block_until_ready(reconstruct)
    jax.block_until_ready(latent_sample)
    for t in latent_dists:
        jax.block_until_ready(t)

    assert reconstruct.shape == (B,) + img_size
    assert latent_sample.shape == (B, latent_dim)
    assert len(latent_dists) == 8
    print("KERNEL_OK")
</pallas_src>

<mosaic_0001>
module attributes {stable_mosaic.version = 11 : i64} {
  func.func @_conv_mm_kernel(%arg0: i32, %arg1: memref<32x16xbf16, #tpu.memory_space<vmem>>, %arg2: memref<16x512xbf16, #tpu.memory_space<vmem>>, %arg3: memref<32x1xf32, #tpu.memory_space<vmem>>, %arg4: memref<32x512xf32, #tpu.memory_space<vmem>>) attributes {dimension_semantics = [#tpu.dimension_semantics<parallel>], iteration_bounds = array<i64: 2>, scalar_prefetch = 0 : i64, scratch_operands = 0 : i64, tpu.core_type = #tpu.core_type<tc>, window_params = [{pipeline_mode = #tpu.pipeline_mode<synchronous>, transform_indices = @transform_0, window_bounds = array<i64: 32, 16>}, {transform_indices = @transform_1, window_bounds = array<i64: 16, 512>}, {pipeline_mode = #tpu.pipeline_mode<synchronous>, transform_indices = @transform_2, window_bounds = array<i64: 32, 1>}, {transform_indices = @transform_3, window_bounds = array<i64: 32, 512>}]} {
    %c0 = arith.constant 0 : index
    %c0_0 = arith.constant 0 : index
    %0 = vector.load %arg1[%c0, %c0_0] : memref<32x16xbf16, #tpu.memory_space<vmem>>, vector<32x16xbf16>
    %c0_1 = arith.constant 0 : index
    %c0_2 = arith.constant 0 : index
    %1 = vector.load %arg2[%c0_1, %c0_2] : memref<16x512xbf16, #tpu.memory_space<vmem>>, vector<16x512xbf16>
    %cst = arith.constant dense<0.000000e+00> : vector<32x512xf32>
    %2 = tpu.matmul %0, %1, %cst {dimension_numbers = #tpu.dot_dimension_numbers<[1], [0], [0], [1], [0, 0, 1, 1], [], []>} : vector<32x16xbf16>, vector<16x512xbf16>, vector<32x512xf32> -> vector<32x512xf32>
    %c0_3 = arith.constant 0 : index
    %c0_4 = arith.constant 0 : index
    %3 = vector.load %arg3[%c0_3, %c0_4] : memref<32x1xf32, #tpu.memory_space<vmem>>, vector<32x1xf32>
    %4 = vector.broadcast %3 : vector<32x1xf32> to vector<32x512xf32>
    %5 = arith.addf %2, %4 : vector<32x512xf32>
    %cst_5 = arith.constant 0.000000e+00 : f32
    %6 = vector.broadcast %cst_5 : f32 to vector<32x512xf32>
    %7 = arith.maximumf %5, %6 : vector<32x512xf32>
    %c0_6 = arith.constant 0 : index
    %c0_7 = arith.constant 0 : index
    %8 = vector.load %arg4[%c0_6, %c0_7] : memref<32x512xf32, #tpu.memory_space<vmem>>, vector<32x512xf32>
    tpu.vector_store %arg4[%c0_6, %c0_7], %7 {strides = array<i32>} : memref<32x512xf32, #tpu.memory_space<vmem>>, vector<32x512xf32>,
    return
  }
  func.func @transform_0(%arg0: i32) -> (i32, i32) {
    %c0_i32 = arith.constant 0 : i32
    %c0_i32_0 = arith.constant 0 : i32
    %c0_i32_1 = arith.constant 0 : i32
    return %c0_i32, %c0_i32_0 : i32, i32
  }
  func.func @transform_1(%arg0: i32) -> (i32, i32) {
    %c0_i32 = arith.constant 0 : i32
    %c0_i32_0 = arith.constant 0 : i32
    return %c0_i32, %arg0 : i32, i32
  }
  func.func @transform_2(%arg0: i32) -> (i32, i32) {
    %c0_i32 = arith.constant 0 : i32
    %c0_i32_0 = arith.constant 0 : i32
    %c0_i32_1 = arith.constant 0 : i32
    return %c0_i32, %c0_i32_0 : i32, i32
  }
  func.func @transform_3(%arg0: i32) -> (i32, i32) {
    %c0_i32 = arith.constant 0 : i32
    %c0_i32_0 = arith.constant 0 : i32
    return %c0_i32, %arg0 : i32, i32
  }
}

module attributes {stable_mosaic.version = 11 : i64} {
  func.func @_conv_mm_kernel(%arg0: i32, %arg1: memref<32x512xbf16, #tpu.memory_space<vmem>>, %arg2: memref<512x128xbf16, #tpu.memory_space<vmem>>, %arg3: memref<32x1xf32, #tpu.memory_space<vmem>>, %arg4: memref<32x128xf32, #tpu.memory_space<vmem>>) attributes {dimension_semantics = [#tpu.dimension_semantics<parallel>], iteration_bounds = array<i64: 2>, scalar_prefetch = 0 : i64, scratch_operands = 0 : i64, tpu.core_type = #tpu.core_type<tc>, window_params = [{pipeline_mode = #tpu.pipeline_mode<synchronous>, transform_indices = @transform_0, window_bounds = array<i64: 32, 512>}, {transform_indices = @transform_1, window_bounds = array<i64: 512, 128>}, {pipeline_mode = #tpu.pipeline_mode<synchronous>, transform_indices = @transform_2, window_bounds = array<i64: 32, 1>}, {transform_indices = @transform_3, window_bounds = array<i64: 32, 128>}]} {
    %c0 = arith.constant 0 : index
    %c0_0 = arith.constant 0 : index
    %0 = vector.load %arg1[%c0, %c0_0] : memref<32x512xbf16, #tpu.memory_space<vmem>>, vector<32x512xbf16>
    %c0_1 = arith.constant 0 : index
    %c0_2 = arith.constant 0 : index
    %1 = vector.load %arg2[%c0_1, %c0_2] : memref<512x128xbf16, #tpu.memory_space<vmem>>, vector<512x128xbf16>
    %cst = arith.constant dense<0.000000e+00> : vector<32x128xf32>
    %2 = tpu.matmul %0, %1, %cst {dimension_numbers = #tpu.dot_dimension_numbers<[1], [0], [0], [1], [0, 0, 1, 1], [], []>} : vector<32x512xbf16>, vector<512x128xbf16>, vector<32x128xf32> -> vector<32x128xf32>
    %c0_3 = arith.constant 0 : index
    %c0_4 = arith.constant 0 : index
    %3 = vector.load %arg3[%c0_3, %c0_4] : memref<32x1xf32, #tpu.memory_space<vmem>>, vector<32x1xf32>
    %4 = vector.broadcast %3 : vector<32x1xf32> to vector<32x128xf32>
    %5 = arith.addf %2, %4 : vector<32x128xf32>
    %cst_5 = arith.constant 0.000000e+00 : f32
    %6 = vector.broadcast %cst_5 : f32 to vector<32x128xf32>
    %7 = arith.maximumf %5, %6 : vector<32x128xf32>
    %c0_6 = arith.constant 0 : index
    %c0_7 = arith.constant 0 : index
    %8 = vector.load %arg4[%c0_6, %c0_7] : memref<32x128xf32, #tpu.memory_space<vmem>>, vector<32x128xf32>
    tpu.vector_store %arg4[%c0_6, %c0_7], %7 {strides = array<i32>} : memref<32x128xf32, #tpu.memory_space<vmem>>, vector<32x128xf32>,
    return
  }
  func.func @transform_0(%arg0: i32) -> (i32, i32) {
    %c0_i32 = arith.constant 0 : i32
    %c0_i32_0 = arith.constant 0 : i32
    %c0_i32_1 = arith.constant 0 : i32
    return %c0_i32, %c0_i32_0 : i32, i32
  }
  func.func @transform_1(%arg0: i32) -> (i32, i32) {
    %c0_i32 = arith.constant 0 : i32
    %c0_i32_0 = arith.constant 0 : i32
    return %c0_i32, %arg0 : i32, i32
  }
  func.func @transform_2(%arg0: i32) -> (i32, i32) {
    %c0_i32 = arith.constant 0 : i32
    %c0_i32_0 = arith.constant 0 : i32
    %c0_i32_1 = arith.constant 0 : i32
    return %c0_i32, %c0_i32_0 : i32, i32
  }
  func.func @transform_3(%arg0: i32) -> (i32, i32) {
    %c0_i32 = arith.constant 0 : i32
    %c0_i32_0 = arith.constant 0 : i32
    return %c0_i32, %arg0 : i32, i32
  }
}

module attributes {stable_mosaic.version = 11 : i64} {
  func.func @_conv_mm_kernel(%arg0: i32, %arg1: memref<32x512xbf16, #tpu.memory_space<vmem>>, %arg2: memref<512x64xbf16, #tpu.memory_space<vmem>>, %arg3: memref<32x1xf32, #tpu.memory_space<vmem>>, %arg4: memref<32x64xf32, #tpu.memory_space<vmem>>) attributes {dimension_semantics = [#tpu.dimension_semantics<parallel>], iteration_bounds = array<i64: 1>, scalar_prefetch = 0 : i64, scratch_operands = 0 : i64, tpu.core_type = #tpu.core_type<tc>, window_params = [{pipeline_mode = #tpu.pipeline_mode<synchronous>, transform_indices = @transform_0, window_bounds = array<i64: 32, 512>}, {transform_indices = @transform_1, window_bounds = array<i64: 512, 64>}, {pipeline_mode = #tpu.pipeline_mode<synchronous>, transform_indices = @transform_2, window_bounds = array<i64: 32, 1>}, {transform_indices = @transform_3, window_bounds = array<i64: 32, 64>}]} {
    %c0 = arith.constant 0 : index
    %c0_0 = arith.constant 0 : index
    %0 = vector.load %arg1[%c0, %c0_0] : memref<32x512xbf16, #tpu.memory_space<vmem>>, vector<32x512xbf16>
    %c0_1 = arith.constant 0 : index
    %c0_2 = arith.constant 0 : index
    %1 = vector.load %arg2[%c0_1, %c0_2] : memref<512x64xbf16, #tpu.memory_space<vmem>>, vector<512x64xbf16>
    %cst = arith.constant dense<0.000000e+00> : vector<32x64xf32>
    %2 = tpu.matmul %0, %1, %cst {dimension_numbers = #tpu.dot_dimension_numbers<[1], [0], [0], [1], [0, 0, 1, 1], [], []>} : vector<32x512xbf16>, vector<512x64xbf16>, vector<32x64xf32> -> vector<32x64xf32>
    %c0_3 = arith.constant 0 : index
    %c0_4 = arith.constant 0 : index
    %3 = vector.load %arg3[%c0_3, %c0_4] : memref<32x1xf32, #tpu.memory_space<vmem>>, vector<32x1xf32>
    %4 = vector.broadcast %3 : vector<32x1xf32> to vector<32x64xf32>
    %5 = arith.addf %2, %4 : vector<32x64xf32>
    %cst_5 = arith.constant 0.000000e+00 : f32
    %6 = vector.broadcast %cst_5 : f32 to vector<32x64xf32>
    %7 = arith.maximumf %5, %6 : vector<32x64xf32>
    %c0_6 = arith.constant 0 : index
    %c0_7 = arith.constant 0 : index
    %8 = vector.load %arg4[%c0_6, %c0_7] : memref<32x64xf32, #tpu.memory_space<vmem>>, vector<32x64xf32>
    tpu.vector_store %arg4[%c0_6, %c0_7], %7 {strides = array<i32>} : memref<32x64xf32, #tpu.memory_space<vmem>>, vector<32x64xf32>,
    return
  }
  func.func @transform_0(%arg0: i32) -> (i32, i32) {
    %c0_i32 = arith.constant 0 : i32
    %c0_i32_0 = arith.constant 0 : i32
    %c0_i32_1 = arith.constant 0 : i32
    return %c0_i32, %c0_i32_0 : i32, i32
  }
  func.func @transform_1(%arg0: i32) -> (i32, i32) {
    %c0_i32 = arith.constant 0 : i32
    %c0_i32_0 = arith.constant 0 : i32
    return %c0_i32, %arg0 : i32, i32
  }
  func.func @transform_2(%arg0: i32) -> (i32, i32) {
    %c0_i32 = arith.constant 0 : i32
    %c0_i32_0 = arith.constant 0 : i32
    %c0_i32_1 = arith.constant 0 : i32
    return %c0_i32, %c0_i32_0 : i32, i32
  }
  func.func @transform_3(%arg0: i32) -> (i32, i32) {
    %c0_i32 = arith.constant 0 : i32
    %c0_i32_0 = arith.constant 0 : i32
    return %c0_i32, %arg0 : i32, i32
  }
}

module attributes {stable_mosaic.version = 11 : i64} {
  func.func @_enc_mlp_kernel(%arg0: i32, %arg1: memref<4x512xf32, #tpu.memory_space<vmem>>, %arg2: memref<512x256xbf16, #tpu.memory_space<vmem>>, %arg3: memref<1x256xf32, #tpu.memory_space<vmem>>, %arg4: memref<256x256xbf16, #tpu.memory_space<vmem>>, %arg5: memref<1x256xf32, #tpu.memory_space<vmem>>, %arg6: memref<256x14xbf16, #tpu.memory_space<vmem>>, %arg7: memref<1x14xf32, #tpu.memory_space<vmem>>, %arg8: memref<4x14xf32, #tpu.memory_space<vmem>>) attributes {dimension_semantics = [#tpu.dimension_semantics<arbitrary>], iteration_bounds = array<i64: 1>, scalar_prefetch = 0 : i64, scratch_operands = 0 : i64, tpu.core_type = #tpu.core_type<tc>, window_params = [{pipeline_mode = #tpu.pipeline_mode<synchronous>, transform_indices = @transform_0, window_bounds = array<i64: 4, 512>}, {pipeline_mode = #tpu.pipeline_mode<synchronous>, transform_indices = @transform_1, window_bounds = array<i64: 512, 256>}, {pipeline_mode = #tpu.pipeline_mode<synchronous>, transform_indices = @transform_2, window_bounds = array<i64: 1, 256>}, {pipeline_mode = #tpu.pipeline_mode<synchronous>, transform_indices = @transform_3, window_bounds = array<i64: 256, 256>}, {pipeline_mode = #tpu.pipeline_mode<synchronous>, transform_indices = @transform_4, window_bounds = array<i64: 1, 256>}, {pipeline_mode = #tpu.pipeline_mode<synchronous>, transform_indices = @transform_5, window_bounds = array<i64: 256, 14>}, {pipeline_mode = #tpu.pipeline_mode<synchronous>, transform_indices = @transform_6, window_bounds = array<i64: 1, 14>}, {pipeline_mode = #tpu.pipeline_mode<synchronous>, transform_indices = @transform_7, window_bounds = array<i64: 4, 14>}]} {
    %c0 = arith.constant 0 : index
    %c0_0 = arith.constant 0 : index
    %0 = vector.load %arg1[%c0, %c0_0] : memref<4x512xf32, #tpu.memory_space<vmem>>, vector<4x512xf32>
    %1 = arith.truncf %0 : vector<4x512xf32> to vector<4x512xbf16>
    %c0_1 = arith.constant 0 : index
    %c0_2 = arith.constant 0 : index
    %2 = vector.load %arg2[%c0_1, %c0_2] : memref<512x256xbf16, #tpu.memory_space<vmem>>, vector<512x256xbf16>
    %cst = arith.constant dense<0.000000e+00> : vector<4x256xf32>
    %3 = tpu.matmul %1, %2, %cst {dimension_numbers = #tpu.dot_dimension_numbers<[1], [0], [0], [1], [0, 0, 1, 1], [], []>} : vector<4x512xbf16>, vector<512x256xbf16>, vector<4x256xf32> -> vector<4x256xf32>
    %c0_3 = arith.constant 0 : index
    %c0_4 = arith.constant 0 : index
    %4 = vector.load %arg3[%c0_3, %c0_4] : memref<1x256xf32, #tpu.memory_space<vmem>>, vector<1x256xf32>
    %5 = vector.broadcast %4 : vector<1x256xf32> to vector<4x256xf32>
    %6 = arith.addf %3, %5 : vector<4x256xf32>
    %cst_5 = arith.constant 0.000000e+00 : f32
    %7 = vector.broadcast %cst_5 : f32 to vector<4x256xf32>
    %8 = arith.maximumf %6, %7 : vector<4x256xf32>
    %9 = arith.truncf %8 : vector<4x256xf32> to vector<4x256xbf16>
    %c0_6 = arith.constant 0 : index
    %c0_7 = arith.constant 0 : index
    %10 = vector.load %arg4[%c0_6, %c0_7] : memref<256x256xbf16, #tpu.memory_space<vmem>>, vector<256x256xbf16>
    %cst_8 = arith.constant dense<0.000000e+00> : vector<4x256xf32>
    %11 = tpu.matmul %9, %10, %cst_8 {dimension_numbers = #tpu.dot_dimension_numbers<[1], [0], [0], [1], [0, 0, 1, 1], [], []>} : vector<4x256xbf16>, vector<256x256xbf16>, vector<4x256xf32> -> vector<4x256xf32>
    %c0_9 = arith.constant 0 : index
    %c0_10 = arith.constant 0 : index
    %12 = vector.load %arg5[%c0_9, %c0_10] : memref<1x256xf32, #tpu.memory_space<vmem>>, vector<1x256xf32>
    %13 = vector.broadcast %12 : vector<1x256xf32> to vector<4x256xf32>
    %14 = arith.addf %11, %13 : vector<4x256xf32>
    %cst_11 = arith.constant 0.000000e+00 : f32
    %15 = vector.broadcast %cst_11 : f32 to vector<4x256xf32>
    %16 = arith.maximumf %14, %15 : vector<4x256xf32>
    %17 = arith.truncf %16 : vector<4x256xf32> to vector<4x256xbf16>
    %c0_12 = arith.constant 0 : index
    %c0_13 = arith.constant 0 : index
    %18 = vector.load %arg6[%c0_12, %c0_13] : memref<256x14xbf16, #tpu.memory_space<vmem>>, vector<256x14xbf16>
    %cst_14 = arith.constant dense<0.000000e+00> : vector<4x14xf32>
    %19 = tpu.matmul %17, %18, %cst_14 {dimension_numbers = #tpu.dot_dimension_numbers<[1], [0], [0], [1], [0, 0, 1, 1], [], []>} : vector<4x256xbf16>, vector<256x14xbf16>, vector<4x14xf32> -> vector<4x14xf32>
    %c0_15 = arith.constant 0 : index
    %c0_16 = arith.constant 0 : index
    %20 = vector.load %arg7[%c0_15, %c0_16] : memref<1x14xf32, #tpu.memory_space<vmem>>, vector<1x14xf32>
    %21 = vector.broadcast %20 : vector<1x14xf32> to vector<4x14xf32>
    %22 = arith.addf %19, %21 : vector<4x14xf32>
    %c0_17 = arith.constant 0 : index
    %c0_18 = arith.constant 0 : index
    %23 = vector.load %arg8[%c0_17, %c0_18] : memref<4x14xf32, #tpu.memory_space<vmem>>, vector<4x14xf32>
    tpu.vector_store %arg8[%c0_17, %c0_18], %22 {strides = array<i32>} : memref<4x14xf32, #tpu.memory_space<vmem>>, vector<4x14xf32>,
    return
  }
  func.func @transform_0(%arg0: i32) -> (i32, i32) {
    %c0_i32 = arith.constant 0 : i32
    %c0_i32_0 = arith.constant 0 : i32
    %c0_i32_1 = arith.constant 0 : i32
    return %c0_i32, %c0_i32_0 : i32, i32
  }
  func.func @transform_1(%arg0: i32) -> (i32, i32) {
    %c0_i32 = arith.constant 0 : i32
    %c0_i32_0 = arith.constant 0 : i32
    %c0_i32_1 = arith.constant 0 : i32
    return %c0_i32, %c0_i32_0 : i32, i32
  }
  func.func @transform_2(%arg0: i32) -> (i32, i32) {
    %c0_i32 = arith.constant 0 : i32
    %c0_i32_0 = arith.constant 0 : i32
    %c0_i32_1 = arith.constant 0 : i32
    return %c0_i32, %c0_i32_0 : i32, i32
  }
  func.func @transform_3(%arg0: i32) -> (i32, i32) {
    %c0_i32 = arith.constant 0 : i32
    %c0_i32_0 = arith.constant 0 : i32
    %c0_i32_1 = arith.constant 0 : i32
    return %c0_i32, %c0_i32_0 : i32, i32
  }
  func.func @transform_4(%arg0: i32) -> (i32, i32) {
    %c0_i32 = arith.constant 0 : i32
    %c0_i32_0 = arith.constant 0 : i32
    %c0_i32_1 = arith.constant 0 : i32
    return %c0_i32, %c0_i32_0 : i32, i32
  }
  func.func @transform_5(%arg0: i32) -> (i32, i32) {
    %c0_i32 = arith.constant 0 : i32
    %c0_i32_0 = arith.constant 0 : i32
    %c0_i32_1 = arith.constant 0 : i32
    return %c0_i32, %c0_i32_0 : i32, i32
  }
  func.func @transform_6(%arg0: i32) -> (i32, i32) {
    %c0_i32 = arith.constant 0 : i32
    %c0_i32_0 = arith.constant 0 : i32
    %c0_i32_1 = arith.constant 0 : i32
    return %c0_i32, %c0_i32_0 : i32, i32
  }
  func.func @transform_7(%arg0: i32) -> (i32, i32) {
    %c0_i32 = arith.constant 0 : i32
    %c0_i32_0 = arith.constant 0 : i32
    %c0_i32_1 = arith.constant 0 : i32
    return %c0_i32, %c0_i32_0 : i32, i32
  }
}

module attributes {stable_mosaic.version = 11 : i64} {
  func.func @_dec_kernel(%arg0: i32, %arg1: memref<2x10xf32, #tpu.memory_space<vmem>>, %arg2: memref<2x10xf32, #tpu.memory_space<vmem>>, %arg3: memref<2x10xf32, #tpu.memory_space<vmem>>, %arg4: memref<10x256xbf16, #tpu.memory_space<vmem>>, %arg5: memref<1x256xf32, #tpu.memory_space<vmem>>, %arg6: memref<256x256xbf16, #tpu.memory_space<vmem>>, %arg7: memref<1x256xf32, #tpu.memory_space<vmem>>, %arg8: memref<256x1024xbf16, #tpu.memory_space<vmem>>, %arg9: memref<1x1024xf32, #tpu.memory_space<vmem>>, %arg10: memref<2x1024xf32, #tpu.memory_space<vmem>>, %arg11: memref<2x10xf32, #tpu.memory_space<vmem>>) attributes {dimension_semantics = [#tpu.dimension_semantics<arbitrary>], iteration_bounds = array<i64: 1>, scalar_prefetch = 0 : i64, scratch_operands = 0 : i64, tpu.core_type = #tpu.core_type<tc>, window_params = [{pipeline_mode = #tpu.pipeline_mode<synchronous>, transform_indices = @transform_0, window_bounds = array<i64: 2, 10>}, {pipeline_mode = #tpu.pipeline_mode<synchronous>, transform_indices = @transform_1, window_bounds = array<i64: 2, 10>}, {pipeline_mode = #tpu.pipeline_mode<synchronous>, transform_indices = @transform_2, window_bounds = array<i64: 2, 10>}, {pipeline_mode = #tpu.pipeline_mode<synchronous>, transform_indices = @transform_3, window_bounds = array<i64: 10, 256>}, {pipeline_mode = #tpu.pipeline_mode<synchronous>, transform_indices = @transform_4, window_bounds = array<i64: 1, 256>}, {pipeline_mode = #tpu.pipeline_mode<synchronous>, transform_indices = @transform_5, window_bounds = array<i64: 256, 256>}, {pipeline_mode = #tpu.pipeline_mode<synchronous>, transform_indices = @transform_6, window_bounds = array<i64: 1, 256>}, {pipeline_mode = #tpu.pipeline_mode<synchronous>, transform_indices = @transform_7, window_bounds = array<i64: 256, 1024>}, {pipeline_mode = #tpu.pipeline_mode<synchronous>, transform_indices = @transform_8, window_bounds = array<i64: 1, 1024>}, {pipeline_mode = #tpu.pipeline_mode<synchronous>, transform_indices = @transform_9, window_bounds = array<i64: 2, 1024>}, {pipeline_mode = #tpu.pipeline_mode<synchronous>, transform_indices = @transform_10, window_bounds = array<i64: 2, 10>}]} {
    %c0 = arith.constant 0 : index
    %c0_0 = arith.constant 0 : index
    %0 = vector.load %arg1[%c0, %c0_0] : memref<2x10xf32, #tpu.memory_space<vmem>>, vector<2x10xf32>
    %c0_1 = arith.constant 0 : index
    %c0_2 = arith.constant 0 : index
    %1 = vector.load %arg2[%c0_1, %c0_2] : memref<2x10xf32, #tpu.memory_space<vmem>>, vector<2x10xf32>
    %cst = arith.constant 5.000000e-01 : f32
    %2 = vector.broadcast %cst : f32 to vector<2x10xf32>
    %3 = arith.mulf %2, %1 : vector<2x10xf32>
    %4 = math.exp %3 : vector<2x10xf32>
    %c0_3 = arith.constant 0 : index
    %c0_4 = arith.constant 0 : index
    %5 = vector.load %arg3[%c0_3, %c0_4] : memref<2x10xf32, #tpu.memory_space<vmem>>, vector<2x10xf32>
    %6 = arith.mulf %4, %5 : vector<2x10xf32>
    %7 = arith.addf %0, %6 : vector<2x10xf32>
    %c0_5 = arith.constant 0 : index
    %c0_6 = arith.constant 0 : index
    %8 = vector.load %arg11[%c0_5, %c0_6] : memref<2x10xf32, #tpu.memory_space<vmem>>, vector<2x10xf32>
    tpu.vector_store %arg11[%c0_5, %c0_6], %7 {strides = array<i32>} : memref<2x10xf32, #tpu.memory_space<vmem>>, vector<2x10xf32>,
    %9 = arith.truncf %7 : vector<2x10xf32> to vector<2x10xbf16>
    %c0_7 = arith.constant 0 : index
    %c0_8 = arith.constant 0 : index
    %10 = vector.load %arg4[%c0_7, %c0_8] : memref<10x256xbf16, #tpu.memory_space<vmem>>, vector<10x256xbf16>
    %cst_9 = arith.constant dense<0.000000e+00> : vector<2x256xf32>
    %11 = tpu.matmul %9, %10, %cst_9 {dimension_numbers = #tpu.dot_dimension_numbers<[1], [0], [0], [1], [0, 0, 1, 1], [], []>} : vector<2x10xbf16>, vector<10x256xbf16>, vector<2x256xf32> -> vector<2x256xf32>
    %c0_10 = arith.constant 0 : index
    %c0_11 = arith.constant 0 : index
    %12 = vector.load %arg5[%c0_10, %c0_11] : memref<1x256xf32, #tpu.memory_space<vmem>>, vector<1x256xf32>
    %13 = vector.broadcast %12 : vector<1x256xf32> to vector<2x256xf32>
    %14 = arith.addf %11, %13 : vector<2x256xf32>
    %cst_12 = arith.constant 0.000000e+00 : f32
    %15 = vector.broadcast %cst_12 : f32 to vector<2x256xf32>
    %16 = arith.maximumf %14, %15 : vector<2x256xf32>
    %17 = arith.truncf %16 : vector<2x256xf32> to vector<2x256xbf16>
    %c0_13 = arith.constant 0 : index
    %c0_14 = arith.constant 0 : index
    %18 = vector.load %arg6[%c0_13, %c0_14] : memref<256x256xbf16, #tpu.memory_space<vmem>>, vector<256x256xbf16>
    %cst_15 = arith.constant dense<0.000000e+00> : vector<2x256xf32>
    %19 = tpu.matmul %17, %18, %cst_15 {dimension_numbers = #tpu.dot_dimension_numbers<[1], [0], [0], [1], [0, 0, 1, 1], [], []>} : vector<2x256xbf16>, vector<256x256xbf16>, vector<2x256xf32> -> vector<2x256xf32>
    %c0_16 = arith.constant 0 : index
    %c0_17 = arith.constant 0 : index
    %20 = vector.load %arg7[%c0_16, %c0_17] : memref<1x256xf32, #tpu.memory_space<vmem>>, vector<1x256xf32>
    %21 = vector.broadcast %20 : vector<1x256xf32> to vector<2x256xf32>
    %22 = arith.addf %19, %21 : vector<2x256xf32>
    %cst_18 = arith.constant 0.000000e+00 : f32
    %23 = vector.broadcast %cst_18 : f32 to vector<2x256xf32>
    %24 = arith.maximumf %22, %23 : vector<2x256xf32>
    %25 = arith.truncf %24 : vector<2x256xf32> to vector<2x256xbf16>
    %c0_19 = arith.constant 0 : index
    %c0_20 = arith.constant 0 : index
    %26 = vector.load %arg8[%c0_19, %c0_20] : memref<256x1024xbf16, #tpu.memory_space<vmem>>, vector<256x1024xbf16>
    %cst_21 = arith.constant dense<0.000000e+00> : vector<2x1024xf32>
    %27 = tpu.matmul %25, %26, %cst_21 {dimension_numbers = #tpu.dot_dimension_numbers<[1], [0], [0], [1], [0, 0, 1, 1], [], []>} : vector<2x256xbf16>, vector<256x1024xbf16>, vector<2x1024xf32> -> vector<2x1024xf32>
    %c0_22 = arith.constant 0 : index
    %c0_23 = arith.constant 0 : index
    %28 = vector.load %arg9[%c0_22, %c0_23] : memref<1x1024xf32, #tpu.memory_space<vmem>>, vector<1x1024xf32>
    %29 = vector.broadcast %28 : vector<1x1024xf32> to vector<2x1024xf32>
    %30 = arith.addf %27, %29 : vector<2x1024xf32>
    %31 = arith.negf %30 : vector<2x1024xf32>
    %32 = math.exp %31 : vector<2x1024xf32>
    %cst_24 = arith.constant 1.000000e+00 : f32
    %33 = vector.broadcast %cst_24 : f32 to vector<2x1024xf32>
    %34 = arith.addf %33, %32 : vector<2x1024xf32>
    %35 = arith.divf %33, %34 : vector<2x1024xf32>
    %c0_25 = arith.constant 0 : index
    %c0_26 = arith.constant 0 : index
    %36 = vector.load %arg10[%c0_25, %c0_26] : memref<2x1024xf32, #tpu.memory_space<vmem>>, vector<2x1024xf32>
    tpu.vector_store %arg10[%c0_25, %c0_26], %35 {strides = array<i32>} : memref<2x1024xf32, #tpu.memory_space<vmem>>, vector<2x1024xf32>,
    return
  }
  func.func @transform_0(%arg0: i32) -> (i32, i32) {
    %c0_i32 = arith.constant 0 : i32
    %c0_i32_0 = arith.constant 0 : i32
    %c0_i32_1 = arith.constant 0 : i32
    return %c0_i32, %c0_i32_0 : i32, i32
  }
  func.func @transform_1(%arg0: i32) -> (i32, i32) {
    %c0_i32 = arith.constant 0 : i32
    %c0_i32_0 = arith.constant 0 : i32
    %c0_i32_1 = arith.constant 0 : i32
    return %c0_i32, %c0_i32_0 : i32, i32
  }
  func.func @transform_2(%arg0: i32) -> (i32, i32) {
    %c0_i32 = arith.constant 0 : i32
    %c0_i32_0 = arith.constant 0 : i32
    %c0_i32_1 = arith.constant 0 : i32
    return %c0_i32, %c0_i32_0 : i32, i32
  }
  func.func @transform_3(%arg0: i32) -> (i32, i32) {
    %c0_i32 = arith.constant 0 : i32
    %c0_i32_0 = arith.constant 0 : i32
    %c0_i32_1 = arith.constant 0 : i32
    return %c0_i32, %c0_i32_0 : i32, i32
  }
  func.func @transform_4(%arg0: i32) -> (i32, i32) {
    %c0_i32 = arith.constant 0 : i32
    %c0_i32_0 = arith.constant 0 : i32
    %c0_i32_1 = arith.constant 0 : i32
    return %c0_i32, %c0_i32_0 : i32, i32
  }
  func.func @transform_5(%arg0: i32) -> (i32, i32) {
    %c0_i32 = arith.constant 0 : i32
    %c0_i32_0 = arith.constant 0 : i32
    %c0_i32_1 = arith.constant 0 : i32
    return %c0_i32, %c0_i32_0 : i32, i32
  }
  func.func @transform_6(%arg0: i32) -> (i32, i32) {
    %c0_i32 = arith.constant 0 : i32
    %c0_i32_0 = arith.constant 0 : i32
    %c0_i32_1 = arith.constant 0 : i32
    return %c0_i32, %c0_i32_0 : i32, i32
  }
  func.func @transform_7(%arg0: i32) -> (i32, i32) {
    %c0_i32 = arith.constant 0 : i32
    %c0_i32_0 = arith.constant 0 : i32
    %c0_i32_1 = arith.constant 0 : i32
    return %c0_i32, %c0_i32_0 : i32, i32
  }
  func.func @transform_8(%arg0: i32) -> (i32, i32) {
    %c0_i32 = arith.constant 0 : i32
    %c0_i32_0 = arith.constant 0 : i32
    %c0_i32_1 = arith.constant 0 : i32
    return %c0_i32, %c0_i32_0 : i32, i32
  }
  func.func @transform_9(%arg0: i32) -> (i32, i32) {
    %c0_i32 = arith.constant 0 : i32
    %c0_i32_0 = arith.constant 0 : i32
    %c0_i32_1 = arith.constant 0 : i32
    return %c0_i32, %c0_i32_0 : i32, i32
  }
  func.func @transform_10(%arg0: i32) -> (i32, i32) {
    %c0_i32 = arith.constant 0 : i32
    %c0_i32_0 = arith.constant 0 : i32
    %c0_i32_1 = arith.constant 0 : i32
    return %c0_i32, %c0_i32_0 : i32, i32
  }
}

</mosaic_0001>

<bundles_post_ra>
// kernel: double_vae_forward.5
= control target key start
LH: loop header
LB: loop body
LE: loop exit
PB: predicated region body
PF: predicated region fallthrough
CT: control target
= control target key end

     0   :  { %s621_s12 = smov 0   ;;  %s623_s13 = smov 0   ;;  %s737_s0 = inlined_call_operand.vmem [shape: bf16[32,16], index: 0, kind: input, shape index: {}]   ;;  %s738_s1 = inlined_call_operand.vmem [shape: bf16[16,1024], index: 1, kind: input, shape index: {}]   ;;  %s739_s2 = inlined_call_operand.vmem [shape: f32[32,1], index: 2, kind: input, shape index: {}]   ;;  %s740_s3 = inlined_call_operand.vmem [shape: f32[32,1024], index: 3, kind: output, shape index: {}]  }
   0x1   :  { %s625_s14 = smov 0  }
   0x2 LB: > { %s514_s15 = sadd.s32 4294967295, %s598_s14   ;;  %s638_s16 = sadd.s32 1, %s598_s14   ;;  %s598_s14 = sphi %s625_s14, %s744_s14   ;;  %s594_s13 = sphi %s623_s13, %s743_s13   ;;  %s590_s12 = sphi %s621_s12, %s742_s12  }
   0x3   : > { %s38_s17 = ssub.s32 %s598_s14, %s638_s16  ;;  %s41_s18 = sadd.s32 1, %s594_s13 }
   0x4   : > { %p39_p0 = scmp.eq.s32.totalorder %s38_s17, 0  ;;  %p48_p1 = scmp.ne.s32.totalorder %s594_s13, %s590_s12 }
   0x5   : > { %p49_p2 = scmp.eq.s32.totalorder %s598_s14, 0  ;;  %p99_p3 = scmp.eq.s32.totalorder %s514_s15, 1 }
   0x6   : > { %s649_s19 = scalar_select %p39_p0, %s594_s13, %s41_s18  }
   0x7   : > { %p50_p4 = por %p49_p2, %p48_p1  ;;  %p651_p5 = por %p99_p3, %p48_p1 }
   0x8   : > { %p517_p6 = scmp.ge.s32.totalorder %s598_s14, 2 }
   0xa   : > { %127 = sbr.rel (%p517_p6) target bundleno = 24 (0x18), region = 24 }
  0x11   : > { %130 = sbr.rel (!%p50_p4) target bundleno = 24 (0x18), region = 28  ;;  %s132_s21 = sand.u32 (%p50_p4), 1, %s594_s13  }
  0x12   : > { %s539_s22 = sshll.u32 (%p50_p4), %s598_s14, 4  ;;  %s518_s23 = sshll.u32 (%p50_p4), %s132_s21, 5 }
  0x13   : > { %s137_s26 = scalar_lea.vmem (%p50_p4), %s738_s1, %s539_s22  ;;  %s134_s27 = scalar_lea.vmem (%p50_p4), [#allocation2], %s518_s23 }
  0x14   : > { %v150_v0 = vld [vmem:[%s137_s26] sm:$0xff] (%p50_p4)  ;;  %v152_v1 = vld [vmem:[%s137_s26 + $0x8] sm:$0xff] (%p50_p4) }
  0x15   : > { %v154_v2 = vld [vmem:[%s137_s26 + $0x20] sm:$0xff] (%p50_p4)  ;;  %151 = vst [vmem:[%s134_s27] sm:$0xff] (%p50_p4), %v150_v0  ;;  %153 = vst [vmem:[%s134_s27 + $0x8] sm:$0xff] (%p50_p4), %v152_v1  ;;  %v156_v3 = vld [vmem:[%s137_s26 + $0x28] sm:$0xff] (%p50_p4) }
  0x16   : > { %155 = vst [vmem:[%s134_s27 + $0x10] sm:$0xff] (%p50_p4), %v154_v2  ;;  %157 = vst [vmem:[%s134_s27 + $0x18] sm:$0xff] (%p50_p4), %v156_v3 }
  0x18 PF: > { %p521_p7 = scmp.ge.s32.totalorder %s598_s14, 1  ;;  %p162_p8 = scmp.lt.s32.totalorder %s598_s14, 3 }
  0x1a   : > { %p163_p9 = pnand %p521_p7, %p162_p8 }
  0x1b   : > { %s169_s28 = sand.u32 (!%p163_p9), 1, %s590_s12   ;;  %v600_v4 = vmov (!%p163_p9), 0   ;;  %v202_v5 = vld [vmem:[%s739_s2] sm:$0xff] (!%p163_p9)  ;;  %v203_v10 = vld [vmem:[%s739_s2 + $0x8] sm:$0xff] (!%p163_p9)  ;;  %v204_v12 = vld [vmem:[%s739_s2 + $0x10] sm:$0xff] (!%p163_p9)  ;;  %vm256_vm0 = vcmask (!%p163_p9), 130048  }
  0x1c   : > { %166 = sbr.rel (%p163_p9) target bundleno = 271 (0x10f), region = 51  ;;  %s522_s29 = sshll.u32 (!%p163_p9), %s169_s28, 5  ;;  %295 = vmatprep.mubr.bf16.mxu0 (!%p163_p9), %v600_v4  ;;  %348 = vmatprep.mubr.bf16.mxu1 (!%p163_p9), %v600_v4  ;;  %v574_v11 = vld [vmem:[%s737_s0] sm:$0xff] (!%p163_p9)   ;;  %v205_v13 = vld [vmem:[%s739_s2 + $0x18] sm:$0xff] (!%p163_p9)  ;;  %v575_v14 = vld [vmem:[%s737_s0 + $0x8] sm:$0xff] (!%p163_p9)  }
  0x1d   : > { %566 = vset.pattern.permute.xlu0 (!%p163_p9), %v600_v4  ;;  %567 = vset.pattern.permute.xlu1 (!%p163_p9), %v600_v4  ;;  %s171_s5 = scalar_lea.vmem (!%p163_p9), [#allocation2], %s522_s29  ;;  %s523_s23 = sshll.u32 (!%p163_p9), %s169_s28, 7 }
  0x1e   : > { %v568_v6 = vld [vmem:[%s171_s5 + $0x4] ss:$16 sps:$4 sm:$0xff] (!%p163_p9)   ;;  %208 = vperm.xlu0 (!%p163_p9), %566, %v202_v5   ;;  %v570_v7 = vld [vmem:[%s171_s5 + $0xc] ss:$16 sps:$4 sm:$0xff] (!%p163_p9)   ;;  %v572_v8 = vld [vmem:[%s171_s5] ss:$16 sps:$4 sm:$0xff] (!%p163_p9)   ;;  %218 = vperm.xlu1 (!%p163_p9), %567, %v204_v12  }
  0x1f   : > { %263 = vmatprep.subr.bf16.mxu0 (!%p163_p9), %v568_v6  ;;  %v573_v9 = vld [vmem:[%s171_s5 + $0x8] ss:$16 sps:$4 sm:$0xff] (!%p163_p9)   ;;  %316 = vmatprep.subr.bf16.mxu1 (!%p163_p9), %v570_v7  ;;  %s686_s12 = scalar_lea.vmem (!%p163_p9), [#allocation3], %s523_s23 }
  0x20   : > { %264 = vmatpush1.bf16.msra.mxu0 (!%p163_p9), %v572_v8  ;;  %317 = vmatpush1.bf16.msra.mxu1 (!%p163_p9), %v573_v9 }
  0x22   : > { %213 = vperm.xlu0 (!%p163_p9), %566, %v203_v10   ;;  %223 = vperm.xlu1 (!%p163_p9), %567, %v205_v13  }
  0x23   : > { %530 = vmatmul.mubr.msk.bf16.vlgmr.msra.gmra.mrb[0].mxu0 %vm256_vm0, %v574_v11  ;;  %532 = vmatmul.mubr.msk.bf16.vlgmr.msra.gmra.mrb[0].mxu1 %vm256_vm0, %v574_v11  ;;  %s540_s24 = sshll.u32 (%p651_p5), %s514_s15, 5 }
  0x24   : > { %305 = vmatprep.mubr.bf16.mxu0 %v600_v4  ;;  %358 = vmatprep.mubr.bf16.mxu1 %v600_v4  ;;  %s410_s20 = scalar_lea.vmem (%p651_p5), %s740_s3, %s540_s24 }
  0x2b   : > { %531 = vmatmul.mubr.msk.bf16.gmra.mrb[4].mxu0 %vm256_vm0, %v575_v14  ;;  %533 = vmatmul.mubr.msk.bf16.gmra.mrb[4].mxu1 %vm256_vm0, %v575_v14 }
  0x9d   : > { %v209_v15 = vpop.permute.xlu0 %208  ;;  %v219_v17 = vpop.permute.xlu1 %218 }
  0xa1   : > { %v214_v16 = vpop.permute.xlu0 %213  ;;  %v224_v42 = vpop.permute.xlu1 %223 }
  0xf6   : > { %v297_v18 = vpop.f32.mrb[0].mxu0  ;;  %v350_v19 = vpop.f32.mrb[0].mxu1 }
  0xf7   : > { %v298_v20 = vadd.f32 %v297_v18, %v209_v15  ;;  %v351_v21 = vadd.f32 %v350_v19, %v209_v15  ;;  %v299_v22 = vpop.f32.mrb[1].mxu0  ;;  %v352_v23 = vpop.f32.mrb[1].mxu1 }
  0xf8   : > { %v300_v24 = vadd.f32 %v299_v22, %v209_v15  ;;  %v353_v25 = vadd.f32 %v352_v23, %v209_v15  ;;  %v301_v26 = vpop.f32.mrb[2].mxu0  ;;  %v354_v27 = vpop.f32.mrb[2].mxu1 }
  0xf9   : > { %v369_v28 = vmax.f32 %v298_v20, 0.0  ;;  %v371_v29 = vmax.f32 %v351_v21, 0.0  ;;  %v302_v30 = vadd.f32 %v301_v26, %v214_v16  ;;  %v355_v31 = vadd.f32 %v354_v27, %v214_v16  ;;  %v303_v32 = vpop.f32.mrb[3].mxu0  ;;  %v356_v33 = vpop.f32.mrb[3].mxu1 }
  0xfa   : > { %v370_v34 = vmax.f32 %v300_v24, 0.0  ;;  %v372_v35 = vmax.f32 %v353_v25, 0.0  ;;  %v304_v36 = vadd.f32 %v303_v32, %v214_v16  ;;  %v357_v37 = vadd.f32 %v356_v33, %v214_v16 }
  0xfb   : > { %385 = vst [vmem:[%s686_s12] sm:$0xff] %v369_v28  ;;  %387 = vst [vmem:[%s686_s12 + $0x10] sm:$0xff] %v371_v29  ;;  %v373_v38 = vmax.f32 %v302_v30, 0.0  ;;  %v375_v39 = vmax.f32 %v355_v31, 0.0 }
  0xfc   : > { %386 = vst [vmem:[%s686_s12 + $0x8] sm:$0xff] %v370_v34  ;;  %388 = vst [vmem:[%s686_s12 + $0x18] sm:$0xff] %v372_v35  ;;  %v374_v40 = vmax.f32 %v304_v36, 0.0  ;;  %v376_v41 = vmax.f32 %v357_v37, 0.0 }
  0xfd   : > { %389 = vst [vmem:[%s686_s12 + $0x20] sm:$0xff] %v373_v38  ;;  %391 = vst [vmem:[%s686_s12 + $0x30] sm:$0xff] %v375_v39 }
  0xfe   : > { %390 = vst [vmem:[%s686_s12 + $0x28] sm:$0xff] %v374_v40  ;;  %392 = vst [vmem:[%s686_s12 + $0x38] sm:$0xff] %v376_v41  ;;  %v307_v43 = vpop.f32.mrb[4].mxu0  ;;  %v360_v44 = vpop.f32.mrb[4].mxu1 }
  0xff   : > { %v308_v45 = vadd.f32 %v307_v43, %v219_v17  ;;  %v361_v46 = vadd.f32 %v360_v44, %v219_v17  ;;  %v309_v47 = vpop.f32.mrb[5].mxu0  ;;  %v362_v48 = vpop.f32.mrb[5].mxu1 }
 0x100   : > { %v310_v49 = vadd.f32 %v309_v47, %v219_v17  ;;  %v363_v50 = vadd.f32 %v362_v48, %v219_v17  ;;  %v311_v51 = vpop.f32.mrb[6].mxu0  ;;  %v364_v52 = vpop.f32.mrb[6].mxu1  ;;  %407 = sbr.rel (!%p651_p5) target bundleno = 271 (0x10f), region = 59 }
 0x101   : > { %v377_v53 = vmax.f32 %v308_v45, 0.0  ;;  %v379_v54 = vmax.f32 %v361_v46, 0.0  ;;  %v312_v55 = vadd.f32 %v311_v51, %v224_v42  ;;  %v365_v56 = vadd.f32 %v364_v52, %v224_v42  ;;  %v313_v57 = vpop.f32.mrb[7].mxu0  ;;  %v366_v58 = vpop.f32.mrb[7].mxu1 }
 0x102   : > { %v378_v59 = vmax.f32 %v310_v49, 0.0  ;;  %v380_v60 = vmax.f32 %v363_v50, 0.0  ;;  %v314_v61 = vadd.f32 %v313_v57, %v224_v42  ;;  %v367_v62 = vadd.f32 %v366_v58, %v224_v42  ;;  %v423_v3 = vld [vmem:[%s686_s12] sm:$0xff] (%p651_p5)  ;;  %v427_v5 = vld [vmem:[%s686_s12 + $0x10] sm:$0xff] (%p651_p5) }
 0x103   : > { %393 = vst [vmem:[%s686_s12 + $0x40] sm:$0xff] %v377_v53  ;;  %395 = vst [vmem:[%s686_s12 + $0x50] sm:$0xff] %v379_v54  ;;  %v381_v63 = vmax.f32 %v312_v55, 0.0  ;;  %v383_v0 = vmax.f32 %v365_v56, 0.0  ;;  %v425_v4 = vld [vmem:[%s686_s12 + $0x8] sm:$0xff] (%p651_p5)  ;;  %v429_v6 = vld [vmem:[%s686_s12 + $0x18] sm:$0xff] (%p651_p5) }
 0x104   : > { %394 = vst [vmem:[%s686_s12 + $0x48] sm:$0xff] %v378_v59  ;;  %396 = vst [vmem:[%s686_s12 + $0x58] sm:$0xff] %v380_v60  ;;  %v382_v1 = vmax.f32 %v314_v61, 0.0  ;;  %v384_v2 = vmax.f32 %v367_v62, 0.0  ;;  %v431_v7 = vld [vmem:[%s686_s12 + $0x20] sm:$0xff] (%p651_p5)  ;;  %v435_v9 = vld [vmem:[%s686_s12 + $0x30] sm:$0xff] (%p651_p5) }
 0x105   : > { %397 = vst [vmem:[%s686_s12 + $0x60] sm:$0xff] %v381_v63  ;;  %399 = vst [vmem:[%s686_s12 + $0x70] sm:$0xff] %v383_v0  ;;  %v433_v8 = vld [vmem:[%s686_s12 + $0x28] sm:$0xff] (%p651_p5)  ;;  %v437_v10 = vld [vmem:[%s686_s12 + $0x38] sm:$0xff] (%p651_p5) }
 0x106   : > { %398 = vst [vmem:[%s686_s12 + $0x68] sm:$0xff] %v382_v1  ;;  %400 = vst [vmem:[%s686_s12 + $0x78] sm:$0xff] %v384_v2 }
 0x107   : > { %424 = vst [vmem:[%s410_s20] sm:$0xff] %v423_v3  ;;  %426 = vst [vmem:[%s410_s20 + $0x8] sm:$0xff] %v425_v4 }
 0x108   : > { %428 = vst [vmem:[%s410_s20 + $0x10] sm:$0xff] %v427_v5  ;;  %430 = vst [vmem:[%s410_s20 + $0x18] sm:$0xff] %v429_v6 }
 0x109   : > { %432 = vst [vmem:[%s410_s20 + $0x40] sm:$0xff] %v431_v7  ;;  %434 = vst [vmem:[%s410_s20 + $0x48] sm:$0xff] %v433_v8 }
 0x10a   : > { %v439_v11 = vld [vmem:[%s686_s12 + $0x40] sm:$0xff]  ;;  %436 = vst [vmem:[%s410_s20 + $0x50] sm:$0xff] %v435_v9  ;;  %438 = vst [vmem:[%s410_s20 + $0x58] sm:$0xff] %v437_v10  ;;  %v443_v13 = vld [vmem:[%s686_s12 + $0x50] sm:$0xff] }
 0x10b   : > { %440 = vst [vmem:[%s410_s20 + $0x80] sm:$0xff] %v439_v11  ;;  %v441_v12 = vld [vmem:[%s686_s12 + $0x48] sm:$0xff]  ;;  %v445_v14 = vld [vmem:[%s686_s12 + $0x58] sm:$0xff]  ;;  %444 = vst [vmem:[%s410_s20 + $0x90] sm:$0xff] %v443_v13 }
 0x10c   : > { %442 = vst [vmem:[%s410_s20 + $0x88] sm:$0xff] %v441_v12  ;;  %446 = vst [vmem:[%s410_s20 + $0x98] sm:$0xff] %v445_v14  ;;  %v447_v15 = vld [vmem:[%s686_s12 + $0x60] sm:$0xff]  ;;  %v451_v17 = vld [vmem:[%s686_s12 + $0x70] sm:$0xff] }
 0x10d   : > { %v449_v16 = vld [vmem:[%s686_s12 + $0x68] sm:$0xff]  ;;  %448 = vst [vmem:[%s410_s20 + $0xc0] sm:$0xff] %v447_v15  ;;  %452 = vst [vmem:[%s410_s20 + $0xd0] sm:$0xff] %v451_v17  ;;  %v453_v18 = vld [vmem:[%s686_s12 + $0x78] sm:$0xff] }
 0x10e   : > { %450 = vst [vmem:[%s410_s20 + $0xc8] sm:$0xff] %v449_v16  ;;  %454 = vst [vmem:[%s410_s20 + $0xd8] sm:$0xff] %v453_v18 }
 0x10f PF: > { %p10_p10 = scmp.ge.s32.totalorder %s638_s16, 4   ;;  %s742_s12 = smov %s594_s13 }
 0x110   : > { %s743_s13 = smov %s649_s19  ;;  %s744_s14 = smov %s638_s16 }
 0x111   :  { %12 = sbr.rel (!%p10_p10) target bundleno = 2 (0x2), region = 113 }

// kernel: double_vae_forward.6
= control target key start
LH: loop header
LB: loop body
LE: loop exit
PB: predicated region body
PF: predicated region fallthrough
CT: control target
= control target key end

     0   :  { %s1227_s12 = smov 0   ;;  %s1229_s13 = smov 0   ;;  %s1493_s0 = inlined_call_operand.vmem [shape: bf16[32,512], index: 0, kind: input, shape index: {}]   ;;  %s1494_s1 = inlined_call_operand.vmem [shape: bf16[512,256], index: 1, kind: input, shape index: {}]   ;;  %s1495_s2 = inlined_call_operand.vmem [shape: f32[32,1], index: 2, kind: input, shape index: {}]   ;;  %s1496_s3 = inlined_call_operand.vmem [shape: f32[32,256], index: 3, kind: output, shape index: {}]  }
   0x1   :  { %s1231_s14 = smov 0  }
   0x2 LB: > { %s1002_s15 = sadd.s32 4294967295, %s1204_s14   ;;  %s1244_s16 = sadd.s32 1, %s1204_s14   ;;  %s1204_s14 = sphi %s1231_s14, %s1500_s14   ;;  %s1200_s13 = sphi %s1229_s13, %s1499_s13   ;;  %s1196_s12 = sphi %s1227_s12, %s1498_s12  }
   0x3   : > { %s38_s17 = ssub.s32 %s1204_s14, %s1244_s16  ;;  %s41_s18 = sadd.s32 1, %s1200_s13 }
   0x4   : > { %p39_p0 = scmp.eq.s32.totalorder %s38_s17, 0  ;;  %p48_p1 = scmp.ne.s32.totalorder %s1200_s13, %s1196_s12 }
   0x5   : > { %p49_p2 = scmp.eq.s32.totalorder %s1204_s14, 0  ;;  %p99_p3 = scmp.eq.s32.totalorder %s1002_s15, 1 }
   0x6   : > { %s1255_s19 = scalar_select %p39_p0, %s1200_s13, %s41_s18  }
   0x7   : > { %p50_p4 = por %p49_p2, %p48_p1  ;;  %p1257_p5 = por %p99_p3, %p48_p1 }
   0x8   : > { %p1005_p6 = scmp.ge.s32.totalorder %s1204_s14, 2 }
   0xa   : > { %127 = sbr.rel (%p1005_p6) target bundleno = 63 (0x3f), region = 24 }
  0x11   : > { %130 = sbr.rel (!%p50_p4) target bundleno = 63 (0x3f), region = 28  ;;  %s132_s21 = sand.u32 (%p50_p4), 1, %s1200_s13  }
  0x12   : > { %s1007_s22 = sshll.u32 (%p50_p4), %s1204_s14, 2  ;;  %s1006_s23 = sshll.u32 (%p50_p4), %s132_s21, 8 }
  0x13   : > { %s1267_s26 = scalar_lea.vmem (%p50_p4), %s1494_s1, %s1007_s22  ;;  %s1271_s27 = scalar_lea.vmem (%p50_p4), [#allocation2], %s1006_s23 }
  0x14   : > { %v152_v0 = vld [vmem:[%s1267_s26] sm:$0xf] (%p50_p4)  ;;  %v154_v1 = vld [vmem:[%s1267_s26 + $0x8] sm:$0xf] (%p50_p4)  ;;  %v156_v2 = vld [vmem:[%s1267_s26 + $0x10] sm:$0xf] (%p50_p4) }
  0x15   : > { %153 = vst [vmem:[%s1271_s27] sm:$0xf] (%p50_p4), %v152_v0  ;;  %155 = vst [vmem:[%s1271_s27 + $0x4] sm:$0xf] (%p50_p4), %v154_v1  ;;  %v158_v3 = vld [vmem:[%s1267_s26 + $0x18] sm:$0xf] (%p50_p4) }
  0x16   : > { %v160_v4 = vld [vmem:[%s1267_s26 + $0x20] sm:$0xf] (%p50_p4)  ;;  %157 = vst [vmem:[%s1271_s27 + $0x8] sm:$0xf] (%p50_p4), %v156_v2  ;;  %159 = vst [vmem:[%s1271_s27 + $0xc] sm:$0xf] (%p50_p4), %v158_v3 }
  0x17   : > { %161 = vst [vmem:[%s1271_s27 + $0x10] sm:$0xf] (%p50_p4), %v160_v4  ;;  %v162_v5 = vld [vmem:[%s1267_s26 + $0x28] sm:$0xf] (%p50_p4)  ;;  %v164_v6 = vld [vmem:[%s1267_s26 + $0x30] sm:$0xf] (%p50_p4) }
  0x18   : > { %v166_v7 = vld [vmem:[%s1267_s26 + $0x38] sm:$0xf]  ;;  %163 = vst [vmem:[%s1271_s27 + $0x14] sm:$0xf] %v162_v5  ;;  %165 = vst [vmem:[%s1271_s27 + $0x18] sm:$0xf] %v164_v6 }
  0x19   : > { %167 = vst [vmem:[%s1271_s27 + $0x1c] sm:$0xf] %v166_v7  ;;  %v168_v8 = vld [vmem:[%s1267_s26 + $0x40] sm:$0xf]  ;;  %v170_v9 = vld [vmem:[%s1267_s26 + $0x48] sm:$0xf] }
  0x1a   : > { %v172_v10 = vld [vmem:[%s1267_s26 + $0x50] sm:$0xf]  ;;  %169 = vst [vmem:[%s1271_s27 + $0x20] sm:$0xf] %v168_v8  ;;  %171 = vst [vmem:[%s1271_s27 + $0x24] sm:$0xf] %v170_v9 }
  0x1b   : > { %173 = vst [vmem:[%s1271_s27 + $0x28] sm:$0xf] %v172_v10  ;;  %v174_v11 = vld [vmem:[%s1267_s26 + $0x58] sm:$0xf]  ;;  %v176_v12 = vld [vmem:[%s1267_s26 + $0x60] sm:$0xf] }
  0x1c   : > { %v178_v13 = vld [vmem:[%s1267_s26 + $0x68] sm:$0xf]  ;;  %175 = vst [vmem:[%s1271_s27 + $0x2c] sm:$0xf] %v174_v11  ;;  %177 = vst [vmem:[%s1271_s27 + $0x30] sm:$0xf] %v176_v12 }
  0x1d   : > { %179 = vst [vmem:[%s1271_s27 + $0x34] sm:$0xf] %v178_v13  ;;  %v180_v14 = vld [vmem:[%s1267_s26 + $0x70] sm:$0xf]  ;;  %v182_v15 = vld [vmem:[%s1267_s26 + $0x78] sm:$0xf] }
  0x1e   : > { %v184_v16 = vld [vmem:[%s1267_s26 + $0x80] sm:$0xf]  ;;  %181 = vst [vmem:[%s1271_s27 + $0x38] sm:$0xf] %v180_v14  ;;  %183 = vst [vmem:[%s1271_s27 + $0x3c] sm:$0xf] %v182_v15 }
  0x1f   : > { %185 = vst [vmem:[%s1271_s27 + $0x40] sm:$0xf] %v184_v16  ;;  %v186_v17 = vld [vmem:[%s1267_s26 + $0x88] sm:$0xf]  ;;  %v188_v18 = vld [vmem:[%s1267_s26 + $0x90] sm:$0xf] }
  0x20   : > { %v190_v19 = vld [vmem:[%s1267_s26 + $0x98] sm:$0xf]  ;;  %187 = vst [vmem:[%s1271_s27 + $0x44] sm:$0xf] %v186_v17  ;;  %189 = vst [vmem:[%s1271_s27 + $0x48] sm:$0xf] %v188_v18 }
  0x21   : > { %191 = vst [vmem:[%s1271_s27 + $0x4c] sm:$0xf] %v190_v19  ;;  %v192_v20 = vld [vmem:[%s1267_s26 + $0xa0] sm:$0xf]  ;;  %v194_v21 = vld [vmem:[%s1267_s26 + $0xa8] sm:$0xf] }
  0x22   : > { %v196_v22 = vld [vmem:[%s1267_s26 + $0xb0] sm:$0xf]  ;;  %193 = vst [vmem:[%s1271_s27 + $0x50] sm:$0xf] %v192_v20  ;;  %195 = vst [vmem:[%s1271_s27 + $0x54] sm:$0xf] %v194_v21 }
  0x23   : > { %197 = vst [vmem:[%s1271_s27 + $0x58] sm:$0xf] %v196_v22  ;;  %v198_v23 = vld [vmem:[%s1267_s26 + $0xb8] sm:$0xf]  ;;  %v200_v24 = vld [vmem:[%s1267_s26 + $0xc0] sm:$0xf] }
  0x24   : > { %v202_v25 = vld [vmem:[%s1267_s26 + $0xc8] sm:$0xf]  ;;  %199 = vst [vmem:[%s1271_s27 + $0x5c] sm:$0xf] %v198_v23  ;;  %201 = vst [vmem:[%s1271_s27 + $0x60] sm:$0xf] %v200_v24 }
  0x25   : > { %203 = vst [vmem:[%s1271_s27 + $0x64] sm:$0xf] %v202_v25  ;;  %v204_v26 = vld [vmem:[%s1267_s26 + $0xd0] sm:$0xf]  ;;  %v206_v27 = vld [vmem:[%s1267_s26 + $0xd8] sm:$0xf] }
  0x26   : > { %v208_v28 = vld [vmem:[%s1267_s26 + $0xe0] sm:$0xf]  ;;  %205 = vst [vmem:[%s1271_s27 + $0x68] sm:$0xf] %v204_v26  ;;  %207 = vst [vmem:[%s1271_s27 + $0x6c] sm:$0xf] %v206_v27 }
  0x27   : > { %209 = vst [vmem:[%s1271_s27 + $0x70] sm:$0xf] %v208_v28  ;;  %v210_v29 = vld [vmem:[%s1267_s26 + $0xe8] sm:$0xf]  ;;  %v212_v30 = vld [vmem:[%s1267_s26 + $0xf0] sm:$0xf] }
  0x28   : > { %v214_v31 = vld [vmem:[%s1267_s26 + $0xf8] sm:$0xf]  ;;  %211 = vst [vmem:[%s1271_s27 + $0x74] sm:$0xf] %v210_v29  ;;  %213 = vst [vmem:[%s1271_s27 + $0x78] sm:$0xf] %v212_v30 }
  0x29   : > { %215 = vst [vmem:[%s1271_s27 + $0x7c] sm:$0xf] %v214_v31  ;;  %v216_v32 = vld [vmem:[%s1267_s26 + $0x100] sm:$0xf]  ;;  %v218_v33 = vld [vmem:[%s1267_s26 + $0x108] sm:$0xf] }
  0x2a   : > { %v220_v34 = vld [vmem:[%s1267_s26 + $0x110] sm:$0xf]  ;;  %217 = vst [vmem:[%s1271_s27 + $0x80] sm:$0xf] %v216_v32  ;;  %219 = vst [vmem:[%s1271_s27 + $0x84] sm:$0xf] %v218_v33 }
  0x2b   : > { %221 = vst [vmem:[%s1271_s27 + $0x88] sm:$0xf] %v220_v34  ;;  %v222_v35 = vld [vmem:[%s1267_s26 + $0x118] sm:$0xf]  ;;  %v224_v36 = vld [vmem:[%s1267_s26 + $0x120] sm:$0xf] }
  0x2c   : > { %v226_v37 = vld [vmem:[%s1267_s26 + $0x128] sm:$0xf]  ;;  %223 = vst [vmem:[%s1271_s27 + $0x8c] sm:$0xf] %v222_v35  ;;  %225 = vst [vmem:[%s1271_s27 + $0x90] sm:$0xf] %v224_v36 }
  0x2d   : > { %227 = vst [vmem:[%s1271_s27 + $0x94] sm:$0xf] %v226_v37  ;;  %v228_v38 = vld [vmem:[%s1267_s26 + $0x130] sm:$0xf]  ;;  %v230_v39 = vld [vmem:[%s1267_s26 + $0x138] sm:$0xf] }
  0x2e   : > { %v232_v40 = vld [vmem:[%s1267_s26 + $0x140] sm:$0xf]  ;;  %229 = vst [vmem:[%s1271_s27 + $0x98] sm:$0xf] %v228_v38  ;;  %231 = vst [vmem:[%s1271_s27 + $0x9c] sm:$0xf] %v230_v39 }
  0x2f   : > { %233 = vst [vmem:[%s1271_s27 + $0xa0] sm:$0xf] %v232_v40  ;;  %v234_v41 = vld [vmem:[%s1267_s26 + $0x148] sm:$0xf]  ;;  %v236_v42 = vld [vmem:[%s1267_s26 + $0x150] sm:$0xf] }
  0x30   : > { %v238_v43 = vld [vmem:[%s1267_s26 + $0x158] sm:$0xf]  ;;  %235 = vst [vmem:[%s1271_s27 + $0xa4] sm:$0xf] %v234_v41  ;;  %237 = vst [vmem:[%s1271_s27 + $0xa8] sm:$0xf] %v236_v42 }
  0x31   : > { %239 = vst [vmem:[%s1271_s27 + $0xac] sm:$0xf] %v238_v43  ;;  %v240_v44 = vld [vmem:[%s1267_s26 + $0x160] sm:$0xf]  ;;  %v242_v45 = vld [vmem:[%s1267_s26 + $0x168] sm:$0xf] }
  0x32   : > { %v244_v46 = vld [vmem:[%s1267_s26 + $0x170] sm:$0xf]  ;;  %241 = vst [vmem:[%s1271_s27 + $0xb0] sm:$0xf] %v240_v44  ;;  %243 = vst [vmem:[%s1271_s27 + $0xb4] sm:$0xf] %v242_v45 }
  0x33   : > { %245 = vst [vmem:[%s1271_s27 + $0xb8] sm:$0xf] %v244_v46  ;;  %v246_v47 = vld [vmem:[%s1267_s26 + $0x178] sm:$0xf]  ;;  %v248_v48 = vld [vmem:[%s1267_s26 + $0x180] sm:$0xf] }
  0x34   : > { %v250_v49 = vld [vmem:[%s1267_s26 + $0x188] sm:$0xf]  ;;  %247 = vst [vmem:[%s1271_s27 + $0xbc] sm:$0xf] %v246_v47  ;;  %249 = vst [vmem:[%s1271_s27 + $0xc0] sm:$0xf] %v248_v48 }
  0x35   : > { %251 = vst [vmem:[%s1271_s27 + $0xc4] sm:$0xf] %v250_v49  ;;  %v252_v50 = vld [vmem:[%s1267_s26 + $0x190] sm:$0xf]  ;;  %v254_v51 = vld [vmem:[%s1267_s26 + $0x198] sm:$0xf] }
  0x36   : > { %v256_v52 = vld [vmem:[%s1267_s26 + $0x1a0] sm:$0xf]  ;;  %253 = vst [vmem:[%s1271_s27 + $0xc8] sm:$0xf] %v252_v50  ;;  %255 = vst [vmem:[%s1271_s27 + $0xcc] sm:$0xf] %v254_v51 }
  0x37   : > { %257 = vst [vmem:[%s1271_s27 + $0xd0] sm:$0xf] %v256_v52  ;;  %v258_v53 = vld [vmem:[%s1267_s26 + $0x1a8] sm:$0xf]  ;;  %v260_v54 = vld [vmem:[%s1267_s26 + $0x1b0] sm:$0xf] }
  0x38   : > { %v262_v55 = vld [vmem:[%s1267_s26 + $0x1b8] sm:$0xf]  ;;  %259 = vst [vmem:[%s1271_s27 + $0xd4] sm:$0xf] %v258_v53  ;;  %261 = vst [vmem:[%s1271_s27 + $0xd8] sm:$0xf] %v260_v54 }
  0x39   : > { %263 = vst [vmem:[%s1271_s27 + $0xdc] sm:$0xf] %v262_v55  ;;  %v264_v56 = vld [vmem:[%s1267_s26 + $0x1c0] sm:$0xf]  ;;  %v266_v57 = vld [vmem:[%s1267_s26 + $0x1c8] sm:$0xf] }
  0x3a   : > { %v268_v58 = vld [vmem:[%s1267_s26 + $0x1d0] sm:$0xf]  ;;  %265 = vst [vmem:[%s1271_s27 + $0xe0] sm:$0xf] %v264_v56  ;;  %267 = vst [vmem:[%s1271_s27 + $0xe4] sm:$0xf] %v266_v57 }
  0x3b   : > { %269 = vst [vmem:[%s1271_s27 + $0xe8] sm:$0xf] %v268_v58  ;;  %v270_v59 = vld [vmem:[%s1267_s26 + $0x1d8] sm:$0xf]  ;;  %v272_v60 = vld [vmem:[%s1267_s26 + $0x1e0] sm:$0xf] }
  0x3c   : > { %v274_v61 = vld [vmem:[%s1267_s26 + $0x1e8] sm:$0xf]  ;;  %271 = vst [vmem:[%s1271_s27 + $0xec] sm:$0xf] %v270_v59  ;;  %273 = vst [vmem:[%s1271_s27 + $0xf0] sm:$0xf] %v272_v60 }
  0x3d   : > { %275 = vst [vmem:[%s1271_s27 + $0xf4] sm:$0xf] %v274_v61  ;;  %v276_v62 = vld [vmem:[%s1267_s26 + $0x1f0] sm:$0xf]  ;;  %v278_v63 = vld [vmem:[%s1267_s26 + $0x1f8] sm:$0xf] }
  0x3e   : > { %277 = vst [vmem:[%s1271_s27 + $0xf8] sm:$0xf] %v276_v62  ;;  %279 = vst [vmem:[%s1271_s27 + $0xfc] sm:$0xf] %v278_v63 }
  0x3f PF: > { %p1008_p7 = scmp.ge.s32.totalorder %s1204_s14, 1  ;;  %p429_p8 = scmp.lt.s32.totalorder %s1204_s14, 3 }
  0x41   : > { %p430_p9 = pnand %p1008_p7, %p429_p8 }
  0x42   : > { %s436_s28 = sand.u32 (!%p430_p9), 1, %s1196_s12   ;;  %v1172_v0 = vld [vmem:[%s1493_s0 + $0x4] ss:$16 sps:$4 sm:$0xff] (!%p430_p9)   ;;  %v1206_v1 = vmov (!%p430_p9), 0   ;;  %v1175_v2 = vld [vmem:[%s1493_s0 + $0xc] ss:$16 sps:$4 sm:$0xff] (!%p430_p9)  }
  0x43   : > { %433 = sbr.rel (%p430_p9) target bundleno = 343 (0x157), region = 69  ;;  %s1009_s29 = sshll.u32 (!%p430_p9), %s436_s28, 8  ;;  %1136 = vset.pattern.permute.xlu0 (!%p430_p9), %v1206_v1  ;;  %1137 = vset.pattern.permute.xlu1 (!%p430_p9), %v1206_v1  ;;  %v1170_v33 = vld [vmem:[%s1493_s0] ss:$16 sps:$4 sm:$0xff] (!%p430_p9)   ;;  %v1173_v35 = vld [vmem:[%s1493_s0 + $0x8] ss:$16 sps:$4 sm:$0xff] (!%p430_p9)  }
  0x44   : > { %s1410_s7 = scalar_lea.vmem (!%p430_p9), [#allocation2], %s1009_s29  ;;  %819 = vmatprep.mubr.bf16.mxu0 (!%p430_p9), %v1172_v0  ;;  %868 = vmatprep.mubr.bf16.mxu1 (!%p430_p9), %v1175_v2  ;;  %v1176_v37 = vld [vmem:[%s1493_s0 + $0x24] ss:$16 sps:$4 sm:$0xff] (!%p430_p9)   ;;  %v1178_v38 = vld [vmem:[%s1493_s0 + $0x2c] ss:$16 sps:$4 sm:$0xff] (!%p430_p9)   ;;  %s1010_s9 = sshll.u32 (!%p430_p9), %s436_s28, 5 }
  0x45   : > { %v1138_v3 = vld [vmem:[%s1410_s7 + $0x40] sm:$0xff] (!%p430_p9)   ;;  %v1142_v7 = vld [vmem:[%s1410_s7 + $0x48] sm:$0xff] (!%p430_p9)   ;;  %v1146_v11 = vld [vmem:[%s1410_s7 + $0x50] sm:$0xff] (!%p430_p9)   ;;  %s457_s10 = scalar_lea.vmem (!%p430_p9), [#allocation3], %s1010_s9 }
  0x46   : > { %v1139_v4 = vld [vmem:[%s1410_s7 + $0xc0] sm:$0xff] (!%p430_p9)   ;;  %1055 = vmatprep.subr.bf16.mxu0 (!%p430_p9), %v1138_v3  ;;  %v1143_v8 = vld [vmem:[%s1410_s7 + $0xc8] sm:$0xff] (!%p430_p9)   ;;  %v1147_v12 = vld [vmem:[%s1410_s7 + $0xd0] sm:$0xff] (!%p430_p9)  }
  0x47   : > { %v1140_v5 = vld [vmem:[%s1410_s7] sm:$0xff] (!%p430_p9)   ;;  %1083 = vmatprep.subr.bf16.mxu1 (!%p430_p9), %v1139_v4  ;;  %v1144_v9 = vld [vmem:[%s1410_s7 + $0x8] sm:$0xff] (!%p430_p9)   ;;  %v1148_v13 = vld [vmem:[%s1410_s7 + $0x10] sm:$0xff] (!%p430_p9)  }
  0x48   : > { %v1141_v6 = vld [vmem:[%s1410_s7 + $0x80] sm:$0xff] (!%p430_p9)   ;;  %1056 = vmatpush3.bf16.msra.mxu0 (!%p430_p9), %v1140_v5  ;;  %v1145_v10 = vld [vmem:[%s1410_s7 + $0x88] sm:$0xff] (!%p430_p9)   ;;  %v1149_v14 = vld [vmem:[%s1410_s7 + $0x90] sm:$0xff] (!%p430_p9)  }
  0x49   : > { %1084 = vmatpush3.bf16.msra.mxu1 (!%p430_p9), %v1141_v6  ;;  %1057 = vmatprep.subr.bf16.mxu0 (!%p430_p9), %v1142_v7  ;;  %v1150_v15 = vld [vmem:[%s1410_s7 + $0x58] sm:$0xff] (!%p430_p9)   ;;  %v1154_v19 = vld [vmem:[%s1410_s7 + $0x60] sm:$0xff] (!%p430_p9)   ;;  %v1158_v23 = vld [vmem:[%s1410_s7 + $0x68] sm:$0xff] (!%p430_p9)  }
  0x4a   : > { %1085 = vmatprep.subr.bf16.mxu1 %v1143_v8  ;;  %v1151_v16 = vld [vmem:[%s1410_s7 + $0xd8] sm:$0xff]   ;;  %v1155_v20 = vld [vmem:[%s1410_s7 + $0xe0] sm:$0xff]   ;;  %v1159_v24 = vld [vmem:[%s1410_s7 + $0xe8] sm:$0xff]   ;;  %s1052_s12 = sshll.u32 (%p1257_p5), %s1002_s15, 3 }
  0x4b   : > { %v1152_v17 = vld [vmem:[%s1410_s7 + $0x18] sm:$0xff]   ;;  %v1156_v21 = vld [vmem:[%s1410_s7 + $0x20] sm:$0xff]   ;;  %v1160_v25 = vld [vmem:[%s1410_s7 + $0x28] sm:$0xff]   ;;  %s901_s17 = scalar_lea.vmem (%p1257_p5), %s1496_s3, %s1052_s12 }
  0x4c   : > { %1058 = vmatpush3.bf16.msra.mxu0 %v1144_v9  ;;  %v1153_v18 = vld [vmem:[%s1410_s7 + $0x98] sm:$0xff]   ;;  %v1157_v22 = vld [vmem:[%s1410_s7 + $0xa0] sm:$0xff]   ;;  %v1161_v26 = vld [vmem:[%s1410_s7 + $0xa8] sm:$0xff]  }
  0x4d   : > { %1086 = vmatpush3.bf16.msra.mxu1 %v1145_v10  ;;  %1059 = vmatprep.subr.bf16.mxu0 %v1146_v11  ;;  %v1162_v27 = vld [vmem:[%s1410_s7 + $0x70] sm:$0xff]   ;;  %v1166_v31 = vld [vmem:[%s1410_s7 + $0x78] sm:$0xff]   ;;  %v531_v39 = vld [vmem:[%s1495_s2] sm:$0xff] }
  0x4e   : > { %1087 = vmatprep.subr.bf16.mxu1 %v1147_v12  ;;  %v1163_v28 = vld [vmem:[%s1410_s7 + $0xf0] sm:$0xff]   ;;  %v1167_v32 = vld [vmem:[%s1410_s7 + $0xf8] sm:$0xff]   ;;  %537 = vperm.xlu0 %1136, %v531_v39   ;;  %v532_v41 = vld [vmem:[%s1495_s2 + $0x8] sm:$0xff] }
  0x4f   : > { %v1164_v29 = vld [vmem:[%s1410_s7 + $0x30] sm:$0xff]   ;;  %v1168_v34 = vld [vmem:[%s1410_s7 + $0x38] sm:$0xff]  }
  0x50   : > { %1060 = vmatpush3.bf16.msra.mxu0 %v1148_v13  ;;  %v1165_v30 = vld [vmem:[%s1410_s7 + $0xb0] sm:$0xff]   ;;  %v1169_v36 = vld [vmem:[%s1410_s7 + $0xb8] sm:$0xff]  }
  0x51   : > { %1088 = vmatpush3.bf16.msra.mxu1 %v1149_v14  ;;  %1061 = vmatprep.subr.bf16.mxu0 %v1150_v15  ;;  %v533_v40 = vld [vmem:[%s1495_s2 + $0x10] sm:$0xff]  ;;  %v534_v42 = vld [vmem:[%s1495_s2 + $0x18] sm:$0xff] }
  0x52   : > { %1089 = vmatprep.subr.bf16.mxu1 %v1151_v16  ;;  %547 = vperm.xlu1 %1137, %v533_v40   ;;  %v1180_v43 = vld [vmem:[%s1493_s0 + $0x20] ss:$16 sps:$4 sm:$0xff]   ;;  %v1181_v44 = vld [vmem:[%s1493_s0 + $0x28] ss:$16 sps:$4 sm:$0xff]  }
  0x53   : > { %542 = vperm.xlu0 %1136, %v532_v41  }
  0x54   : > { %1062 = vmatpush3.bf16.msra.mxu0 %v1152_v17 }
  0x55   : > { %1090 = vmatpush3.bf16.msra.mxu1 %v1153_v18  ;;  %1063 = vmatprep.subr.bf16.mxu0 %v1154_v19 }
  0x56   : > { %1091 = vmatprep.subr.bf16.mxu1 %v1155_v20  ;;  %552 = vperm.xlu1 %1137, %v534_v42  }
  0x58   : > { %1064 = vmatpush3.bf16.msra.mxu0 %v1156_v21 }
  0x59   : > { %1092 = vmatpush3.bf16.msra.mxu1 %v1157_v22  ;;  %1065 = vmatprep.subr.bf16.mxu0 %v1158_v23 }
  0x5a   : > { %1093 = vmatprep.subr.bf16.mxu1 %v1159_v24 }
  0x5c   : > { %1066 = vmatpush3.bf16.msra.mxu0 %v1160_v25 }
  0x5d   : > { %1094 = vmatpush3.bf16.msra.mxu1 %v1161_v26  ;;  %1067 = vmatprep.subr.bf16.mxu0 %v1162_v27 }
  0x5e   : > { %1095 = vmatprep.subr.bf16.mxu1 %v1163_v28 }
  0x60   : > { %1068 = vmatpush3.bf16.msra.mxu0 %v1164_v29 }
  0x61   : > { %1096 = vmatpush3.bf16.msra.mxu1 %v1165_v30  ;;  %1069 = vmatprep.subr.bf16.mxu0 %v1166_v31 }
  0x62   : > { %1097 = vmatprep.subr.bf16.mxu1 %v1167_v32 }
  0x64   : > { %1070 = vmatpush3.bf16.msra.mxu0 %v1168_v34 }
  0x65   : > { %1098 = vmatpush3.bf16.msra.mxu1 %v1169_v36 }
  0x67   : > { %820 = vmatmul.mubr.bf16.vlgmr.msra.gmra.mrb[0].mxu0 %v1170_v33 }
  0x68   : > { %869 = vmatmul.mubr.bf16.vlgmr.msra.gmra.mrb[0].mxu1 %v1173_v35  ;;  %827 = vmatprep.mubr.bf16.mxu0 %v1176_v37 }
  0x69   : > { %876 = vmatprep.mubr.bf16.mxu1 %v1178_v38 }
  0x6f   : > { %828 = vmatmul.mubr.bf16.gmra.mrb[4].mxu0 %v1180_v43 }
  0x70   : > { %877 = vmatmul.mubr.bf16.gmra.mrb[4].mxu1 %v1181_v44 }
  0xcd   : > { %v538_v45 = vpop.permute.xlu0 %537 }
  0xd1   : > { %v548_v62 = vpop.permute.xlu1 %547 }
  0xd2   : > { %v543_v47 = vpop.permute.xlu0 %542 }
  0xd5   : > { %v553_v14 = vpop.permute.xlu1 %552 }
 0x13a   : > { %v1071_v46 = vpop.f32.mrb[0].mxu0 }
 0x13b   : > { %v1099_v48 = vpop.f32.mrb[0].mxu1  ;;  %v1072_v49 = vpop.f32.mrb[1].mxu0 }
 0x13c   : > { %v1073_v50 = vadd.f32 %v1072_v49, %v1071_v46  ;;  %v1100_v51 = vpop.f32.mrb[1].mxu1  ;;  %v1074_v52 = vpop.f32.mrb[2].mxu0 }
 0x13d   : > { %v1101_v53 = vadd.f32 %v1100_v51, %v1099_v48  ;;  %v1102_v54 = vpop.f32.mrb[2].mxu1  ;;  %v1075_v55 = vpop.f32.mrb[3].mxu0 }
 0x13e   : > { %v822_v56 = vadd.f32 %v1073_v50, %v538_v45  ;;  %v1076_v57 = vadd.f32 %v1075_v55, %v1074_v52  ;;  %v1103_v58 = vpop.f32.mrb[3].mxu1 }
 0x13f   : > { %v1104_v59 = vadd.f32 %v1103_v58, %v1102_v54 }
 0x140   : > { %v871_v60 = vadd.f32 %v1101_v53, %v822_v56  ;;  %v825_v61 = vadd.f32 %v1076_v57, %v543_v47 }
 0x142   : > { %v885_v63 = vmax.f32 %v871_v60, 0.0  ;;  %v874_v0 = vadd.f32 %v1104_v59, %v825_v61  ;;  %v1077_v1 = vpop.f32.mrb[4].mxu0 }
 0x143   : > { %v1105_v2 = vpop.f32.mrb[4].mxu1  ;;  %v1078_v3 = vpop.f32.mrb[5].mxu0 }
 0x144   : > { %889 = vst [vmem:[%s457_s10] sm:$0xff] %v885_v63  ;;  %v886_v4 = vmax.f32 %v874_v0, 0.0  ;;  %v1079_v5 = vadd.f32 %v1078_v3, %v1077_v1  ;;  %v1106_v6 = vpop.f32.mrb[5].mxu1  ;;  %v1080_v7 = vpop.f32.mrb[6].mxu0 }
 0x145   : > { %v1107_v8 = vadd.f32 %v1106_v6, %v1105_v2  ;;  %v1108_v9 = vpop.f32.mrb[6].mxu1  ;;  %v1081_v10 = vpop.f32.mrb[7].mxu0 }
 0x146   : > { %890 = vst [vmem:[%s457_s10 + $0x8] sm:$0xff] %v886_v4  ;;  %v830_v11 = vadd.f32 %v1079_v5, %v548_v62  ;;  %v1082_v12 = vadd.f32 %v1081_v10, %v1080_v7  ;;  %v1109_v13 = vpop.f32.mrb[7].mxu1 }
 0x147   : > { %v1110_v15 = vadd.f32 %v1109_v13, %v1108_v9 }
 0x148   : > { %v879_v16 = vadd.f32 %v1107_v8, %v830_v11  ;;  %v833_v17 = vadd.f32 %v1082_v12, %v553_v14  ;;  %899 = sbr.rel (!%p1257_p5) target bundleno = 343 (0x157), region = 77 }
 0x14a   : > { %v887_v18 = vmax.f32 %v879_v16, 0.0  ;;  %v882_v19 = vadd.f32 %v1110_v15, %v833_v17 }
 0x14b   : > { %v935_v21 = vld [vmem:[%s457_s10] sm:$0xff] (%p1257_p5) }
 0x14c   : > { %891 = vst [vmem:[%s457_s10 + $0x10] sm:$0xff] %v887_v18  ;;  %v888_v20 = vmax.f32 %v882_v19, 0.0  ;;  %936 = vst [vmem:[%s901_s17] sm:$0xff] (%p1257_p5), %v935_v21 }
 0x14d   : > { %v937_v22 = vld [vmem:[%s457_s10 + $0x8] sm:$0xff] (%p1257_p5) }
 0x14e   : > { %892 = vst [vmem:[%s457_s10 + $0x18] sm:$0xff] %v888_v20  ;;  %938 = vst [vmem:[%s901_s17 + $0x10] sm:$0xff] (%p1257_p5), %v937_v22 }
 0x153   : > { %v939_v23 = vld [vmem:[%s457_s10 + $0x10] sm:$0xff] }
 0x154   : > { %940 = vst [vmem:[%s901_s17 + $0x20] sm:$0xff] %v939_v23 }
 0x155   : > { %v941_v24 = vld [vmem:[%s457_s10 + $0x18] sm:$0xff] }
 0x156   : > { %942 = vst [vmem:[%s901_s17 + $0x30] sm:$0xff] %v941_v24 }
 0x157 PF: > { %p10_p10 = scmp.ge.s32.totalorder %s1244_s16, 4   ;;  %s1498_s12 = smov %s1200_s13 }
 0x158   : > { %s1499_s13 = smov %s1255_s19  ;;  %s1500_s14 = smov %s1244_s16 }
 0x159   :  { %12 = sbr.rel (!%p10_p10) target bundleno = 2 (0x2), region = 146 }

// kernel: double_vae_forward.7
= control target key start
LH: loop header
LB: loop body
LE: loop exit
PB: predicated region body
PF: predicated region fallthrough
CT: control target
= control target key end

     0   :  { %v597_v1 = vmov 0   ;;  %vm445_vm0 = vcmask 523264   ;;  %s766_s1 = inlined_call_operand.vmem [shape: bf16[512,64], index: 1, kind: input, shape index: {}]   ;;  %s767_s0 = inlined_call_operand.vmem [shape: bf16[32,512], index: 0, kind: input, shape index: {}]   ;;  %s768_s2 = inlined_call_operand.vmem [shape: f32[32,1], index: 2, kind: input, shape index: {}]   ;;  %s769_s3 = inlined_call_operand.vmem [shape: f32[32,64], index: 3, kind: output, shape index: {}]  }
   0x1   :  { %v553_v0 = vld [vmem:[%s766_s1 + $0x40] sm:$0xff]   ;;  %551 = vset.pattern.permute.xlu0 %v597_v1  ;;  %552 = vset.pattern.permute.xlu1 %v597_v1  ;;  %v557_v5 = vld [vmem:[%s766_s1 + $0x48] sm:$0xff]   ;;  %v561_v9 = vld [vmem:[%s766_s1 + $0x50] sm:$0xff]  }
   0x2   :  { %v554_v2 = vld [vmem:[%s766_s1 + $0xc0] sm:$0xff]   ;;  %494 = vmatprep.subr.bf16.mxu0 %v553_v0  ;;  %v558_v6 = vld [vmem:[%s766_s1 + $0xc8] sm:$0xff]   ;;  %v562_v10 = vld [vmem:[%s766_s1 + $0xd0] sm:$0xff]  }
   0x3   :  { %v555_v3 = vld [vmem:[%s766_s1] sm:$0xff]   ;;  %522 = vmatprep.subr.bf16.mxu1 %v554_v2  ;;  %v559_v7 = vld [vmem:[%s766_s1 + $0x8] sm:$0xff]   ;;  %v563_v11 = vld [vmem:[%s766_s1 + $0x10] sm:$0xff]  }
   0x4   :  { %v556_v4 = vld [vmem:[%s766_s1 + $0x80] sm:$0xff]   ;;  %495 = vmatpush3.bf16.msra.mxu0 %v555_v3  ;;  %v560_v8 = vld [vmem:[%s766_s1 + $0x88] sm:$0xff]   ;;  %v564_v12 = vld [vmem:[%s766_s1 + $0x90] sm:$0xff]  }
   0x5   :  { %523 = vmatpush3.bf16.msra.mxu1 %v556_v4  ;;  %496 = vmatprep.subr.bf16.mxu0 %v557_v5  ;;  %v565_v13 = vld [vmem:[%s766_s1 + $0x58] sm:$0xff]   ;;  %v569_v17 = vld [vmem:[%s766_s1 + $0x60] sm:$0xff]   ;;  %v573_v21 = vld [vmem:[%s766_s1 + $0x68] sm:$0xff]  }
   0x6   :  { %524 = vmatprep.subr.bf16.mxu1 %v558_v6  ;;  %v566_v14 = vld [vmem:[%s766_s1 + $0xd8] sm:$0xff]   ;;  %v570_v18 = vld [vmem:[%s766_s1 + $0xe0] sm:$0xff]   ;;  %v574_v22 = vld [vmem:[%s766_s1 + $0xe8] sm:$0xff]  }
   0x7   :  { %v567_v15 = vld [vmem:[%s766_s1 + $0x18] sm:$0xff]   ;;  %v571_v19 = vld [vmem:[%s766_s1 + $0x20] sm:$0xff]   ;;  %v575_v23 = vld [vmem:[%s766_s1 + $0x28] sm:$0xff]  }
   0x8   :  { %497 = vmatpush3.bf16.msra.mxu0 %v559_v7  ;;  %v568_v16 = vld [vmem:[%s766_s1 + $0x98] sm:$0xff]   ;;  %v572_v20 = vld [vmem:[%s766_s1 + $0xa0] sm:$0xff]   ;;  %v576_v24 = vld [vmem:[%s766_s1 + $0xa8] sm:$0xff]  }
   0x9   :  { %525 = vmatpush3.bf16.msra.mxu1 %v560_v8  ;;  %498 = vmatprep.subr.bf16.mxu0 %v561_v9  ;;  %v577_v25 = vld [vmem:[%s766_s1 + $0x70] sm:$0xff]   ;;  %v581_v29 = vld [vmem:[%s766_s1 + $0x78] sm:$0xff]   ;;  %v87_v39 = vld [vmem:[%s768_s2] sm:$0xff] }
   0xa   :  { %526 = vmatprep.subr.bf16.mxu1 %v562_v10  ;;  %v578_v26 = vld [vmem:[%s766_s1 + $0xf0] sm:$0xff]   ;;  %v582_v30 = vld [vmem:[%s766_s1 + $0xf8] sm:$0xff]   ;;  %93 = vperm.xlu0 %551, %v87_v39   ;;  %v88_v41 = vld [vmem:[%s768_s2 + $0x8] sm:$0xff] }
   0xb   :  { %v579_v27 = vld [vmem:[%s766_s1 + $0x30] sm:$0xff]   ;;  %v583_v31 = vld [vmem:[%s766_s1 + $0x38] sm:$0xff]  }
   0xc   :  { %499 = vmatpush3.bf16.msra.mxu0 %v563_v11  ;;  %v580_v28 = vld [vmem:[%s766_s1 + $0xb0] sm:$0xff]   ;;  %v584_v32 = vld [vmem:[%s766_s1 + $0xb8] sm:$0xff]  }
   0xd   :  { %527 = vmatpush3.bf16.msra.mxu1 %v564_v12  ;;  %500 = vmatprep.subr.bf16.mxu0 %v565_v13  ;;  %v585_v33 = vld [vmem:[%s767_s0] ss:$16 sps:$4 sm:$0xff]   ;;  %v587_v34 = vld [vmem:[%s767_s0 + $0x4] ss:$16 sps:$4 sm:$0xff]   ;;  %v588_v35 = vld [vmem:[%s767_s0 + $0x8] ss:$16 sps:$4 sm:$0xff]  }
   0xe   :  { %528 = vmatprep.subr.bf16.mxu1 %v566_v14  ;;  %v590_v36 = vld [vmem:[%s767_s0 + $0xc] ss:$16 sps:$4 sm:$0xff]   ;;  %375 = vmatprep.mubr.bf16.mxu0 %v587_v34  ;;  %v591_v37 = vld [vmem:[%s767_s0 + $0x24] ss:$16 sps:$4 sm:$0xff]   ;;  %v595_v42 = vld [vmem:[%s767_s0 + $0x20] ss:$16 sps:$4 sm:$0xff]  }
   0xf   :  { %424 = vmatprep.mubr.bf16.mxu1 %v590_v36  ;;  %v593_v38 = vld [vmem:[%s767_s0 + $0x2c] ss:$16 sps:$4 sm:$0xff]   ;;  %v89_v40 = vld [vmem:[%s768_s2 + $0x10] sm:$0xff]  ;;  %v596_v44 = vld [vmem:[%s767_s0 + $0x28] ss:$16 sps:$4 sm:$0xff]   ;;  %98 = vperm.xlu0 %551, %v88_v41  }
  0x10   :  { %501 = vmatpush3.bf16.msra.mxu0 %v567_v15  ;;  %103 = vperm.xlu1 %552, %v89_v40   ;;  %v90_v43 = vld [vmem:[%s768_s2 + $0x18] sm:$0xff] }
  0x11   :  { %529 = vmatpush3.bf16.msra.mxu1 %v568_v16  ;;  %502 = vmatprep.subr.bf16.mxu0 %v569_v17 }
  0x12   :  { %530 = vmatprep.subr.bf16.mxu1 %v570_v18 }
  0x14   :  { %503 = vmatpush3.bf16.msra.mxu0 %v571_v19  ;;  %108 = vperm.xlu1 %552, %v90_v43  }
  0x15   :  { %531 = vmatpush3.bf16.msra.mxu1 %v572_v20  ;;  %504 = vmatprep.subr.bf16.mxu0 %v573_v21 }
  0x16   :  { %532 = vmatprep.subr.bf16.mxu1 %v574_v22 }
  0x18   :  { %505 = vmatpush3.bf16.msra.mxu0 %v575_v23 }
  0x19   :  { %533 = vmatpush3.bf16.msra.mxu1 %v576_v24  ;;  %506 = vmatprep.subr.bf16.mxu0 %v577_v25 }
  0x1a   :  { %534 = vmatprep.subr.bf16.mxu1 %v578_v26 }
  0x1c   :  { %507 = vmatpush3.bf16.msra.mxu0 %v579_v27 }
  0x1d   :  { %535 = vmatpush3.bf16.msra.mxu1 %v580_v28  ;;  %508 = vmatprep.subr.bf16.mxu0 %v581_v29 }
  0x1e   :  { %536 = vmatprep.subr.bf16.mxu1 %v582_v30 }
  0x20   :  { %509 = vmatpush3.bf16.msra.mxu0 %v583_v31 }
  0x21   :  { %537 = vmatpush3.bf16.msra.mxu1 %v584_v32 }
  0x23   :  { %376 = vmatmul.mubr.bf16.vlgmr.msra.gmra.mrb[0].mxu0 %v585_v33 }
  0x24   :  { %425 = vmatmul.mubr.bf16.vlgmr.msra.gmra.mrb[0].mxu1 %v588_v35  ;;  %383 = vmatprep.mubr.bf16.mxu0 %v591_v37 }
  0x25   :  { %432 = vmatprep.mubr.bf16.mxu1 %v593_v38 }
  0x2b   :  { %384 = vmatmul.mubr.bf16.gmra.mrb[4].mxu0 %v595_v42 }
  0x2c   :  { %433 = vmatmul.mubr.bf16.gmra.mrb[4].mxu1 %v596_v44 }
  0x89   :  { %v94_v45 = vpop.permute.xlu0 %93 }
  0x8e   :  { %v99_v47 = vpop.permute.xlu0 %98 }
  0x8f   :  { %v104_v62 = vpop.permute.xlu1 %103 }
  0x93   :  { %v109_v14 = vpop.permute.xlu1 %108 }
  0xf6   :  { %v510_v46 = vpop.f32.mrb[0].mxu0 }
  0xf7   :  { %v538_v48 = vpop.f32.mrb[0].mxu1  ;;  %v511_v49 = vpop.f32.mrb[1].mxu0 }
  0xf8   :  { %v512_v50 = vadd.f32 %v511_v49, %v510_v46  ;;  %v539_v51 = vpop.f32.mrb[1].mxu1  ;;  %v513_v52 = vpop.f32.mrb[2].mxu0 }
  0xf9   :  { %v540_v53 = vadd.f32 %v539_v51, %v538_v48  ;;  %v541_v54 = vpop.f32.mrb[2].mxu1  ;;  %v514_v55 = vpop.f32.mrb[3].mxu0 }
  0xfa   :  { %v378_v56 = vadd.f32 %v512_v50, %v94_v45  ;;  %v515_v57 = vadd.f32 %v514_v55, %v513_v52  ;;  %v542_v58 = vpop.f32.mrb[3].mxu1 }
  0xfb   :  { %v543_v59 = vadd.f32 %v542_v58, %v541_v54 }
  0xfc   :  { %v427_v60 = vadd.f32 %v540_v53, %v378_v56  ;;  %v381_v61 = vadd.f32 %v515_v57, %v99_v47 }
  0xfe   :  { %v441_v63 = vmax.f32 %v427_v60, 0.0  ;;  %v430_v0 = vadd.f32 %v543_v59, %v381_v61  ;;  %v516_v1 = vpop.f32.mrb[4].mxu0 }
  0xff   :  { %v544_v2 = vpop.f32.mrb[4].mxu1  ;;  %v517_v3 = vpop.f32.mrb[5].mxu0 }
 0x100   :  { %446 = vst.msk [vmem:[%s769_s3] sm:$0xff] %vm445_vm0, %v441_v63  ;;  %v442_v4 = vmax.f32 %v430_v0, 0.0  ;;  %v518_v5 = vadd.f32 %v517_v3, %v516_v1  ;;  %v545_v6 = vpop.f32.mrb[5].mxu1  ;;  %v519_v7 = vpop.f32.mrb[6].mxu0 }
 0x101   :  { %v546_v8 = vadd.f32 %v545_v6, %v544_v2  ;;  %v547_v9 = vpop.f32.mrb[6].mxu1  ;;  %v520_v10 = vpop.f32.mrb[7].mxu0 }
 0x102   :  { %447 = vst.msk [vmem:[%s769_s3 + $0x8] sm:$0xff] %vm445_vm0, %v442_v4  ;;  %v386_v11 = vadd.f32 %v518_v5, %v104_v62  ;;  %v521_v12 = vadd.f32 %v520_v10, %v519_v7  ;;  %v548_v13 = vpop.f32.mrb[7].mxu1 }
 0x103   :  { %v549_v15 = vadd.f32 %v548_v13, %v547_v9 }
 0x104   :  { %v435_v16 = vadd.f32 %v546_v8, %v386_v11  ;;  %v389_v17 = vadd.f32 %v521_v12, %v109_v14 }
 0x106   :  { %v443_v18 = vmax.f32 %v435_v16, 0.0  ;;  %v438_v19 = vadd.f32 %v549_v15, %v389_v17 }
 0x108   :  { %448 = vst.msk [vmem:[%s769_s3 + $0x10] sm:$0xff] %vm445_vm0, %v443_v18  ;;  %v444_v20 = vmax.f32 %v438_v19, 0.0 }
 0x10a   :  { %449 = vst.msk [vmem:[%s769_s3 + $0x18] sm:$0xff] %vm445_vm0, %v444_v20 }

// kernel: double_vae_forward.8
= control target key start
LH: loop header
LB: loop body
LE: loop exit
PB: predicated region body
PF: predicated region fallthrough
CT: control target
= control target key end

     0   :  { %vm945_vm0 = vcmask 109568   ;;  %s1660_s1 = inlined_call_operand.vmem [shape: bf16[512,256], index: 1, kind: input, shape index: {}]   ;;  %s1661_s0 = inlined_call_operand.vmem [shape: f32[4,512], index: 0, kind: input, shape index: {}]   ;;  %s1662_s3 = inlined_call_operand.vmem [shape: bf16[256,256], index: 3, kind: input, shape index: {}]   ;;  %s1663_s5 = inlined_call_operand.vmem [shape: bf16[256,14], index: 5, kind: input, shape index: {}]   ;;  %s1664_s2 = inlined_call_operand.vmem [shape: f32[1,256], index: 2, kind: input, shape index: {}]   ;;  %s1665_s4 = inlined_call_operand.vmem [shape: f32[1,256], index: 4, kind: input, shape index: {}]   ;;  %s1666_s6 = inlined_call_operand.vmem [shape: f32[1,14], index: 6, kind: input, shape index: {}]   ;;  %s1667_s7 = inlined_call_operand.vmem [shape: f32[4,14], index: 7, kind: output, shape index: {}]  }
   0x1   :  { %v1092_v0 = vld [vmem:[%s1660_s1 + $0x4] ss:$8 sps:$4 sm:$0xff]   ;;  %v1094_v1 = vld [vmem:[%s1660_s1] ss:$8 sps:$4 sm:$0xff]   ;;  %v1095_v2 = vld [vmem:[%s1660_s1 + $0x14] ss:$8 sps:$4 sm:$0xff]  }
   0x2   :  { %435 = vmatprep.subr.bf16.mxu0 %v1092_v0  ;;  %v1097_v3 = vld [vmem:[%s1660_s1 + $0x10] ss:$8 sps:$4 sm:$0xff]   ;;  %v1098_v4 = vld [vmem:[%s1660_s1 + $0x24] ss:$8 sps:$4 sm:$0xff]   ;;  %v1100_v5 = vld [vmem:[%s1660_s1 + $0x20] ss:$8 sps:$4 sm:$0xff]  }
   0x3   :  { %436 = vmatpush1.bf16.msra.mxu0 %v1094_v1  ;;  %v1101_v6 = vld [vmem:[%s1660_s1 + $0x34] ss:$8 sps:$4 sm:$0xff]   ;;  %v1103_v7 = vld [vmem:[%s1660_s1 + $0x30] ss:$8 sps:$4 sm:$0xff]   ;;  %v1104_v8 = vld [vmem:[%s1660_s1 + $0x44] ss:$8 sps:$4 sm:$0xff]  }
   0x4   :  { %437 = vmatprep.subr.bf16.mxu0 %v1095_v2  ;;  %v1106_v9 = vld [vmem:[%s1660_s1 + $0x40] ss:$8 sps:$4 sm:$0xff]   ;;  %v1107_v10 = vld [vmem:[%s1660_s1 + $0x54] ss:$8 sps:$4 sm:$0xff]   ;;  %v1109_v11 = vld [vmem:[%s1660_s1 + $0x50] ss:$8 sps:$4 sm:$0xff]  }
   0x5   :  { %v1110_v12 = vld [vmem:[%s1660_s1 + $0x64] ss:$8 sps:$4 sm:$0xff]   ;;  %v1112_v15 = vld [vmem:[%s1660_s1 + $0x60] ss:$8 sps:$4 sm:$0xff]   ;;  %v1113_v16 = vld [vmem:[%s1660_s1 + $0x74] ss:$8 sps:$4 sm:$0xff]  }
   0x6   :  { %v1336_v13 = vld [vmem:[%s1661_s0] sm:$0xff]  ;;  %v1115_v18 = vld [vmem:[%s1660_s1 + $0x70] ss:$8 sps:$4 sm:$0xff]   ;;  %v1119_v21 = vld [vmem:[%s1660_s1 + $0x94] ss:$8 sps:$4 sm:$0xff]  }
   0x7   :  { %438 = vmatpush1.bf16.msra.mxu0 %v1097_v3  ;;  %v31_v14 = vcombine.high %v1336_v13, %v1336_v13  ;;  %v1116_v19 = vld [vmem:[%s1660_s1 + $0x84] ss:$8 sps:$4 sm:$0xff]   ;;  %v1118_v20 = vld [vmem:[%s1660_s1 + $0x80] ss:$8 sps:$4 sm:$0xff]   ;;  %v1121_v22 = vld [vmem:[%s1660_s1 + $0x90] ss:$8 sps:$4 sm:$0xff]   ;;  %v35_v49 = vpack.c.bf16 %v1336_v13, %v1336_v13 }
   0x8   :  { %439 = vmatprep.subr.bf16.mxu0 %v1098_v4  ;;  %v1122_v23 = vld [vmem:[%s1660_s1 + $0xa4] ss:$8 sps:$4 sm:$0xff]   ;;  %v1124_v24 = vld [vmem:[%s1660_s1 + $0xa0] ss:$8 sps:$4 sm:$0xff]   ;;  %v1125_v25 = vld [vmem:[%s1660_s1 + $0xb4] ss:$8 sps:$4 sm:$0xff]  }
   0x9   :  { %v36_v17 = vpack.c.bf16 %v31_v14, %v31_v14  ;;  %v1127_v26 = vld [vmem:[%s1660_s1 + $0xb0] ss:$8 sps:$4 sm:$0xff]   ;;  %v1128_v27 = vld [vmem:[%s1660_s1 + $0xc4] ss:$8 sps:$4 sm:$0xff]   ;;  %v1192_v29 = vld [vmem:[%s1662_s3] ss:$8 sps:$4 sm:$0xff]  }
   0xa   :  { %v1190_v28 = vld [vmem:[%s1662_s3 + $0x4] ss:$8 sps:$4 sm:$0xff]   ;;  %v1193_v30 = vld [vmem:[%s1662_s3 + $0x14] ss:$8 sps:$4 sm:$0xff]   ;;  %v1130_v31 = vld [vmem:[%s1660_s1 + $0xc0] ss:$8 sps:$4 sm:$0xff]  }
   0xb   :  { %440 = vmatpush1.bf16.msra.mxu0 %v1100_v5  ;;  %467 = vmatprep.mubr.bf16.mxu0 %v36_v17  ;;  %v1195_v32 = vld [vmem:[%s1662_s3 + $0x10] ss:$8 sps:$4 sm:$0xff]   ;;  %v1131_v33 = vld [vmem:[%s1660_s1 + $0xd4] ss:$8 sps:$4 sm:$0xff]   ;;  %v1196_v34 = vld [vmem:[%s1662_s3 + $0x24] ss:$8 sps:$4 sm:$0xff]  }
   0xc   :  { %441 = vmatprep.subr.bf16.mxu0 %v1101_v6  ;;  %725 = vmatprep.subr.bf16.mxu1 %v1190_v28  ;;  %v1133_v35 = vld [vmem:[%s1660_s1 + $0xd0] ss:$8 sps:$4 sm:$0xff]   ;;  %v1198_v36 = vld [vmem:[%s1662_s3 + $0x20] ss:$8 sps:$4 sm:$0xff]   ;;  %v1134_v37 = vld [vmem:[%s1660_s1 + $0xe4] ss:$8 sps:$4 sm:$0xff]  }
   0xd   :  { %726 = vmatpush1.bf16.msra.mxu1 %v1192_v29  ;;  %v1199_v38 = vld [vmem:[%s1662_s3 + $0x34] ss:$8 sps:$4 sm:$0xff]   ;;  %v1136_v39 = vld [vmem:[%s1660_s1 + $0xe0] ss:$8 sps:$4 sm:$0xff]   ;;  %v1201_v41 = vld [vmem:[%s1662_s3 + $0x30] ss:$8 sps:$4 sm:$0xff]  }
   0xe   :  { %727 = vmatprep.subr.bf16.mxu1 %v1193_v30  ;;  %v1137_v40 = vld [vmem:[%s1660_s1 + $0xf4] ss:$8 sps:$4 sm:$0xff]   ;;  %v1421_v42 = vld [vmem:[%s1661_s0 + $0x8] sm:$0xff]  ;;  %v1139_v44 = vld [vmem:[%s1660_s1 + $0xf0] ss:$8 sps:$4 sm:$0xff]  }
   0xf   :  { %442 = vmatpush1.bf16.msra.mxu0 %v1103_v7  ;;  %v1202_v43 = vld [vmem:[%s1662_s3 + $0x44] ss:$8 sps:$4 sm:$0xff]   ;;  %v32_v45 = vcombine.high %v1421_v42, %v1421_v42  ;;  %v1204_v46 = vld [vmem:[%s1662_s3 + $0x40] ss:$8 sps:$4 sm:$0xff]   ;;  %v1205_v48 = vld [vmem:[%s1662_s3 + $0x54] ss:$8 sps:$4 sm:$0xff]  }
  0x10   :  { %443 = vmatprep.subr.bf16.mxu0 %v1104_v8  ;;  %v1143_v47 = vld [vmem:[%s1660_s1 + $0x104] ss:$8 sps:$4 sm:$0xff]   ;;  %v1141_v50 = vld [vmem:[%s1660_s1 + $0x100] ss:$8 sps:$4 sm:$0xff]   ;;  %v1146_v52 = vld [vmem:[%s1660_s1 + $0x114] ss:$8 sps:$4 sm:$0xff]  }
  0x11   :  { %728 = vmatpush1.bf16.msra.mxu1 %v1195_v32  ;;  %v38_v51 = vpack.c.bf16 %v32_v45, %v32_v45  ;;  %v1207_v53 = vld [vmem:[%s1662_s3 + $0x50] ss:$8 sps:$4 sm:$0xff]   ;;  %v1208_v54 = vld [vmem:[%s1662_s3 + $0x64] ss:$8 sps:$4 sm:$0xff]   ;;  %v1210_v57 = vld [vmem:[%s1662_s3 + $0x60] ss:$8 sps:$4 sm:$0xff]  }
  0x12   :  { %729 = vmatprep.subr.bf16.mxu1 %v1196_v34  ;;  %v1144_v55 = vld [vmem:[%s1660_s1 + $0x110] ss:$8 sps:$4 sm:$0xff]   ;;  %v1149_v56 = vld [vmem:[%s1660_s1 + $0x124] ss:$8 sps:$4 sm:$0xff]   ;;  %v1211_v58 = vld [vmem:[%s1662_s3 + $0x74] ss:$8 sps:$4 sm:$0xff]  }
  0x13   :  { %444 = vmatpush1.bf16.msra.mxu0 %v1106_v9  ;;  %v1147_v59 = vld [vmem:[%s1660_s1 + $0x120] ss:$8 sps:$4 sm:$0xff]   ;;  %v1152_v60 = vld [vmem:[%s1660_s1 + $0x134] ss:$8 sps:$4 sm:$0xff]   ;;  %v1213_v61 = vld [vmem:[%s1662_s3 + $0x70] ss:$8 sps:$4 sm:$0xff]  }
  0x14   :  { %445 = vmatprep.subr.bf16.mxu0 %v1107_v10  ;;  %v1214_v62 = vld [vmem:[%s1662_s3 + $0x84] ss:$8 sps:$4 sm:$0xff]   ;;  %v1150_v63 = vld [vmem:[%s1660_s1 + $0x130] ss:$8 sps:$4 sm:$0xff]   ;;  %v1216_v1 = vld [vmem:[%s1662_s3 + $0x80] ss:$8 sps:$4 sm:$0xff]  }
  0x15   :  { %730 = vmatpush1.bf16.msra.mxu1 %v1198_v36  ;;  %v1155_v0 = vld [vmem:[%s1660_s1 + $0x144] ss:$8 sps:$4 sm:$0xff]   ;;  %v1217_v2 = vld [vmem:[%s1662_s3 + $0x94] ss:$8 sps:$4 sm:$0xff]   ;;  %v1153_v3 = vld [vmem:[%s1660_s1 + $0x140] ss:$8 sps:$4 sm:$0xff]  }
  0x16   :  { %731 = vmatprep.subr.bf16.mxu1 %v1199_v38  ;;  %v1158_v4 = vld [vmem:[%s1660_s1 + $0x154] ss:$8 sps:$4 sm:$0xff]   ;;  %v1219_v5 = vld [vmem:[%s1662_s3 + $0x90] ss:$8 sps:$4 sm:$0xff]   ;;  %v1220_v6 = vld [vmem:[%s1662_s3 + $0xa4] ss:$8 sps:$4 sm:$0xff]  }
  0x17   :  { %446 = vmatpush1.bf16.msra.mxu0 %v1109_v11  ;;  %v1156_v7 = vld [vmem:[%s1660_s1 + $0x150] ss:$8 sps:$4 sm:$0xff]   ;;  %v1161_v8 = vld [vmem:[%s1660_s1 + $0x164] ss:$8 sps:$4 sm:$0xff]   ;;  %v1222_v9 = vld [vmem:[%s1662_s3 + $0xa0] ss:$8 sps:$4 sm:$0xff]  }
  0x18   :  { %447 = vmatprep.subr.bf16.mxu0 %v1110_v12  ;;  %v1223_v10 = vld [vmem:[%s1662_s3 + $0xb4] ss:$8 sps:$4 sm:$0xff]   ;;  %v1159_v11 = vld [vmem:[%s1660_s1 + $0x160] ss:$8 sps:$4 sm:$0xff]   ;;  %v1225_v13 = vld [vmem:[%s1662_s3 + $0xb0] ss:$8 sps:$4 sm:$0xff]  }
  0x19   :  { %732 = vmatpush1.bf16.msra.mxu1 %v1201_v41  ;;  %v1164_v12 = vld [vmem:[%s1660_s1 + $0x174] ss:$8 sps:$4 sm:$0xff]   ;;  %v1226_v14 = vld [vmem:[%s1662_s3 + $0xc4] ss:$8 sps:$4 sm:$0xff]   ;;  %v1228_v17 = vld [vmem:[%s1662_s3 + $0xc0] ss:$8 sps:$4 sm:$0xff]   ;;  %v105_v41 = vlaneseq }
  0x1a   :  { %733 = vmatprep.subr.bf16.mxu1 %v1202_v43  ;;  %v1177_v28 = vld [vmem:[%s1660_s1 + $0x1c0] ss:$8 sps:$4 sm:$0xff]   ;;  %v1182_v29 = vld [vmem:[%s1660_s1 + $0x1d4] ss:$8 sps:$4 sm:$0xff]   ;;  %v1180_v30 = vld [vmem:[%s1660_s1 + $0x1d0] ss:$8 sps:$4 sm:$0xff]  }
  0x1b   :  { %448 = vmatpush1.bf16.msra.mxu0 %v1112_v15  ;;  %v1162_v15 = vld [vmem:[%s1660_s1 + $0x170] ss:$8 sps:$4 sm:$0xff]   ;;  %v1183_v32 = vld [vmem:[%s1660_s1 + $0x1e0] ss:$8 sps:$4 sm:$0xff]   ;;  %v1232_v36 = vld [vmem:[%s1662_s3 + $0xe4] ss:$8 sps:$4 sm:$0xff]  }
  0x1c   :  { %449 = vmatprep.subr.bf16.mxu0 %v1113_v16  ;;  %v1167_v16 = vld [vmem:[%s1660_s1 + $0x184] ss:$8 sps:$4 sm:$0xff]   ;;  %v1186_v34 = vld [vmem:[%s1660_s1 + $0x1f0] ss:$8 sps:$4 sm:$0xff]   ;;  %v1235_v38 = vld [vmem:[%s1662_s3 + $0xf4] ss:$8 sps:$4 sm:$0xff]  }
  0x1d   :  { %734 = vmatpush1.bf16.msra.mxu1 %v1204_v46 }
  0x1e   :  { %735 = vmatprep.subr.bf16.mxu1 %v1205_v48 }
  0x1f   :  { %450 = vmatpush1.bf16.msra.mxu0 %v1115_v18  ;;  %v1229_v18 = vld [vmem:[%s1662_s3 + $0xd4] ss:$8 sps:$4 sm:$0xff]  }
  0x20   :  { %451 = vmatprep.subr.bf16.mxu0 %v1116_v19  ;;  %v1165_v19 = vld [vmem:[%s1660_s1 + $0x180] ss:$8 sps:$4 sm:$0xff]  }
  0x21   :  { %736 = vmatpush1.bf16.msra.mxu1 %v1207_v53 }
  0x22   :  { %737 = vmatprep.subr.bf16.mxu1 %v1208_v54 }
  0x23   :  { %452 = vmatpush1.bf16.msra.mxu0 %v1118_v20  ;;  %v1170_v20 = vld [vmem:[%s1660_s1 + $0x194] ss:$8 sps:$4 sm:$0xff]  }
  0x24   :  { %453 = vmatprep.subr.bf16.mxu0 %v1119_v21  ;;  %v1231_v21 = vld [vmem:[%s1662_s3 + $0xd0] ss:$8 sps:$4 sm:$0xff]  }
  0x25   :  { %738 = vmatpush1.bf16.msra.mxu1 %v1210_v57  ;;  %v1239_v57 = vld [vmem:[%s1663_s5] sm:$0xff]  }
  0x26   :  { %739 = vmatprep.subr.bf16.mxu1 %v1211_v58 }
  0x27   :  { %454 = vmatpush1.bf16.msra.mxu0 %v1121_v22  ;;  %v1168_v22 = vld [vmem:[%s1660_s1 + $0x190] ss:$8 sps:$4 sm:$0xff]  }
  0x28   :  { %455 = vmatprep.subr.bf16.mxu0 %v1122_v23  ;;  %v1173_v23 = vld [vmem:[%s1660_s1 + $0x1a4] ss:$8 sps:$4 sm:$0xff]  }
  0x29   :  { %740 = vmatpush1.bf16.msra.mxu1 %v1213_v61  ;;  %v1242_v61 = vld [vmem:[%s1663_s5 + $0x50] sm:$0xff]  }
  0x2a   :  { %741 = vmatprep.subr.bf16.mxu1 %v1214_v62  ;;  %v1243_v62 = vld [vmem:[%s1663_s5 + $0x10] sm:$0xff]  }
  0x2b   :  { %456 = vmatpush1.bf16.msra.mxu0 %v1124_v24  ;;  %v1171_v24 = vld [vmem:[%s1660_s1 + $0x1a0] ss:$8 sps:$4 sm:$0xff]  }
  0x2c   :  { %457 = vmatprep.subr.bf16.mxu0 %v1125_v25  ;;  %v1176_v25 = vld [vmem:[%s1660_s1 + $0x1b4] ss:$8 sps:$4 sm:$0xff]  }
  0x2d   :  { %742 = vmatpush1.bf16.msra.mxu1 %v1216_v1  ;;  %v1246_v1 = vld [vmem:[%s1663_s5 + $0x60] sm:$0xff]  }
  0x2e   :  { %743 = vmatprep.subr.bf16.mxu1 %v1217_v2  ;;  %v1247_v2 = vld [vmem:[%s1663_s5 + $0x20] sm:$0xff]  }
  0x2f   :  { %458 = vmatpush1.bf16.msra.mxu0 %v1127_v26  ;;  %v1174_v26 = vld [vmem:[%s1660_s1 + $0x1b0] ss:$8 sps:$4 sm:$0xff]  }
  0x30   :  { %459 = vmatprep.subr.bf16.mxu0 %v1128_v27  ;;  %v1179_v27 = vld [vmem:[%s1660_s1 + $0x1c4] ss:$8 sps:$4 sm:$0xff]  }
  0x31   :  { %744 = vmatpush1.bf16.msra.mxu1 %v1219_v5  ;;  %v1250_v5 = vld [vmem:[%s1663_s5 + $0x70] sm:$0xff]  }
  0x32   :  { %745 = vmatprep.subr.bf16.mxu1 %v1220_v6  ;;  %v1251_v6 = vld [vmem:[%s1663_s5 + $0x30] sm:$0xff]  }
  0x33   :  { %460 = vmatpush1.bf16.msra.mxu0 %v1130_v31  ;;  %v1185_v31 = vld [vmem:[%s1660_s1 + $0x1e4] ss:$8 sps:$4 sm:$0xff]  }
  0x34   :  { %461 = vmatprep.subr.bf16.mxu0 %v1131_v33  ;;  %v1188_v33 = vld [vmem:[%s1660_s1 + $0x1f4] ss:$8 sps:$4 sm:$0xff]  }
  0x35   :  { %746 = vmatpush1.bf16.msra.mxu1 %v1222_v9  ;;  %v553_v9 = vld [vmem:[%s1665_s4] sm:$0x3] }
  0x36   :  { %747 = vmatprep.subr.bf16.mxu1 %v1223_v10 }
  0x37   :  { %462 = vmatpush1.bf16.msra.mxu0 %v1133_v35  ;;  %v37_v35 = vpack.c.bf16 %v1421_v42, %v1421_v42  ;;  %v106_v42 = vshrl.u32 %v105_v41, 7 }
  0x38   :  { %463 = vmatprep.subr.bf16.mxu0 %v1134_v37  ;;  %v1234_v37 = vld [vmem:[%s1662_s3 + $0xe0] ss:$8 sps:$4 sm:$0xff]  }
  0x39   :  { %748 = vmatpush1.bf16.msra.mxu1 %v1225_v13  ;;  %v107_v43 = vsub.s32 0, %v106_v42  ;;  %v111_v45 = vsub.s32 1, %v106_v42 }
  0x3a   :  { %749 = vmatprep.subr.bf16.mxu1 %v1226_v14 }
  0x3b   :  { %464 = vmatpush1.bf16.msra.mxu0 %v1136_v39  ;;  %v1237_v39 = vld [vmem:[%s1662_s3 + $0xf0] ss:$8 sps:$4 sm:$0xff]   ;;  %v558_v10 = vrot.slane %v553_v9, %v107_v43 }
  0x3c   :  { %465 = vmatprep.subr.bf16.mxu0 %v1137_v40  ;;  %v1238_v40 = vld [vmem:[%s1663_s5 + $0x40] sm:$0xff]  }
  0x3d   :  { %750 = vmatpush1.bf16.msra.mxu1 %v1228_v17 }
  0x3e   :  { %751 = vmatprep.subr.bf16.mxu1 %v1229_v18 }
  0x3f   :  { %466 = vmatpush1.bf16.msra.mxu0 %v1139_v44  ;;  %v103_v44 = vld [vmem:[%s1664_s2] sm:$0x3] }
  0x40   :  { %476 = vmatprep.subr.bf16.mxu0 %v1143_v47  ;;  %v108_v46 = vrot.slane %v103_v44, %v107_v43  ;;  %v112_v47 = vrot.slane %v103_v44, %v111_v45 }
  0x41   :  { %752 = vmatpush1.bf16.msra.mxu1 %v1231_v21 }
  0x42   :  { %468 = vmatmul.mubr.bf16.vlgmr.msra.gmra.mrb[0].mxu0 %v35_v49  ;;  %753 = vmatprep.subr.bf16.mxu1 %v1232_v36 }
  0x43   :  { %477 = vmatpush1.bf16.msra.mxu0 %v1141_v50  ;;  %508 = vmatprep.mubr.bf16.mxu0 %v38_v51 }
  0x44   :  { %478 = vmatprep.subr.bf16.mxu0 %v1146_v52 }
  0x45   :  { %754 = vmatpush1.bf16.msra.mxu1 %v1234_v37 }
  0x46   :  { %755 = vmatprep.subr.bf16.mxu1 %v1235_v38 }
  0x47   :  { %479 = vmatpush1.bf16.msra.mxu0 %v1144_v55 }
  0x48   :  { %480 = vmatprep.subr.bf16.mxu0 %v1149_v56 }
  0x49   :  { %756 = vmatpush1.bf16.msra.mxu1 %v1237_v39 }
  0x4a   :  { %1064 = vmatprep.subr.bf16.mxu1 %v1238_v40 }
  0x4b   :  { %481 = vmatpush1.bf16.msra.mxu0 %v1147_v59  ;;  %v1240_v59 = vld [vmem:[%s1663_s5 + $0x48] sm:$0xff]  }
  0x4c   :  { %482 = vmatprep.subr.bf16.mxu0 %v1152_v60  ;;  %v1241_v60 = vld [vmem:[%s1663_s5 + $0x8] sm:$0xff]  }
  0x4f   :  { %483 = vmatpush1.bf16.msra.mxu0 %v1150_v63  ;;  %v1244_v63 = vld [vmem:[%s1663_s5 + $0x58] sm:$0xff]  }
  0x50   :  { %484 = vmatprep.subr.bf16.mxu0 %v1155_v0  ;;  %v1245_v0 = vld [vmem:[%s1663_s5 + $0x18] sm:$0xff]  }
  0x53   :  { %485 = vmatpush1.bf16.msra.mxu0 %v1153_v3  ;;  %v1248_v3 = vld [vmem:[%s1663_s5 + $0x68] sm:$0xff]  }
  0x54   :  { %486 = vmatprep.subr.bf16.mxu0 %v1158_v4  ;;  %v1249_v4 = vld [vmem:[%s1663_s5 + $0x28] sm:$0xff]  }
  0x57   :  { %487 = vmatpush1.bf16.msra.mxu0 %v1156_v7  ;;  %v1252_v7 = vld [vmem:[%s1663_s5 + $0x78] sm:$0xff]  }
  0x58   :  { %488 = vmatprep.subr.bf16.mxu0 %v1161_v8  ;;  %v1253_v8 = vld [vmem:[%s1663_s5 + $0x38] sm:$0xff]  }
  0x5b   :  { %489 = vmatpush1.bf16.msra.mxu0 %v1159_v11  ;;  %v562_v11 = vrot.slane %v553_v9, %v111_v45 }
  0x5c   :  { %490 = vmatprep.subr.bf16.mxu0 %v1164_v12 }
  0x5f   :  { %491 = vmatpush1.bf16.msra.mxu0 %v1162_v15 }
  0x60   :  { %492 = vmatprep.subr.bf16.mxu0 %v1167_v16 }
  0x63   :  { %493 = vmatpush1.bf16.msra.mxu0 %v1165_v19 }
  0x64   :  { %494 = vmatprep.subr.bf16.mxu0 %v1170_v20 }
  0x67   :  { %495 = vmatpush1.bf16.msra.mxu0 %v1168_v22 }
  0x68   :  { %496 = vmatprep.subr.bf16.mxu0 %v1173_v23  ;;  %v1047_v23 = vld [vmem:[%s1666_s6] ss:$0 sm:$0xff] }
  0x6b   :  { %497 = vmatpush1.bf16.msra.mxu0 %v1171_v24 }
  0x6c   :  { %498 = vmatprep.subr.bf16.mxu0 %v1176_v25 }
  0x6f   :  { %499 = vmatpush1.bf16.msra.mxu0 %v1174_v26 }
  0x70   :  { %500 = vmatprep.subr.bf16.mxu0 %v1179_v27 }
  0x73   :  { %501 = vmatpush1.bf16.msra.mxu0 %v1177_v28 }
  0x74   :  { %502 = vmatprep.subr.bf16.mxu0 %v1182_v29 }
  0x77   :  { %503 = vmatpush1.bf16.msra.mxu0 %v1180_v30 }
  0x78   :  { %504 = vmatprep.subr.bf16.mxu0 %v1185_v31 }
  0x7b   :  { %505 = vmatpush1.bf16.msra.mxu0 %v1183_v32 }
  0x7c   :  { %506 = vmatprep.subr.bf16.mxu0 %v1188_v33 }
  0x7f   :  { %507 = vmatpush1.bf16.msra.mxu0 %v1186_v34 }
  0x82   :  { %509 = vmatmul.mubr.bf16.vlgmr.msra.gmra.mrb[0].mxu0 %v37_v35 }
 0x155   :  { %v510_v48 = vpop.f32.mrb[0].mxu0 }
 0x156   :  { %v1086_v49 = vadd.f32 %v510_v48, %v108_v46  ;;  %v512_v50 = vpop.f32.mrb[1].mxu0 }
 0x157   :  { %v1087_v51 = vadd.f32 %v512_v50, %v112_v47  ;;  %v514_v52 = vpop.f32.mrb[2].mxu0 }
 0x158   :  { %v517_v53 = vmax.f32 %v1086_v49, 0.0  ;;  %v515_v54 = vpop.f32.mrb[3].mxu0 }
 0x159   :  { %v518_v55 = vmax.f32 %v1087_v51, 0.0 }
 0x15a   :  { %v519_v58 = vpack.c.bf16 %v517_v53, %v517_v53 }
 0x15b   :  { %v520_v56 = vpack.c.bf16 %v518_v55, %v518_v55 }
 0x15d   :  { %757 = vmatprep.mubr.bf16.mxu1 %v520_v56 }
 0x15e   :  { %758 = vmatmul.mubr.bf16.vlgmr.msra.gmra.mrb[0].mxu1 %v519_v58 }
 0x15f   :  { %1065 = vmatpush3.bf16.msra.mxu1 %v1239_v57 }
 0x160   :  { %1066 = vmatprep.subr.bf16.mxu1 %v1240_v59 }
 0x163   :  { %1067 = vmatpush3.bf16.msra.mxu1 %v1241_v60 }
 0x164   :  { %1068 = vmatprep.subr.bf16.mxu1 %v1242_v61 }
 0x167   :  { %1069 = vmatpush3.bf16.msra.mxu1 %v1243_v62 }
 0x168   :  { %1070 = vmatprep.subr.bf16.mxu1 %v1244_v63 }
 0x16b   :  { %1071 = vmatpush3.bf16.msra.mxu1 %v1245_v0 }
 0x16c   :  { %1072 = vmatprep.subr.bf16.mxu1 %v1246_v1 }
 0x16f   :  { %1073 = vmatpush3.bf16.msra.mxu1 %v1247_v2 }
 0x170   :  { %1074 = vmatprep.subr.bf16.mxu1 %v1248_v3 }
 0x173   :  { %1075 = vmatpush3.bf16.msra.mxu1 %v1249_v4 }
 0x174   :  { %1076 = vmatprep.subr.bf16.mxu1 %v1250_v5 }
 0x177   :  { %1077 = vmatpush3.bf16.msra.mxu1 %v1251_v6 }
 0x178   :  { %1078 = vmatprep.subr.bf16.mxu1 %v1252_v7 }
 0x17b   :  { %1079 = vmatpush3.bf16.msra.mxu1 %v1253_v8 }
 0x231   :  { %v759_v12 = vpop.f32.mrb[0].mxu1 }
 0x232   :  { %v760_v13 = vadd.f32 %v759_v12, %v558_v10  ;;  %v761_v14 = vpop.f32.mrb[1].mxu1 }
 0x233   :  { %v762_v15 = vadd.f32 %v761_v14, %v562_v11  ;;  %v763_v16 = vpop.f32.mrb[2].mxu1 }
 0x234   :  { %v766_v17 = vmax.f32 %v760_v13, 0.0  ;;  %v764_v18 = vpop.f32.mrb[3].mxu1 }
 0x235   :  { %v767_v19 = vmax.f32 %v762_v15, 0.0 }
 0x236   :  { %v768_v21 = vpack.c.bf16 %v766_v17, %v766_v17 }
 0x237   :  { %v769_v20 = vpack.c.bf16 %v767_v19, %v767_v19 }
 0x239   :  { %937 = vmatprep.mubr.bf16.mxu1 %v769_v20 }
 0x23a   :  { %938 = vmatmul.mubr.bf16.vlgmr.msra.gmra.mrb[4].mxu1 %v768_v21 }
 0x30d   :  { %v1080_v22 = vpop.f32.mrb[4].mxu1 }
 0x30e   :  { %v1081_v24 = vpop.f32.mrb[5].mxu1 }
 0x30f   :  { %v1082_v25 = vadd.f32 %v1081_v24, %v1080_v22  ;;  %v1083_v26 = vpop.f32.mrb[6].mxu1 }
 0x310   :  { %v1084_v27 = vpop.f32.mrb[7].mxu1 }
 0x311   :  { %v940_v28 = vadd.f32 %v1082_v25, %v1047_v23 }
 0x313   :  { %946 = vst.msk [vmem:[%s1667_s7] sm:$0xf] %vm945_vm0, %v940_v28 }

// kernel: double_vae_forward.9
= control target key start
LH: loop header
LB: loop body
LE: loop exit
PB: predicated region body
PF: predicated region fallthrough
CT: control target
= control target key end

     0   :  { %vm73_vm0 = vcmask 1044480   ;;  %v1744_v2 = vmov 0   ;;  %vm69_vm1 = vcmask 80896   ;;  %s2367_s0 = inlined_call_operand.vmem [shape: f32[2,10], index: 0, kind: input, shape index: {}]   ;;  %s2368_s1 = inlined_call_operand.vmem [shape: f32[2,10], index: 1, kind: input, shape index: {}]   ;;  %s2369_s2 = inlined_call_operand.vmem [shape: f32[2,10], index: 2, kind: input, shape index: {}]   ;;  %s2370_s3 = inlined_call_operand.vmem [shape: bf16[10,256], index: 3, kind: input, shape index: {}]   ;;  %s2371_s4 = inlined_call_operand.vmem [shape: f32[1,256], index: 4, kind: input, shape index: {}]   ;;  %s2372_s5 = inlined_call_operand.vmem [shape: bf16[256,256], index: 5, kind: input, shape index: {}]   ;;  %s2373_s6 = inlined_call_operand.vmem [shape: f32[1,256], index: 6, kind: input, shape index: {}]   ;;  %s2374_s7 = inlined_call_operand.vmem [shape: bf16[256,1024], index: 7, kind: input, shape index: {}]   ;;  %s2375_s8 = inlined_call_operand.vmem [shape: f32[1,1024], index: 8, kind: input, shape index: {}]   ;;  %s2376_s9 = inlined_call_operand.vmem [shape: f32[2,1024], index: 9, kind: output, shape index: {0}]   ;;  %s2377_s10 = inlined_call_operand.hbm [shape: f32[2,10], index: 10, kind: output, shape index: {1}]  }
   0x1   :  { %v1635_v0 = vld [vmem:[%s2370_s3 + $0x4] ss:$8 sps:$4 sm:$0x1f]   ;;  %v1637_v1 = vld [vmem:[%s2370_s3] ss:$8 sps:$4 sm:$0x1f]   ;;  %112 = vmatprep.mubr.bf16.mxu0 %v1744_v2 }
   0x2   :  { %1462 = vmatprep.subr.msk.bf16.mxu0 %vm73_vm0, %v1635_v0  ;;  %v37_v3 = vld [vmem:[%s2368_s1] sm:$0x3]  ;;  %v75_v4 = vsel %vm73_vm0, %v1637_v1, 0  ;;  %v1638_v6 = vld [vmem:[%s2372_s5 + $0x4] ss:$8 sps:$4 sm:$0xff]  }
   0x3   :  { %v38_v5 = vmul.f32 0.5, %v37_v3  ;;  %81 = vmatpush1.bf16.msra.mxu0 %v75_v4  ;;  %v1640_v7 = vld [vmem:[%s2372_s5] ss:$8 sps:$4 sm:$0xff]   ;;  %329 = vmatprep.subr.bf16.mxu1 %v1638_v6  ;;  %v1641_v9 = vld [vmem:[%s2372_s5 + $0x14] ss:$8 sps:$4 sm:$0xff]  }
   0x4   :  { %330 = vmatpush1.bf16.msra.mxu1 %v1640_v7  ;;  %v1643_v10 = vld [vmem:[%s2372_s5 + $0x10] ss:$8 sps:$4 sm:$0xff]   ;;  %v1644_v11 = vld [vmem:[%s2372_s5 + $0x24] ss:$8 sps:$4 sm:$0xff]   ;;  %v1646_v12 = vld [vmem:[%s2372_s5 + $0x20] ss:$8 sps:$4 sm:$0xff]  }
   0x5   :  { %v39_v8 = vmul.f32 1.442695, %v38_v5  ;;  %331 = vmatprep.subr.bf16.mxu1 %v1641_v9  ;;  %v1647_v13 = vld [vmem:[%s2372_s5 + $0x34] ss:$8 sps:$4 sm:$0xff]   ;;  %v41_v14 = vld [vmem:[%s2369_s2] sm:$0x3] }
   0x6   :  { %v1649_v15 = vld [vmem:[%s2372_s5 + $0x30] ss:$8 sps:$4 sm:$0xff]   ;;  %v1650_v16 = vld [vmem:[%s2372_s5 + $0x44] ss:$8 sps:$4 sm:$0xff]   ;;  %v36_v18 = vld [vmem:[%s2367_s0] sm:$0x3] }
   0x7   :  { %1686 = vpow2.f32 %v39_v8  ;;  %v1652_v20 = vld [vmem:[%s2372_s5 + $0x40] ss:$8 sps:$4 sm:$0xff]   ;;  %v1653_v21 = vld [vmem:[%s2372_s5 + $0x54] ss:$8 sps:$4 sm:$0xff]   ;;  %v1655_v23 = vld [vmem:[%s2372_s5 + $0x50] ss:$8 sps:$4 sm:$0xff]  }
   0x8   :  { %332 = vmatpush1.bf16.msra.mxu1 %v1643_v10  ;;  %v1656_v25 = vld [vmem:[%s2372_s5 + $0x64] ss:$8 sps:$4 sm:$0xff]  }
   0x9   :  { %333 = vmatprep.subr.bf16.mxu1 %v1644_v11 }
   0xc   :  { %334 = vmatpush1.bf16.msra.mxu1 %v1646_v12 }
   0xd   :  { %335 = vmatprep.subr.bf16.mxu1 %v1647_v13 }
  0x10   :  { %336 = vmatpush1.bf16.msra.mxu1 %v1649_v15 }
  0x11   :  { %v1687_v17 = vpop.eup %1686  ;;  %337 = vmatprep.subr.bf16.mxu1 %v1650_v16 }
  0x12   :  { %v42_v19 = vmul.f32 %v1687_v17, %v41_v14 }
  0x14   :  { %v1850_v22 = vadd.f32 %v42_v19, %v36_v18  ;;  %338 = vmatpush1.bf16.msra.mxu1 %v1652_v20 }
  0x15   :  { %339 = vmatprep.subr.bf16.mxu1 %v1653_v21 }
  0x16   :  { %v46_v24 = vpack.c.bf16 %v1850_v22, %v1850_v22 }
  0x17   :  { %16 = vsyncpa [#allocation3], 0  ;;  %v1658_v26 = vld [vmem:[%s2372_s5 + $0x60] ss:$8 sps:$4 sm:$0xff]   ;;  %v1659_v27 = vld [vmem:[%s2372_s5 + $0x74] ss:$8 sps:$4 sm:$0xff]  }
  0x18   :  { %1463 = vmatmul.mubr.msk.bf16.vlgmr.msra.gmra.mrb[0].mxu0 %vm69_vm1, %v46_v24  ;;  %340 = vmatpush1.bf16.msra.mxu1 %v1655_v23  ;;  %v1661_v28 = vld [vmem:[%s2372_s5 + $0x70] ss:$8 sps:$4 sm:$0xff]   ;;  %v1662_v29 = vld [vmem:[%s2372_s5 + $0x84] ss:$8 sps:$4 sm:$0xff]   ;;  %v1664_v30 = vld [vmem:[%s2372_s5 + $0x80] ss:$8 sps:$4 sm:$0xff]  }
  0x19   :  { %341 = vmatprep.subr.bf16.mxu1 %v1656_v25  ;;  %v1665_v31 = vld [vmem:[%s2372_s5 + $0x94] ss:$8 sps:$4 sm:$0xff]   ;;  %v1667_v32 = vld [vmem:[%s2372_s5 + $0x90] ss:$8 sps:$4 sm:$0xff]   ;;  %v1668_v33 = vld [vmem:[%s2372_s5 + $0xa4] ss:$8 sps:$4 sm:$0xff]  }
  0x1a   :  { %v1670_v34 = vld [vmem:[%s2372_s5 + $0xa0] ss:$8 sps:$4 sm:$0xff]   ;;  %v1671_v35 = vld [vmem:[%s2372_s5 + $0xb4] ss:$8 sps:$4 sm:$0xff]   ;;  %v1673_v36 = vld [vmem:[%s2372_s5 + $0xb0] ss:$8 sps:$4 sm:$0xff]  }
  0x1b   :  { %v1674_v37 = vld [vmem:[%s2372_s5 + $0xc4] ss:$8 sps:$4 sm:$0xff]   ;;  %v1676_v38 = vld [vmem:[%s2372_s5 + $0xc0] ss:$8 sps:$4 sm:$0xff]   ;;  %v1677_v39 = vld [vmem:[%s2372_s5 + $0xd4] ss:$8 sps:$4 sm:$0xff]  }
  0x1c   :  { %342 = vmatpush1.bf16.msra.mxu1 %v1658_v26  ;;  %v1679_v40 = vld [vmem:[%s2372_s5 + $0xd0] ss:$8 sps:$4 sm:$0xff]   ;;  %v1680_v41 = vld [vmem:[%s2372_s5 + $0xe4] ss:$8 sps:$4 sm:$0xff]   ;;  %v1682_v42 = vld [vmem:[%s2372_s5 + $0xe0] ss:$8 sps:$4 sm:$0xff]  }
  0x1d   :  { %343 = vmatprep.subr.bf16.mxu1 %v1659_v27  ;;  %v1683_v43 = vld [vmem:[%s2372_s5 + $0xf4] ss:$8 sps:$4 sm:$0xff]   ;;  %v1685_v44 = vld [vmem:[%s2372_s5 + $0xf0] ss:$8 sps:$4 sm:$0xff]   ;;  %v374_v45 = vld [vmem:[%s2374_s7] sm:$0xff]  ;;  %vm44_vm2 = vcmask 74752  }
  0x1e   :  { %v378_v46 = vld [vmem:[%s2374_s7 + $0x20] sm:$0xff]  ;;  %v1926_v47 = vld [vmem:[%s2374_s7 + $0x8] sm:$0xff]  ;;  %45 = vst.msk [vmem:[#allocation2] sm:$0x3] %vm44_vm2, %v1850_v22 }
  0x1f   :  { %v1496_v48 = vcombine.low %v374_v45, %v378_v46  ;;  %v1497_v49 = vcombine.high %v374_v45, %v378_v46  ;;  %v1931_v50 = vld [vmem:[%s2374_s7 + $0x28] sm:$0xff]  ;;  %v382_v51 = vld [vmem:[%s2374_s7 + $0x40] sm:$0xff] }
  0x20   :  { %344 = vmatpush1.bf16.msra.mxu1 %v1661_v28  ;;  %v386_v52 = vld [vmem:[%s2374_s7 + $0x60] sm:$0xff]  ;;  %v1498_v53 = vcombine.low %v1926_v47, %v1931_v50  ;;  %v1499_v54 = vcombine.high %v1926_v47, %v1931_v50  ;;  %v407_v47 = vld [vmem:[%s2374_s7 + $0x108] sm:$0xff] }
  0x21   :  { %345 = vmatprep.subr.bf16.mxu1 %v1662_v29  ;;  %v1505_v55 = vcombine.high %v382_v51, %v386_v52  ;;  %1184 = vmatprep.subr.bf16.mxu0 %v1497_v49  ;;  %v1504_v56 = vcombine.low %v382_v51, %v386_v52  ;;  %v390_v57 = vld [vmem:[%s2374_s7 + $0x80] sm:$0xff]  ;;  %v411_v50 = vld [vmem:[%s2374_s7 + $0x128] sm:$0xff] }
  0x22   :  { %1185 = vmatpush1.bf16.msra.mxu0 %v1496_v48  ;;  %v394_v58 = vld [vmem:[%s2374_s7 + $0xa0] sm:$0xff] }
  0x23   :  { %1186 = vmatprep.subr.bf16.mxu0 %v1505_v55  ;;  %v1513_v59 = vcombine.high %v390_v57, %v394_v58  ;;  %v1512_v60 = vcombine.low %v390_v57, %v394_v58  ;;  %v398_v61 = vld [vmem:[%s2374_s7 + $0xc0] sm:$0xff] }
  0x24   :  { %346 = vmatpush1.bf16.msra.mxu1 %v1664_v30  ;;  %v402_v62 = vld [vmem:[%s2374_s7 + $0xe0] sm:$0xff] }
  0x25   :  { %347 = vmatprep.subr.bf16.mxu1 %v1665_v31  ;;  %v1521_v63 = vcombine.high %v398_v61, %v402_v62  ;;  %v1520_v0 = vcombine.low %v398_v61, %v402_v62  ;;  %v406_v1 = vld [vmem:[%s2374_s7 + $0x100] sm:$0xff]  ;;  %v387_v61 = vld [vmem:[%s2374_s7 + $0x68] sm:$0xff] }
  0x26   :  { %1187 = vmatpush1.bf16.msra.mxu0 %v1504_v56  ;;  %v410_v2 = vld [vmem:[%s2374_s7 + $0x120] sm:$0xff] }
  0x27   :  { %1188 = vmatprep.subr.bf16.mxu0 %v1513_v59  ;;  %v1529_v3 = vcombine.high %v406_v1, %v410_v2  ;;  %v1528_v4 = vcombine.low %v406_v1, %v410_v2  ;;  %v414_v5 = vld [vmem:[%s2374_s7 + $0x140] sm:$0xff]  ;;  %v391_v1 = vld [vmem:[%s2374_s7 + $0x88] sm:$0xff] }
  0x28   :  { %348 = vmatpush1.bf16.msra.mxu1 %v1667_v32  ;;  %v418_v6 = vld [vmem:[%s2374_s7 + $0x160] sm:$0xff]  ;;  %v395_v2 = vld [vmem:[%s2374_s7 + $0xa8] sm:$0xff] }
  0x29   :  { %349 = vmatprep.subr.bf16.mxu1 %v1668_v33  ;;  %v1537_v7 = vcombine.high %v414_v5, %v418_v6  ;;  %v1536_v8 = vcombine.low %v414_v5, %v418_v6  ;;  %v422_v9 = vld [vmem:[%s2374_s7 + $0x180] sm:$0xff]  ;;  %v399_v5 = vld [vmem:[%s2374_s7 + $0xc8] sm:$0xff] }
  0x2a   :  { %1189 = vmatpush1.bf16.msra.mxu0 %v1512_v60  ;;  %v426_v10 = vld [vmem:[%s2374_s7 + $0x1a0] sm:$0xff]  ;;  %v383_v60 = vld [vmem:[%s2374_s7 + $0x48] sm:$0xff] }
  0x2b   :  { %1190 = vmatprep.subr.bf16.mxu0 %v1521_v63  ;;  %v1545_v11 = vcombine.high %v422_v9, %v426_v10  ;;  %v1544_v12 = vcombine.low %v422_v9, %v426_v10  ;;  %v430_v13 = vld [vmem:[%s2374_s7 + $0x1c0] sm:$0xff]  ;;  %v403_v6 = vld [vmem:[%s2374_s7 + $0xe8] sm:$0xff]  ;;  %v1531_v9 = vcombine.high %v407_v47, %v411_v50 }
  0x2c   :  { %350 = vmatpush1.bf16.msra.mxu1 %v1670_v34  ;;  %v434_v14 = vld [vmem:[%s2374_s7 + $0x1e0] sm:$0xff]  ;;  %v415_v10 = vld [vmem:[%s2374_s7 + $0x148] sm:$0xff] }
  0x2d   :  { %351 = vmatprep.subr.bf16.mxu1 %v1671_v35  ;;  %v1553_v15 = vcombine.high %v430_v13, %v434_v14  ;;  %v1552_v16 = vcombine.low %v430_v13, %v434_v14  ;;  %v438_v17 = vld [vmem:[%s2374_s7 + $0x200] sm:$0xff]  ;;  %v423_v14 = vld [vmem:[%s2374_s7 + $0x188] sm:$0xff] }
  0x2e   :  { %1191 = vmatpush1.bf16.msra.mxu0 %v1520_v0  ;;  %v442_v18 = vld [vmem:[%s2374_s7 + $0x220] sm:$0xff]  ;;  %v1507_v0 = vcombine.high %v383_v60, %v387_v61 }
  0x2f   :  { %1192 = vmatprep.subr.bf16.mxu0 %v1529_v3  ;;  %v1561_v19 = vcombine.high %v438_v17, %v442_v18  ;;  %v1560_v20 = vcombine.low %v438_v17, %v442_v18  ;;  %v446_v21 = vld [vmem:[%s2374_s7 + $0x240] sm:$0xff]  ;;  %v1506_v3 = vcombine.low %v383_v60, %v387_v61  ;;  %v431_v18 = vld [vmem:[%s2374_s7 + $0x1c8] sm:$0xff] }
  0x30   :  { %352 = vmatpush1.bf16.msra.mxu1 %v1673_v36  ;;  %v450_v23 = vld [vmem:[%s2374_s7 + $0x260] sm:$0xff] }
  0x31   :  { %353 = vmatprep.subr.bf16.mxu1 %v1674_v37  ;;  %v1569_v24 = vcombine.high %v446_v21, %v450_v23  ;;  %v1568_v25 = vcombine.low %v446_v21, %v450_v23  ;;  %v454_v26 = vld [vmem:[%s2374_s7 + $0x280] sm:$0xff]  ;;  %v439_v23 = vld [vmem:[%s2374_s7 + $0x208] sm:$0xff] }
  0x32   :  { %1193 = vmatpush1.bf16.msra.mxu0 %v1528_v4  ;;  %v458_v27 = vld [vmem:[%s2374_s7 + $0x2a0] sm:$0xff]  ;;  %v1515_v4 = vcombine.high %v391_v1, %v395_v2 }
  0x33   :  { %1194 = vmatprep.subr.bf16.mxu0 %v1537_v7  ;;  %v1577_v28 = vcombine.high %v454_v26, %v458_v27  ;;  %v1576_v29 = vcombine.low %v454_v26, %v458_v27  ;;  %v462_v30 = vld [vmem:[%s2374_s7 + $0x2c0] sm:$0xff]  ;;  %v1514_v7 = vcombine.low %v391_v1, %v395_v2  ;;  %v447_v27 = vld [vmem:[%s2374_s7 + $0x248] sm:$0xff] }
  0x34   :  { %354 = vmatpush1.bf16.msra.mxu1 %v1676_v38  ;;  %v466_v31 = vld [vmem:[%s2374_s7 + $0x2e0] sm:$0xff]  ;;  %v499_v2 = vld [vmem:[%s2374_s7 + $0x3e8] sm:$0xff] }
  0x35   :  { %355 = vmatprep.subr.bf16.mxu1 %v1677_v39  ;;  %v1585_v32 = vcombine.high %v462_v30, %v466_v31  ;;  %v1584_v33 = vcombine.low %v462_v30, %v466_v31  ;;  %v470_v34 = vld [vmem:[%s2374_s7 + $0x300] sm:$0xff]  ;;  %v455_v31 = vld [vmem:[%s2374_s7 + $0x288] sm:$0xff] }
  0x36   :  { %1195 = vmatpush1.bf16.msra.mxu0 %v1536_v8  ;;  %v474_v35 = vld [vmem:[%s2374_s7 + $0x320] sm:$0xff]  ;;  %v1523_v8 = vcombine.high %v399_v5, %v403_v6 }
  0x37   :  { %1196 = vmatprep.subr.bf16.mxu0 %v1545_v11  ;;  %v1593_v36 = vcombine.high %v470_v34, %v474_v35  ;;  %v1592_v37 = vcombine.low %v470_v34, %v474_v35  ;;  %v478_v38 = vld [vmem:[%s2374_s7 + $0x340] sm:$0xff]  ;;  %v419_v11 = vld [vmem:[%s2374_s7 + $0x168] sm:$0xff] }
  0x38   :  { %356 = vmatpush1.bf16.msra.mxu1 %v1679_v40  ;;  %v482_v39 = vld [vmem:[%s2374_s7 + $0x360] sm:$0xff]  ;;  %v1539_v13 = vcombine.high %v415_v10, %v419_v11  ;;  %v463_v35 = vld [vmem:[%s2374_s7 + $0x2c8] sm:$0xff] }
  0x39   :  { %357 = vmatprep.subr.bf16.mxu1 %v1680_v41  ;;  %v1601_v40 = vcombine.high %v478_v38, %v482_v39  ;;  %v1600_v41 = vcombine.low %v478_v38, %v482_v39  ;;  %v49_v45 = vld [vmem:[%s2371_s4] sm:$0x3]  ;;  %v471_v39 = vld [vmem:[%s2374_s7 + $0x308] sm:$0xff] }
  0x3a   :  { %1197 = vmatpush1.bf16.msra.mxu0 %v1544_v12  ;;  %v1530_v12 = vcombine.low %v407_v47, %v411_v50  ;;  %v381_v50 = vld [vmem:[%s2374_s7 + $0x38] sm:$0xff] }
  0x3b   :  { %1198 = vmatprep.subr.bf16.mxu0 %v1553_v15  ;;  %v427_v15 = vld [vmem:[%s2374_s7 + $0x1a8] sm:$0xff] }
  0x3c   :  { %358 = vmatpush1.bf16.msra.mxu1 %v1682_v42  ;;  %v51_v42 = vlaneseq  ;;  %v1547_v17 = vcombine.high %v423_v14, %v427_v15 }
  0x3d   :  { %359 = vmatprep.subr.bf16.mxu1 %v1683_v43 }
  0x3e   :  { %1199 = vmatpush1.bf16.msra.mxu0 %v1552_v16  ;;  %v2015_v43 = vshrl.u32 %v51_v42, 7  ;;  %v1538_v16 = vcombine.low %v415_v10, %v419_v11  ;;  %v157_v11 = vld [vmem:[%s2373_s6] sm:$0x3] }
  0x3f   :  { %1200 = vmatprep.subr.bf16.mxu0 %v1561_v19  ;;  %v435_v19 = vld [vmem:[%s2374_s7 + $0x1e8] sm:$0xff] }
  0x40   :  { %360 = vmatpush1.bf16.msra.mxu1 %v1685_v44  ;;  %v2018_v44 = vsub.s32 0, %v2015_v43  ;;  %v2024_v46 = vsub.s32 1, %v2015_v43  ;;  %v1555_v21 = vcombine.high %v431_v18, %v435_v19 }
  0x41   :  { %1225 = vmatprep.subr.bf16.mxu1 %v1499_v54 }
  0x42   :  { %1201 = vmatpush1.bf16.msra.mxu0 %v1560_v20  ;;  %v54_v48 = vrot.slane %v49_v45, %v2018_v44  ;;  %v58_v49 = vrot.slane %v49_v45, %v2024_v46  ;;  %v1546_v20 = vcombine.low %v423_v14, %v427_v15  ;;  %v479_v45 = vld [vmem:[%s2374_s7 + $0x348] sm:$0xff] }
  0x43   :  { %1202 = vmatprep.subr.bf16.mxu0 %v1569_v24  ;;  %v443_v24 = vld [vmem:[%s2374_s7 + $0x228] sm:$0xff] }
  0x44   :  { %v1563_v26 = vcombine.high %v439_v23, %v443_v24 }
  0x46   :  { %1203 = vmatpush1.bf16.msra.mxu0 %v1568_v25  ;;  %v1554_v25 = vcombine.low %v431_v18, %v435_v19 }
  0x47   :  { %1204 = vmatprep.subr.bf16.mxu0 %v1577_v28  ;;  %v451_v28 = vld [vmem:[%s2374_s7 + $0x268] sm:$0xff] }
  0x48   :  { %v1571_v30 = vcombine.high %v447_v27, %v451_v28 }
  0x4a   :  { %1205 = vmatpush1.bf16.msra.mxu0 %v1576_v29  ;;  %v1562_v29 = vcombine.low %v439_v23, %v443_v24  ;;  %v384_v23 = vld [vmem:[%s2374_s7 + $0x50] sm:$0xff] }
  0x4b   :  { %1206 = vmatprep.subr.bf16.mxu0 %v1585_v32  ;;  %v459_v32 = vld [vmem:[%s2374_s7 + $0x2a8] sm:$0xff]  ;;  %v388_v24 = vld [vmem:[%s2374_s7 + $0x70] sm:$0xff] }
  0x4c   :  { %v1579_v34 = vcombine.high %v455_v31, %v459_v32 }
  0x4e   :  { %1207 = vmatpush1.bf16.msra.mxu0 %v1584_v33  ;;  %v1570_v33 = vcombine.low %v447_v27, %v451_v28 }
  0x4f   :  { %1208 = vmatprep.subr.bf16.mxu0 %v1593_v36  ;;  %v467_v36 = vld [vmem:[%s2374_s7 + $0x2e8] sm:$0xff] }
  0x50   :  { %v1587_v38 = vcombine.high %v463_v35, %v467_v36 }
  0x52   :  { %1209 = vmatpush1.bf16.msra.mxu0 %v1592_v37  ;;  %v1578_v37 = vcombine.low %v455_v31, %v459_v32  ;;  %v396_v32 = vld [vmem:[%s2374_s7 + $0xb0] sm:$0xff] }
  0x53   :  { %1210 = vmatprep.subr.bf16.mxu0 %v1601_v40  ;;  %v475_v40 = vld [vmem:[%s2374_s7 + $0x328] sm:$0xff] }
  0x54   :  { %v1595_v42 = vcombine.high %v471_v39, %v475_v40 }
  0x56   :  { %1211 = vmatpush1.bf16.msra.mxu0 %v1600_v41  ;;  %v1586_v41 = vcombine.low %v463_v35, %v467_v36  ;;  %v1508_v35 = vcombine.low %v384_v23, %v388_v24 }
  0xeb   :  { %v114_v51 = vpop.f32.mrb[0].mxu0 }
  0xec   :  { %v115_v52 = vadd.f32 %v114_v51, %v54_v48  ;;  %v116_v54 = vpop.f32.mrb[1].mxu0  ;;  %v483_v48 = vld [vmem:[%s2374_s7 + $0x368] sm:$0xff] }
  0xed   :  { %v117_v55 = vadd.f32 %v116_v54, %v58_v49  ;;  %v118_v56 = vpop.f32.mrb[2].mxu0  ;;  %v1594_v49 = vcombine.low %v471_v39, %v475_v40  ;;  %v1603_v51 = vcombine.high %v479_v45, %v483_v48  ;;  %v486_v54 = vld [vmem:[%s2374_s7 + $0x380] sm:$0xff]  ;;  %v400_v39 = vld [vmem:[%s2374_s7 + $0xd0] sm:$0xff] }
  0xee   :  { %v121_v57 = vmax.f32 %v115_v52, 0.0  ;;  %v119_v58 = vpop.f32.mrb[3].mxu0  ;;  %v1602_v52 = vcombine.low %v479_v45, %v483_v48  ;;  %v487_v56 = vld [vmem:[%s2374_s7 + $0x388] sm:$0xff]  ;;  %v404_v40 = vld [vmem:[%s2374_s7 + $0xf0] sm:$0xff] }
  0xef   :  { %v122_v59 = vmax.f32 %v117_v55, 0.0  ;;  %v490_v55 = vld [vmem:[%s2374_s7 + $0x3a0] sm:$0xff]  ;;  %v491_v58 = vld [vmem:[%s2374_s7 + $0x3a8] sm:$0xff] }
  0xf0   :  { %v123_v63 = vpack.c.bf16 %v121_v57, %v121_v57  ;;  %v1609_v57 = vcombine.high %v486_v54, %v490_v55  ;;  %v1610_v60 = vcombine.low %v487_v56, %v491_v58  ;;  %v1611_v61 = vcombine.high %v487_v56, %v491_v58  ;;  %v413_v56 = vld [vmem:[%s2374_s7 + $0x138] sm:$0xff] }
  0xf1   :  { %v124_v62 = vpack.c.bf16 %v122_v59, %v122_v59  ;;  %v1608_v59 = vcombine.low %v486_v54, %v490_v55  ;;  %v412_v54 = vld [vmem:[%s2374_s7 + $0x130] sm:$0xff]  ;;  %v409_v55 = vld [vmem:[%s2374_s7 + $0x118] sm:$0xff] }
  0xf2   :  { %1212 = vmatprep.subr.bf16.mxu0 %v1609_v57  ;;  %v1524_v57 = vcombine.low %v400_v39, %v404_v40 }
  0xf3   :  { %361 = vmatprep.mubr.bf16.mxu1 %v124_v62  ;;  %1213 = vmatpush1.bf16.msra.mxu0 %v1608_v59  ;;  %v494_v62 = vld [vmem:[%s2374_s7 + $0x3c0] sm:$0xff] }
  0xf4   :  { %362 = vmatmul.mubr.bf16.vlgmr.msra.gmra.mrb[0].mxu1 %v123_v63  ;;  %v498_v63 = vld [vmem:[%s2374_s7 + $0x3e0] sm:$0xff] }
  0xf5   :  { %1226 = vmatpush1.bf16.msra.mxu1 %v1498_v53  ;;  %v1522_v53 = vcombine.low %v399_v5, %v403_v6  ;;  %v1617_v1 = vcombine.high %v494_v62, %v498_v63  ;;  %v376_v6 = vld [vmem:[%s2374_s7 + $0x10] sm:$0xff] }
  0xf6   :  { %1227 = vmatprep.subr.bf16.mxu1 %v1507_v0  ;;  %v495_v0 = vld [vmem:[%s2374_s7 + $0x3c8] sm:$0xff] }
  0xf7   :  { %v1619_v5 = vcombine.high %v495_v0, %v499_v2  ;;  %1214 = vmatprep.subr.bf16.mxu0 %v1617_v1 }
  0xf9   :  { %1228 = vmatpush1.bf16.msra.mxu1 %v1506_v3  ;;  %v1616_v3 = vcombine.low %v494_v62, %v498_v63  ;;  %v420_v62 = vld [vmem:[%s2374_s7 + $0x170] sm:$0xff]  ;;  %v417_v63 = vld [vmem:[%s2374_s7 + $0x158] sm:$0xff] }
  0xfa   :  { %1229 = vmatprep.subr.bf16.mxu1 %v1515_v4  ;;  %v1618_v4 = vcombine.low %v495_v0, %v499_v2  ;;  %v421_v0 = vld [vmem:[%s2374_s7 + $0x178] sm:$0xff]  ;;  %v1534_v2 = vcombine.low %v409_v55, %v413_v56 }
  0xfb   :  { %1215 = vmatpush1.bf16.msra.mxu0 %v1616_v3 }
  0xfd   :  { %1230 = vmatpush1.bf16.msra.mxu1 %v1514_v7  ;;  %v380_v7 = vld [vmem:[%s2374_s7 + $0x30] sm:$0xff] }
  0xfe   :  { %1231 = vmatprep.subr.bf16.mxu1 %v1523_v8  ;;  %v377_v8 = vld [vmem:[%s2374_s7 + $0x18] sm:$0xff]  ;;  %v1501_v47 = vcombine.high %v376_v6, %v380_v7 }
  0xff   :  { %v1503_v10 = vcombine.high %v377_v8, %v381_v50 }
 0x100   :  { %1266 = vmatprep.subr.bf16.mxu0 %v1501_v47 }
 0x101   :  { %1232 = vmatpush1.bf16.msra.mxu1 %v1522_v53  ;;  %v1500_v53 = vcombine.low %v376_v6, %v380_v7  ;;  %v428_v6 = vld [vmem:[%s2374_s7 + $0x1b0] sm:$0xff]  ;;  %v425_v7 = vld [vmem:[%s2374_s7 + $0x198] sm:$0xff] }
 0x102   :  { %1233 = vmatprep.subr.bf16.mxu1 %v1531_v9  ;;  %v1502_v9 = vcombine.low %v377_v8, %v381_v50  ;;  %v429_v8 = vld [vmem:[%s2374_s7 + $0x1b8] sm:$0xff]  ;;  %v1542_v50 = vcombine.low %v417_v63, %v421_v0 }
 0x105   :  { %1234 = vmatpush1.bf16.msra.mxu1 %v1530_v12  ;;  %v162_v12 = vrot.slane %v157_v11, %v2018_v44 }
 0x106   :  { %1235 = vmatprep.subr.bf16.mxu1 %v1539_v13  ;;  %v166_v13 = vrot.slane %v157_v11, %v2024_v46  ;;  %v436_v11 = vld [vmem:[%s2374_s7 + $0x1f0] sm:$0xff] }
 0x109   :  { %1236 = vmatpush1.bf16.msra.mxu1 %v1538_v16 }
 0x10a   :  { %1237 = vmatprep.subr.bf16.mxu1 %v1547_v17 }
 0x10d   :  { %1238 = vmatpush1.bf16.msra.mxu1 %v1546_v20 }
 0x10e   :  { %1239 = vmatprep.subr.bf16.mxu1 %v1555_v21 }
 0x111   :  { %1240 = vmatpush1.bf16.msra.mxu1 %v1554_v25  ;;  %v385_v25 = vld [vmem:[%s2374_s7 + $0x58] sm:$0xff] }
 0x112   :  { %1241 = vmatprep.subr.bf16.mxu1 %v1563_v26  ;;  %v389_v26 = vld [vmem:[%s2374_s7 + $0x78] sm:$0xff] }
 0x113   :  { %v1511_v31 = vcombine.high %v385_v25, %v389_v26  ;;  %v1510_v36 = vcombine.low %v385_v25, %v389_v26 }
 0x115   :  { %1242 = vmatpush1.bf16.msra.mxu1 %v1562_v29  ;;  %v392_v29 = vld [vmem:[%s2374_s7 + $0x90] sm:$0xff] }
 0x116   :  { %1243 = vmatprep.subr.bf16.mxu1 %v1571_v30  ;;  %v1509_v30 = vcombine.high %v384_v23, %v388_v24  ;;  %v1516_v45 = vcombine.low %v392_v29, %v396_v32 }
 0x119   :  { %1244 = vmatpush1.bf16.msra.mxu1 %v1570_v33  ;;  %v393_v33 = vld [vmem:[%s2374_s7 + $0x98] sm:$0xff] }
 0x11a   :  { %1245 = vmatprep.subr.bf16.mxu1 %v1579_v34  ;;  %v397_v34 = vld [vmem:[%s2374_s7 + $0xb8] sm:$0xff] }
 0x11b   :  { %v1518_v48 = vcombine.low %v393_v33, %v397_v34 }
 0x11d   :  { %1246 = vmatpush1.bf16.msra.mxu1 %v1578_v37  ;;  %v1517_v37 = vcombine.high %v392_v29, %v396_v32  ;;  %v452_v29 = vld [vmem:[%s2374_s7 + $0x270] sm:$0xff] }
 0x11e   :  { %1247 = vmatprep.subr.bf16.mxu1 %v1587_v38  ;;  %v1519_v38 = vcombine.high %v393_v33, %v397_v34 }
 0x121   :  { %1248 = vmatpush1.bf16.msra.mxu1 %v1586_v41  ;;  %v401_v41 = vld [vmem:[%s2374_s7 + $0xd8] sm:$0xff] }
 0x122   :  { %1249 = vmatprep.subr.bf16.mxu1 %v1595_v42  ;;  %v405_v42 = vld [vmem:[%s2374_s7 + $0xf8] sm:$0xff] }
 0x123   :  { %v1526_v58 = vcombine.low %v401_v41, %v405_v42 }
 0x125   :  { %1250 = vmatpush1.bf16.msra.mxu1 %v1594_v49  ;;  %v1525_v49 = vcombine.high %v400_v39, %v404_v40  ;;  %v461_v39 = vld [vmem:[%s2374_s7 + $0x2b8] sm:$0xff] }
 0x126   :  { %1251 = vmatprep.subr.bf16.mxu1 %v1603_v51  ;;  %v1527_v51 = vcombine.high %v401_v41, %v405_v42 }
 0x129   :  { %1252 = vmatpush1.bf16.msra.mxu1 %v1602_v52  ;;  %v408_v52 = vld [vmem:[%s2374_s7 + $0x110] sm:$0xff] }
 0x12a   :  { %1253 = vmatprep.subr.bf16.mxu1 %v1611_v61  ;;  %v1533_v59 = vcombine.high %v408_v52, %v412_v54  ;;  %v416_v61 = vld [vmem:[%s2374_s7 + $0x150] sm:$0xff]  ;;  %v1532_v1 = vcombine.low %v408_v52, %v412_v54  ;;  %v469_v52 = vld [vmem:[%s2374_s7 + $0x2f8] sm:$0xff] }
 0x12b   :  { %v1541_v3 = vcombine.high %v416_v61, %v420_v62  ;;  %v1540_v47 = vcombine.low %v416_v61, %v420_v62  ;;  %v477_v61 = vld [vmem:[%s2374_s7 + $0x338] sm:$0xff] }
 0x12d   :  { %1254 = vmatpush1.bf16.msra.mxu1 %v1610_v60  ;;  %v1535_v60 = vcombine.high %v409_v55, %v413_v56 }
 0x12e   :  { %1255 = vmatprep.subr.bf16.mxu1 %v1619_v5  ;;  %v424_v5 = vld [vmem:[%s2374_s7 + $0x190] sm:$0xff] }
 0x131   :  { %1256 = vmatpush1.bf16.msra.mxu1 %v1618_v4  ;;  %v1543_v4 = vcombine.high %v417_v63, %v421_v0 }
 0x132   :  { %1307 = vmatprep.subr.bf16.mxu1 %v1503_v10  ;;  %v432_v10 = vld [vmem:[%s2374_s7 + $0x1d0] sm:$0xff] }
 0x133   :  { %v1556_v23 = vcombine.low %v432_v10, %v436_v11 }
 0x1c7   :  { %v363_v14 = vpop.f32.mrb[0].mxu1 }
 0x1c8   :  { %v364_v15 = vadd.f32 %v363_v14, %v162_v12  ;;  %v365_v16 = vpop.f32.mrb[1].mxu1  ;;  %v433_v12 = vld [vmem:[%s2374_s7 + $0x1d8] sm:$0xff]  ;;  %v1548_v14 = vcombine.low %v424_v5, %v428_v6 }
 0x1c9   :  { %v366_v17 = vadd.f32 %v365_v16, %v166_v13  ;;  %v367_v18 = vpop.f32.mrb[2].mxu1  ;;  %v437_v13 = vld [vmem:[%s2374_s7 + $0x1f8] sm:$0xff]  ;;  %v1557_v16 = vcombine.high %v432_v10, %v436_v11 }
 0x1ca   :  { %v370_v19 = vmax.f32 %v364_v15, 0.0  ;;  %v368_v20 = vpop.f32.mrb[3].mxu1  ;;  %v1550_v15 = vcombine.low %v425_v7, %v429_v8  ;;  %v440_v18 = vld [vmem:[%s2374_s7 + $0x210] sm:$0xff]  ;;  %v1558_v24 = vcombine.low %v433_v12, %v437_v13  ;;  %v493_v10 = vld [vmem:[%s2374_s7 + $0x3b8] sm:$0xff] }
 0x1cb   :  { %v371_v21 = vmax.f32 %v366_v17, 0.0  ;;  %v1559_v17 = vcombine.high %v433_v12, %v437_v13  ;;  %v441_v20 = vld [vmem:[%s2374_s7 + $0x218] sm:$0xff] }
 0x1cc   :  { %v2162_v28 = vpack.c.bf16 %v370_v19, %v370_v19  ;;  %v444_v19 = vld [vmem:[%s2374_s7 + $0x230] sm:$0xff] }
 0x1cd   :  { %v373_v27 = vpack.c.bf16 %v371_v21, %v371_v21  ;;  %v445_v21 = vld [vmem:[%s2374_s7 + $0x238] sm:$0xff]  ;;  %v1565_v25 = vcombine.high %v440_v18, %v444_v19  ;;  %v1564_v32 = vcombine.low %v440_v18, %v444_v19 }
 0x1ce   :  { %v1567_v26 = vcombine.high %v441_v20, %v445_v21  ;;  %v1566_v33 = vcombine.low %v441_v20, %v445_v21  ;;  %v501_v18 = vld [vmem:[%s2374_s7 + $0x3f8] sm:$0xff] }
 0x1cf   :  { %1216 = vmatprep.mubr.bf16.mxu0 %v373_v27  ;;  %1257 = vmatprep.mubr.bf16.mxu1 %v373_v27 }
 0x1d0   :  { %1217 = vmatmul.mubr.bf16.vlgmr.msra.gmra.mrb[4].mxu0 %v2162_v28  ;;  %1258 = vmatmul.mubr.bf16.vlgmr.msra.gmra.mrb[4].mxu1 %v2162_v28 }
 0x1d1   :  { %1267 = vmatpush1.bf16.msra.mxu0 %v1500_v53  ;;  %1308 = vmatpush1.bf16.msra.mxu1 %v1502_v9  ;;  %v1549_v53 = vcombine.high %v424_v5, %v428_v6  ;;  %v1551_v9 = vcombine.high %v425_v7, %v429_v8  ;;  %v485_v5 = vld [vmem:[%s2374_s7 + $0x378] sm:$0xff] }
 0x1d2   :  { %1298 = vmatprep.mubr.bf16.mxu0 %v373_v27  ;;  %1339 = vmatprep.mubr.bf16.mxu1 %v373_v27  ;;  %v448_v27 = vld [vmem:[%s2374_s7 + $0x250] sm:$0xff] }
 0x1d3   :  { %1268 = vmatprep.subr.bf16.mxu0 %v1509_v30  ;;  %1309 = vmatprep.subr.bf16.mxu1 %v1511_v31  ;;  %v449_v30 = vld [vmem:[%s2374_s7 + $0x258] sm:$0xff]  ;;  %v1573_v34 = vcombine.high %v448_v27, %v452_v29  ;;  %v1572_v40 = vcombine.low %v448_v27, %v452_v29 }
 0x1d4   :  { %v453_v31 = vld [vmem:[%s2374_s7 + $0x278] sm:$0xff] }
 0x1d5   :  { %1269 = vmatpush1.bf16.msra.mxu0 %v1508_v35  ;;  %1310 = vmatpush1.bf16.msra.mxu1 %v1510_v36  ;;  %v1575_v35 = vcombine.high %v449_v30, %v453_v31  ;;  %v456_v36 = vld [vmem:[%s2374_s7 + $0x290] sm:$0xff]  ;;  %v1574_v41 = vcombine.low %v449_v30, %v453_v31 }
 0x1d6   :  { %1270 = vmatprep.subr.bf16.mxu0 %v1517_v37  ;;  %1311 = vmatprep.subr.bf16.mxu1 %v1519_v38  ;;  %v460_v37 = vld [vmem:[%s2374_s7 + $0x2b0] sm:$0xff]  ;;  %v457_v38 = vld [vmem:[%s2374_s7 + $0x298] sm:$0xff] }
 0x1d7   :  { %v1581_v42 = vcombine.high %v456_v36, %v460_v37  ;;  %v1580_v54 = vcombine.low %v456_v36, %v460_v37  ;;  %v1582_v55 = vcombine.low %v457_v38, %v461_v39 }
 0x1d9   :  { %1271 = vmatpush1.bf16.msra.mxu0 %v1516_v45  ;;  %1312 = vmatpush1.bf16.msra.mxu1 %v1518_v48  ;;  %v1583_v45 = vcombine.high %v457_v38, %v461_v39  ;;  %v464_v48 = vld [vmem:[%s2374_s7 + $0x2d0] sm:$0xff] }
 0x1da   :  { %1272 = vmatprep.subr.bf16.mxu0 %v1525_v49  ;;  %1313 = vmatprep.subr.bf16.mxu1 %v1527_v51  ;;  %v468_v49 = vld [vmem:[%s2374_s7 + $0x2f0] sm:$0xff]  ;;  %v465_v51 = vld [vmem:[%s2374_s7 + $0x2d8] sm:$0xff] }
 0x1db   :  { %v1589_v56 = vcombine.high %v464_v48, %v468_v49  ;;  %v1588_v62 = vcombine.low %v464_v48, %v468_v49  ;;  %v1590_v63 = vcombine.low %v465_v51, %v469_v52 }
 0x1dd   :  { %1273 = vmatpush1.bf16.msra.mxu0 %v1524_v57  ;;  %1314 = vmatpush1.bf16.msra.mxu1 %v1526_v58  ;;  %v1591_v57 = vcombine.high %v465_v51, %v469_v52  ;;  %v472_v58 = vld [vmem:[%s2374_s7 + $0x310] sm:$0xff] }
 0x1de   :  { %1274 = vmatprep.subr.bf16.mxu0 %v1533_v59  ;;  %1315 = vmatprep.subr.bf16.mxu1 %v1535_v60  ;;  %v476_v59 = vld [vmem:[%s2374_s7 + $0x330] sm:$0xff]  ;;  %v473_v60 = vld [vmem:[%s2374_s7 + $0x318] sm:$0xff] }
 0x1df   :  { %v1597_v0 = vcombine.high %v472_v58, %v476_v59  ;;  %v1596_v6 = vcombine.low %v472_v58, %v476_v59  ;;  %v1598_v7 = vcombine.low %v473_v60, %v477_v61 }
 0x1e1   :  { %1275 = vmatpush1.bf16.msra.mxu0 %v1532_v1  ;;  %1316 = vmatpush1.bf16.msra.mxu1 %v1534_v2  ;;  %v1599_v1 = vcombine.high %v473_v60, %v477_v61  ;;  %v480_v2 = vld [vmem:[%s2374_s7 + $0x350] sm:$0xff] }
 0x1e2   :  { %1276 = vmatprep.subr.bf16.mxu0 %v1541_v3  ;;  %1317 = vmatprep.subr.bf16.mxu1 %v1543_v4  ;;  %v484_v3 = vld [vmem:[%s2374_s7 + $0x370] sm:$0xff]  ;;  %v481_v4 = vld [vmem:[%s2374_s7 + $0x358] sm:$0xff] }
 0x1e3   :  { %v1605_v8 = vcombine.high %v480_v2, %v484_v3  ;;  %v1604_v11 = vcombine.low %v480_v2, %v484_v3  ;;  %v1606_v12 = vcombine.low %v481_v4, %v485_v5 }
 0x1e5   :  { %1277 = vmatpush1.bf16.msra.mxu0 %v1540_v47  ;;  %1318 = vmatpush1.bf16.msra.mxu1 %v1542_v50  ;;  %v1607_v47 = vcombine.high %v481_v4, %v485_v5  ;;  %v488_v50 = vld [vmem:[%s2374_s7 + $0x390] sm:$0xff] }
 0x1e6   :  { %1278 = vmatprep.subr.bf16.mxu0 %v1549_v53  ;;  %1319 = vmatprep.subr.bf16.mxu1 %v1551_v9  ;;  %v492_v53 = vld [vmem:[%s2374_s7 + $0x3b0] sm:$0xff]  ;;  %v489_v9 = vld [vmem:[%s2374_s7 + $0x398] sm:$0xff] }
 0x1e7   :  { %v1613_v13 = vcombine.high %v488_v50, %v492_v53  ;;  %v1612_v19 = vcombine.low %v488_v50, %v492_v53  ;;  %v1614_v20 = vcombine.low %v489_v9, %v493_v10 }
 0x1e9   :  { %1279 = vmatpush1.bf16.msra.mxu0 %v1548_v14  ;;  %1320 = vmatpush1.bf16.msra.mxu1 %v1550_v15  ;;  %v1615_v14 = vcombine.high %v489_v9, %v493_v10  ;;  %v496_v15 = vld [vmem:[%s2374_s7 + $0x3d0] sm:$0xff] }
 0x1ea   :  { %1280 = vmatprep.subr.bf16.mxu0 %v1557_v16  ;;  %1321 = vmatprep.subr.bf16.mxu1 %v1559_v17  ;;  %v500_v16 = vld [vmem:[%s2374_s7 + $0x3f0] sm:$0xff]  ;;  %v497_v17 = vld [vmem:[%s2374_s7 + $0x3d8] sm:$0xff]  ;;  %s1745_s7 = smov [#allocation2]  }
 0x1eb   :  { %v1621_v21 = vcombine.high %v496_v15, %v500_v16  ;;  %s1450_s14 = sshll.u32 %s1745_s7, 4  ;;  %s1451_s14 = int_to_ptr.vmem [resolvable:$true] %s1450_s14 }
 0x1ec   :  { %s1720_s15 = scalar_lea.vmem %s1451_s14, 32  ;;  %p1725_p1 = scmp.lt.s32.totalorder %s1451_s14, %s1451_s14 }
 0x1ed   :  { %1281 = vmatpush1.bf16.msra.mxu0 %v1556_v23  ;;  %1322 = vmatpush1.bf16.msra.mxu1 %v1558_v24  ;;  %v1623_v23 = vcombine.high %v497_v17, %v501_v18  ;;  %v1620_v24 = vcombine.low %v496_v15, %v500_v16  ;;  %p1721_p0 = scmp.ne.s32.totalorder %s1451_s14, %s1720_s15  ;;  %p1726_p2 = scmp.lt.s32.totalorder %s1720_s15, %s1720_s15 }
 0x1ee   :  { %1282 = vmatprep.subr.bf16.mxu0 %v1565_v25  ;;  %1323 = vmatprep.subr.bf16.mxu1 %v1567_v26  ;;  %v1622_v25 = vcombine.low %v497_v17, %v501_v18 }
 0x1ef   :  { %p1727_p3 = por %p1726_p2, %p1725_p1 }
 0x1f1   :  { %1283 = vmatpush1.bf16.msra.mxu0 %v1564_v32  ;;  %1324 = vmatpush1.bf16.msra.mxu1 %v1566_v33  ;;  %p1728_p4 = pnand %p1727_p3, %p1721_p0 }
 0x1f2   :  { %1284 = vmatprep.subr.bf16.mxu0 %v1573_v34  ;;  %1325 = vmatprep.subr.bf16.mxu1 %v1575_v35 }
 0x1f5   :  { %1285 = vmatpush1.bf16.msra.mxu0 %v1572_v40  ;;  %1326 = vmatpush1.bf16.msra.mxu1 %v1574_v41 }
 0x1f6   :  { %1286 = vmatprep.subr.bf16.mxu0 %v1581_v42  ;;  %1327 = vmatprep.subr.bf16.mxu1 %v1583_v45 }
 0x1f9   :  { %1287 = vmatpush1.bf16.msra.mxu0 %v1580_v54  ;;  %1328 = vmatpush1.bf16.msra.mxu1 %v1582_v55 }
 0x1fa   :  { %1288 = vmatprep.subr.bf16.mxu0 %v1589_v56  ;;  %1329 = vmatprep.subr.bf16.mxu1 %v1591_v57 }
 0x1fd   :  { %1289 = vmatpush1.bf16.msra.mxu0 %v1588_v62  ;;  %1330 = vmatpush1.bf16.msra.mxu1 %v1590_v63 }
 0x1fe   :  { %1290 = vmatprep.subr.bf16.mxu0 %v1597_v0  ;;  %1331 = vmatprep.subr.bf16.mxu1 %v1599_v1 }
 0x201   :  { %1291 = vmatpush1.bf16.msra.mxu0 %v1596_v6  ;;  %1332 = vmatpush1.bf16.msra.mxu1 %v1598_v7 }
 0x202   :  { %1292 = vmatprep.subr.bf16.mxu0 %v1605_v8  ;;  %1333 = vmatprep.subr.bf16.mxu1 %v1607_v47 }
 0x205   :  { %1293 = vmatpush1.bf16.msra.mxu0 %v1604_v11  ;;  %1334 = vmatpush1.bf16.msra.mxu1 %v1606_v12 }
 0x206   :  { %1294 = vmatprep.subr.bf16.mxu0 %v1613_v13  ;;  %1335 = vmatprep.subr.bf16.mxu1 %v1615_v14 }
 0x209   :  { %1295 = vmatpush1.bf16.msra.mxu0 %v1612_v19  ;;  %1336 = vmatpush1.bf16.msra.mxu1 %v1614_v20 }
 0x20a   :  { %1296 = vmatprep.subr.bf16.mxu0 %v1621_v21  ;;  %1337 = vmatprep.subr.bf16.mxu1 %v1623_v23 }
 0x20d   :  { %1297 = vmatpush1.bf16.msra.mxu0 %v1620_v24  ;;  %1338 = vmatpush1.bf16.msra.mxu1 %v1622_v25 }
 0x210   :  { %1299 = vmatmul.mubr.bf16.vlgmr.msra.gmra.mrb[8].mxu0 %v2162_v28  ;;  %1340 = vmatmul.mubr.bf16.vlgmr.msra.gmra.mrb[8].mxu1 %v2162_v28 }
 0x211   :  { %1731 = shalt.err (!%p1728_p4)
}
 0x212   :  { %s1732_s18 = scalar_lea.hbm %s2377_s10, 32 }
 0x213   :  { %p1733_p5 = scmp.ne.s32.totalorder %s2377_s10, %s1732_s18  ;;  %p1736_p6 = scmp.lt.u32.totalorder %s1732_s18, %s2377_s10 }
 0x215   :  { %p1738_p7 = pnand %p1736_p6, %p1733_p5 }
 0x217   :  { %1741 = shalt.err (!%p1738_p7)
}
 0x218   :  { %1453 = dma.vmem_to_hbm [thread:$0]  %s1451_s14, 32, %s2377_s10, [#allocation3]   ;;  %v514_v22 = vsub.s32 2, %v2015_v43  ;;  %v502_v28 = vld [vmem:[%s2375_s8] sm:$0xff]  ;;  %v518_v26 = vsub.s32 3, %v2015_v43  ;;  %v522_v47 = vsub.s32 4, %v2015_v43 }
 0x219   :  { %v507_v27 = vrot.slane %v502_v28, %v2018_v44  ;;  %v511_v30 = vrot.slane %v502_v28, %v2024_v46  ;;  %v1746_v60 = vmov 1983009808   ;;  %v530_v50 = vsub.s32 6, %v2015_v43 }
 0x21a   :  { %v515_v29 = vrot.slane %v502_v28, %v514_v22  ;;  %v519_v31 = vrot.slane %v502_v28, %v518_v26  ;;  %v1407_v61 = vunpack.c.l.s4 %v1746_v60  ;;  %v526_v53 = vsub.s32 5, %v2015_v43 }
 0x21b   :  { %v534_v9 = vsub.s32 7, %v2015_v43  ;;  %v523_v10 = vrot.slane %v502_v28, %v522_v47  ;;  %v531_v11 = vrot.slane %v502_v28, %v530_v50 }
 0x21c   :  { %v1408_v62 = vunpack.c.0.s8 %v1407_v61  ;;  %v527_v12 = vrot.slane %v502_v28, %v526_v53 }
 0x21d   :  { %v535_v13 = vrot.slane %v502_v28, %v534_v9 }
 0x21e   :  { %v1411_v1 = vsub.s32 %v1408_v62, %v2015_v43 }
 0x2a3   :  { %v1218_v32 = vpop.f32.mrb[4].mxu0  ;;  %v1259_v33 = vpop.f32.mrb[4].mxu1 }
 0x2a4   :  { %v1219_v34 = vadd.f32 %v1218_v32, %v507_v27  ;;  %v1260_v35 = vadd.f32 %v1259_v33, %v515_v29  ;;  %v1220_v36 = vpop.f32.mrb[5].mxu0  ;;  %v1261_v37 = vpop.f32.mrb[5].mxu1 }
 0x2a5   :  { %v1221_v38 = vadd.f32 %v1220_v36, %v511_v30  ;;  %v1262_v39 = vadd.f32 %v1261_v37, %v519_v31  ;;  %v1222_v40 = vpop.f32.mrb[6].mxu0  ;;  %v1263_v41 = vpop.f32.mrb[6].mxu1 }
 0x2a6   :  { %v1624_v42 = vmul.f32 -1.442695, %v1219_v34  ;;  %v1626_v45 = vmul.f32 -1.442695, %v1260_v35  ;;  %v1223_v48 = vpop.f32.mrb[7].mxu0  ;;  %v1264_v49 = vpop.f32.mrb[7].mxu1 }
 0x2a7   :  { %v1625_v51 = vmul.f32 -1.442695, %v1221_v38  ;;  %v1627_v44 = vmul.f32 -1.442695, %v1262_v39 }
 0x2a8   :  { %1688 = vpow2.f32 %v1624_v42 }
 0x2a9   :  { %1690 = vpow2.f32 %v1626_v45 }
 0x2aa   :  { %1692 = vpow2.f32 %v1625_v51 }
 0x2ab   :  { %1694 = vpow2.f32 %v1627_v44 }
 0x2b2   :  { %v1689_v46 = vpop.eup %1688 }
 0x2b3   :  { %v1691_v52 = vpop.eup %1690  ;;  %v1372_v54 = vadd.f32 1.0, %v1689_v46 }
 0x2b4   :  { %v1693_v55 = vpop.eup %1692  ;;  %v1374_v56 = vadd.f32 1.0, %v1691_v52 }
 0x2b5   :  { %v1695_v57 = vpop.eup %1694  ;;  %1696 = vrcp.f32 %v1372_v54  ;;  %v1373_v58 = vadd.f32 1.0, %v1693_v55 }
 0x2b6   :  { %1698 = vrcp.f32 %v1374_v56  ;;  %v1375_v59 = vadd.f32 1.0, %v1695_v57 }
 0x2b7   :  { %1700 = vrcp.f32 %v1373_v58 }
 0x2b8   :  { %1702 = vrcp.f32 %v1375_v59 }
 0x2bf   :  { %v1697_v63 = vpop.eup %1696 }
 0x2c0   :  { %v1699_v0 = vpop.eup %1698 }
 0x2c1   :  { %v1701_v2 = vpop.eup %1700 }
 0x2c2   :  { %v1703_v3 = vpop.eup %1702  ;;  %v1404_v4 = vcombine.low %v1697_v63, %v1701_v2 }
 0x2c3   :  { %v1405_v5 = vcombine.low %v1699_v0, %v1703_v3 }
 0x2c4   :  { %v1412_v6 = vrot.slane %v1404_v4, %v1411_v1 }
 0x2c5   :  { %v1419_v7 = vrot.slane %v1405_v5, %v1411_v1 }
 0x2c7   :  { %v1420_v8 = vcombine.low %v1412_v6, %v1419_v7 }
 0x2c9   :  { %1440 = vst [vmem:[%s2376_s9] sm:$0xff] %v1420_v8 }
 0x2e3   :  { %v1300_v14 = vpop.f32.mrb[8].mxu0  ;;  %v1341_v15 = vpop.f32.mrb[8].mxu1 }
 0x2e4   :  { %v1301_v16 = vadd.f32 %v1300_v14, %v523_v10  ;;  %v1342_v17 = vadd.f32 %v1341_v15, %v531_v11  ;;  %v1302_v18 = vpop.f32.mrb[9].mxu0  ;;  %v1343_v19 = vpop.f32.mrb[9].mxu1 }
 0x2e5   :  { %v1303_v20 = vadd.f32 %v1302_v18, %v527_v12  ;;  %v1344_v21 = vadd.f32 %v1343_v19, %v535_v13  ;;  %v1304_v23 = vpop.f32.mrb[10].mxu0  ;;  %v1345_v24 = vpop.f32.mrb[10].mxu1 }
 0x2e6   :  { %v1628_v25 = vmul.f32 -1.442695, %v1301_v16  ;;  %v1630_v22 = vmul.f32 -1.442695, %v1342_v17  ;;  %v1305_v26 = vpop.f32.mrb[11].mxu0  ;;  %v1346_v27 = vpop.f32.mrb[11].mxu1 }
 0x2e7   :  { %v1629_v29 = vmul.f32 -1.442695, %v1303_v20  ;;  %v1631_v43 = vmul.f32 -1.442695, %v1344_v21 }
 0x2e8   :  { %1704 = vpow2.f32 %v1628_v25 }
 0x2e9   :  { %1706 = vpow2.f32 %v1630_v22 }
 0x2ea   :  { %1708 = vpow2.f32 %v1629_v29 }
 0x2eb   :  { %1710 = vpow2.f32 %v1631_v43 }
 0x2f2   :  { %v1705_v28 = vpop.eup %1704 }
 0x2f3   :  { %v1707_v30 = vpop.eup %1706  ;;  %v1376_v31 = vadd.f32 1.0, %v1705_v28 }
 0x2f4   :  { %v1709_v32 = vpop.eup %1708  ;;  %v1378_v33 = vadd.f32 1.0, %v1707_v30 }
 0x2f5   :  { %v1711_v34 = vpop.eup %1710  ;;  %1712 = vrcp.f32 %v1376_v31  ;;  %v1377_v35 = vadd.f32 1.0, %v1709_v32 }
 0x2f6   :  { %1714 = vrcp.f32 %v1378_v33  ;;  %v1379_v36 = vadd.f32 1.0, %v1711_v34 }
 0x2f7   :  { %1716 = vrcp.f32 %v1377_v35 }
 0x2f8   :  { %1718 = vrcp.f32 %v1379_v36 }
 0x2ff   :  { %v1713_v37 = vpop.eup %1712 }
 0x300   :  { %v1715_v38 = vpop.eup %1714 }
 0x301   :  { %v1717_v39 = vpop.eup %1716 }
 0x302   :  { %v1719_v40 = vpop.eup %1718  ;;  %v1421_v41 = vcombine.low %v1713_v37, %v1717_v39 }
 0x303   :  { %v1422_v42 = vcombine.low %v1715_v38, %v1719_v40 }
 0x304   :  { %v1429_v45 = vrot.slane %v1421_v41, %v1411_v1 }
 0x305   :  { %v1436_v48 = vrot.slane %v1422_v42, %v1411_v1 }
 0x307   :  { %v1437_v49 = vcombine.low %v1429_v45, %v1436_v48 }
 0x309   :  { %1441 = vst [vmem:[%s2376_s9 + $0x8] sm:$0xff] %v1437_v49 }
 0x30a   :  { %1742 = dma.done.wait [#allocation3], 32  }
 0x30b   :  { %1743 = vsyncadd [#allocation3], 4294967264 }
 0x30c   :  { %1459 = vsyncpa [#allocation3], 1 }

</bundles_post_ra>
